<compile_context>
chip_gen: v6e
topology: v6e:2x2x1
jax: 0.10.0
libtpu: 0.0.40
codegen_flags: <defaults>
</compile_context>

<pallas_src>
import functools

import jax
import jax.numpy as jnp
from jax import lax
from jax.experimental import pallas as pl
from jax.experimental.pallas import tpu as pltpu


def _round_up(x, m):
    return (x + m - 1) // m * m


# ----------------------------------------------------------------------------
# Kernel 1: whole-sequence multi-layer LSTM, single grid step, state in f32
# carries, per-layer hoisted input projection.
#   x_ref   : (T*Bp, P)      padded, time-major flattened embeddings
#   wih_ref : (L, P, 4P)     gate-aligned, transposed, zero-padded
#   whh_ref : (L, P, 4P)
#   b_ref   : (L, 1, 4P)     b_ih + b_hh, gate-aligned, zero-padded
#   out_ref : (T*Bp, P)      top-layer hiddens (also reused as inter-layer buffer)
#   gx_ref  : (T*Bp, 4P)     scratch: hoisted input-projection gates for one layer
# ----------------------------------------------------------------------------
def _lstm_seq_kernel(x_ref, wih_ref, whh_ref, b_ref, out_ref, gx_ref,
                     *, num_layers, T, Bp, P):
    wdt = wih_ref.dtype                                   # matmul operand dtype

    for l in range(num_layers):                           # static unroll (small L)
        seq_in = x_ref[...] if l == 0 else out_ref[...]   # (T*Bp, P)

        # Hoisted input projection for ALL timesteps of this layer + bias (added once).
        gx_ref[...] = (jnp.dot(seq_in.astype(wdt), wih_ref[l],
                               preferred_element_type=jnp.float32)
                       + b_ref[l])                        # (T*Bp, 4P), f32

        whh_l = whh_ref[l]                                # (P, 4P) hoisted load

        def step(t, carry):
            h, c = carry                                  # (Bp, P) f32 each
            row = pl.multiple_of(t * Bp, Bp)
            gates = gx_ref[pl.ds(row, Bp), :] + jnp.dot(
                h.astype(wdt), whh_l, preferred_element_type=jnp.float32)
            # lane-aligned gate slabs (P = multiple of 128); gate order i, f, g, o
            i_g = jax.nn.sigmoid(gates[:, 0 * P:1 * P])
            f_g = jax.nn.sigmoid(gates[:, 1 * P:2 * P])
            g_g = jnp.tanh(gates[:, 2 * P:3 * P])
            o_g = jax.nn.sigmoid(gates[:, 3 * P:4 * P])
            c_new = f_g * c + i_g * g_g                   # elementwise kept in f32
            h_new = o_g * jnp.tanh(c_new)
            out_ref[pl.ds(row, Bp), :] = h_new            # this layer's hidden at step t
            return (h_new, c_new)

        zeros = jnp.zeros((Bp, P), jnp.float32)
        lax.fori_loop(0, T, step, (zeros, zeros), unroll=True)


def lstm_sequence(x_flat, wih, whh, bias, *, num_layers, T, Bp, P):
    kernel = functools.partial(_lstm_seq_kernel,
                               num_layers=num_layers, T=T, Bp=Bp, P=P)
    return pl.pallas_call(
        kernel,
        out_shape=jax.ShapeDtypeStruct((T * Bp, P), jnp.float32),
        grid_spec=pltpu.PrefetchScalarGridSpec(
            num_scalar_prefetch=0,
            grid=(1,),                                    # whole sequence in one step
            in_specs=[
                pl.BlockSpec((T * Bp, P), lambda i: (0, 0)),
                pl.BlockSpec(wih.shape, lambda i: (0, 0, 0)),
                pl.BlockSpec(whh.shape, lambda i: (0, 0, 0)),
                pl.BlockSpec(bias.shape, lambda i: (0, 0, 0)),
            ],
            out_specs=pl.BlockSpec((T * Bp, P), lambda i: (0, 0)),
            scratch_shapes=[pltpu.VMEM((T * Bp, 4 * P), jnp.float32)],
        ),
        compiler_params=pltpu.CompilerParams(dimension_semantics=("arbitrary",)),
    )(x_flat, wih, whh, bias)


# ----------------------------------------------------------------------------
# Kernel 2: vocab projection over the dense hidden slab, 2-D parallel tiling.
# ----------------------------------------------------------------------------
def _linear_kernel(x_ref, w_ref, b_ref, o_ref):
    x = x_ref[...].astype(w_ref.dtype)
    o_ref[...] = (jnp.dot(x, w_ref[...], preferred_element_type=jnp.float32)
                  + b_ref[...]).astype(o_ref.dtype)


def linear_proj(x, w_t, b, *, tm=256, tn=512):
    N, K = x.shape                  # N multiple of 8, K multiple of 128 (padded)
    V = w_t.shape[1]                # multiple of 128 (padded)
    tm = min(tm, N)
    tn = min(tn, V)
    Np = _round_up(N, tm)
    Vp = _round_up(V, tn)
    if Np != N:
        x = jnp.pad(x, ((0, Np - N), (0, 0)))
    if Vp != V:
        w_t = jnp.pad(w_t, ((0, 0), (0, Vp - V)))
        b = jnp.pad(b, ((0, 0), (0, Vp - V)))
    out = pl.pallas_call(
        _linear_kernel,
        out_shape=jax.ShapeDtypeStruct((Np, Vp), jnp.float32),
        grid=(Np // tm, Vp // tn),
        in_specs=[pl.BlockSpec((tm, K), lambda i, j: (i, 0)),
                  pl.BlockSpec((K, tn), lambda i, j: (0, j)),
                  pl.BlockSpec((1, tn), lambda i, j: (0, j))],
        out_specs=pl.BlockSpec((tm, tn), lambda i, j: (i, j)),
        compiler_params=pltpu.CompilerParams(
            dimension_semantics=("parallel", "parallel")),
    )(x, w_t, b)
    return out[:N, :V]


# ----------------------------------------------------------------------------
# Parameters (deterministic; gate-aligned zero-padded to lane-dense shapes).
# ----------------------------------------------------------------------------
def _pad_gates_t(w, in_sz, H, P):
    """(4H, in_sz) torch-layout weight -> (P, 4P) transposed, gate-aligned, zero-padded."""
    out = jnp.zeros((P, 4 * P), jnp.float32)
    wt = w.T                                              # (in_sz, 4H)
    for k in range(4):
        out = out.at[:in_sz, k * P:k * P + H].set(wt[:, k * H:(k + 1) * H])
    return out


def _pad_gate_bias(b, H, P):
    out = jnp.zeros((4 * P,), jnp.float32)
    for k in range(4):
        out = out.at[k * P:k * P + H].set(b[k * H:(k + 1) * H])
    return out


def init_params(key, embed_size, hidden_size, vocab_size, num_layers):
    E, H, V, L = embed_size, hidden_size, vocab_size, num_layers
    P = _round_up(max(E, H), 128)                         # common padded feature dim
    Vp = _round_up(V, 128)
    ks = jax.random.split(key, 3 + 4 * L)
    scale = 1.0 / float(H) ** 0.5
    embed = jax.random.normal(ks[0], (V, E), jnp.float32)
    wih, whh, bias = [], [], []
    for l in range(L):
        in_sz = E if l == 0 else H
        w_ih = jax.random.uniform(ks[3 + 4 * l + 0], (4 * H, in_sz), jnp.float32, -scale, scale)
        w_hh = jax.random.uniform(ks[3 + 4 * l + 1], (4 * H, H), jnp.float32, -scale, scale)
        b_ih = jax.random.uniform(ks[3 + 4 * l + 2], (4 * H,), jnp.float32, -scale, scale)
        b_hh = jax.random.uniform(ks[3 + 4 * l + 3], (4 * H,), jnp.float32, -scale, scale)
        wih.append(_pad_gates_t(w_ih, in_sz, H, P))       # (P, 4P)
        whh.append(_pad_gates_t(w_hh, H, H, P))           # (P, 4P)
        bias.append(_pad_gate_bias(b_ih + b_hh, H, P)[None, :])   # (1, 4P)
    lin_w = jax.random.uniform(ks[1], (V, H), jnp.float32, -scale, scale)
    lin_b = jax.random.uniform(ks[2], (V,), jnp.float32, -scale, scale)
    lin_w_t = jnp.zeros((P, Vp), jnp.float32).at[:H, :V].set(lin_w.T)
    lin_b_p = jnp.zeros((1, Vp), jnp.float32).at[0, :V].set(lin_b)
    return dict(
        embed=embed,
        wih=jnp.stack(wih), whh=jnp.stack(whh), bias=jnp.stack(bias),
        lin_w_t=lin_w_t, lin_b=lin_b_p,
        num_layers=L, hidden_size=H, embed_size=E, vocab_size=V,
        padded_dim=P, padded_vocab=Vp,
    )


# ----------------------------------------------------------------------------
# DecoderRNN.forward equivalent (teacher_forcing_ratio == 1.0)
# ----------------------------------------------------------------------------
def decoder_forward(params, dst_tokens, lengths, *, dropout_p=0.22, dropout_key=None,
                    matmul_dtype=jnp.float32):
    # matmul_dtype=jnp.bfloat16 is recommended on v6e/v7x (2x MXU throughput, half the
    # resident-weight VMEM); elementwise gate math and accumulation stay in f32.
    B, T = dst_tokens.shape
    E = params["embed_size"]
    V = params["vocab_size"]
    P = params["padded_dim"]
    Bp = _round_up(B, 8)

    # embedding lookup (glue)
    emb = jnp.take(params["embed"], dst_tokens, axis=0)                   # (B, T, E)
    # train-mode dropout (glue, fixed key for determinism)
    if dropout_key is not None and dropout_p > 0.0:
        keep = jax.random.bernoulli(dropout_key, 1.0 - dropout_p, emb.shape)
        emb = jnp.where(keep, emb / (1.0 - dropout_p), 0.0)

    # time-major, pad batch -> multiple of 8, feature -> P, flatten to (T*Bp, P)
    x = jnp.transpose(emb, (1, 0, 2))                                     # (T, B, E)
    x = jnp.pad(x, ((0, 0), (0, Bp - B), (0, P - E)))
    x_flat = x.reshape(T * Bp, P)

    wih = params["wih"].astype(matmul_dtype)
    whh = params["whh"].astype(matmul_dtype)
    lin_w_t = params["lin_w_t"].astype(matmul_dtype)

    hid = lstm_sequence(x_flat, wih, whh, params["bias"],
                        num_layers=params["num_layers"], T=T, Bp=Bp, P=P)  # (T*Bp, P)

    # vocab projection over the dense slab (lane-dense, big-M matmul)
    proj = linear_proj(hid, lin_w_t, params["lin_b"])                     # (T*Bp, Vp)
    proj = proj[:, :V]

    # pack_padded_sequence row order from static lengths (must be sorted decreasing)
    lengths = [int(l) for l in lengths]
    assert lengths == sorted(lengths, reverse=True)
    batch_sizes = [sum(1 for ln in lengths if ln > t) for t in range(max(lengths))]
    idx = jnp.array([t * Bp + b for t, bs in enumerate(batch_sizes) for b in range(bs)],
                    dtype=jnp.int32)
    return jnp.take(proj, idx, axis=0)                                    # (N, V)


if __name__ == "__main__":
    embed_size, hidden_size, vocab_size, num_layers = 32, 32, 64, 2
    B, T = 4, 8
    lengths = [8, 8, 6, 5]                       # sorted decreasing, max == T

    root = jax.random.PRNGKey(0)
    k_param, k_tok, k_drop = jax.random.split(root, 3)
    params = init_params(k_param, embed_size, hidden_size, vocab_size, num_layers)
    dst_tokens = jax.random.randint(k_tok, (B, T), 0, vocab_size, dtype=jnp.int32)

    out = decoder_forward(params, dst_tokens, lengths, dropout_p=0.22, dropout_key=k_drop)
    out = jax.block_until_ready(out)
    assert out.shape == (sum(lengths), vocab_size), out.shape
    assert bool(jnp.all(jnp.isfinite(out)))
    print("KERNEL_OK")
</pallas_src>

<mosaic_0001>
module attributes {stable_mosaic.version = 11 : i64} {
  func.func @_lstm_seq_kernel(%arg0: i32, %arg1: memref<64x128xf32, #tpu.memory_space<vmem>>, %arg2: memref<2x128x512xf32, #tpu.memory_space<vmem>>, %arg3: memref<2x128x512xf32, #tpu.memory_space<vmem>>, %arg4: memref<2x1x512xf32, #tpu.memory_space<vmem>>, %arg5: memref<64x128xf32, #tpu.memory_space<vmem>>, %arg6: memref<64x512xf32, #tpu.memory_space<vmem>>) attributes {dimension_semantics = [#tpu.dimension_semantics<arbitrary>], iteration_bounds = array<i64: 1>, scalar_prefetch = 0 : i64, scratch_operands = 1 : i64, tpu.core_type = #tpu.core_type<tc>, window_params = [{pipeline_mode = #tpu.pipeline_mode<synchronous>, transform_indices = @transform_0, window_bounds = array<i64: 64, 128>}, {pipeline_mode = #tpu.pipeline_mode<synchronous>, transform_indices = @transform_1, window_bounds = array<i64: 2, 128, 512>}, {pipeline_mode = #tpu.pipeline_mode<synchronous>, transform_indices = @transform_2, window_bounds = array<i64: 2, 128, 512>}, {pipeline_mode = #tpu.pipeline_mode<synchronous>, transform_indices = @transform_3, window_bounds = array<i64: 2, 1, 512>}, {pipeline_mode = #tpu.pipeline_mode<synchronous>, transform_indices = @transform_4, window_bounds = array<i64: 64, 128>}]} {
    %c0 = arith.constant 0 : index
    %c0_0 = arith.constant 0 : index
    %0 = vector.load %arg1[%c0, %c0_0] : memref<64x128xf32, #tpu.memory_space<vmem>>, vector<64x128xf32>
    %c0_1 = arith.constant 0 : index
    %c0_2 = arith.constant 0 : index
    %c0_3 = arith.constant 0 : index
    %1 = vector.load %arg2[%c0_1, %c0_2, %c0_3] : memref<2x128x512xf32, #tpu.memory_space<vmem>>, vector<1x128x512xf32>
    %2 = vector.shape_cast %1 : vector<1x128x512xf32> to vector<128x512xf32>
    %cst = arith.constant dense<0.000000e+00> : vector<64x512xf32>
    %3 = tpu.matmul %0, %2, %cst {dimension_numbers = #tpu.dot_dimension_numbers<[1], [0], [0], [1], [0, 0, 1, 1], [], []>} : vector<64x128xf32>, vector<128x512xf32>, vector<64x512xf32> -> vector<64x512xf32>
    %c0_4 = arith.constant 0 : index
    %c0_5 = arith.constant 0 : index
    %c0_6 = arith.constant 0 : index
    %4 = vector.load %arg4[%c0_4, %c0_5, %c0_6] : memref<2x1x512xf32, #tpu.memory_space<vmem>>, vector<1x1x512xf32>
    %5 = vector.shape_cast %4 : vector<1x1x512xf32> to vector<1x512xf32>
    %6 = vector.broadcast %5 : vector<1x512xf32> to vector<64x512xf32>
    %7 = arith.addf %3, %6 : vector<64x512xf32>
    %c0_7 = arith.constant 0 : index
    %c0_8 = arith.constant 0 : index
    %8 = vector.load %arg6[%c0_7, %c0_8] : memref<64x512xf32, #tpu.memory_space<vmem>>, vector<64x512xf32>
    tpu.vector_store %arg6[%c0_7, %c0_8], %7 {strides = array<i32>} : memref<64x512xf32, #tpu.memory_space<vmem>>, vector<64x512xf32>,
    %c0_9 = arith.constant 0 : index
    %c0_10 = arith.constant 0 : index
    %c0_11 = arith.constant 0 : index
    %9 = vector.load %arg3[%c0_9, %c0_10, %c0_11] : memref<2x128x512xf32, #tpu.memory_space<vmem>>, vector<1x128x512xf32>
    %10 = vector.shape_cast %9 : vector<1x128x512xf32> to vector<128x512xf32>
    %cst_12 = arith.constant 0.000000e+00 : f32
    %11 = vector.broadcast %cst_12 : f32 to vector<8x128xf32>
    %c0_i32 = arith.constant 0 : i32
    %c8_i32 = arith.constant 8 : i32
    %12 = arith.muli %c0_i32, %c8_i32 : i32
    %13 = tpu.assume_multiple %12, 8 : i32
    %14 = arith.index_cast %13 : i32 to index
    %c0_13 = arith.constant 0 : index
    %15 = vector.load %arg6[%14, %c0_13] : memref<64x512xf32, #tpu.memory_space<vmem>>, vector<8x512xf32>
    %cst_14 = arith.constant dense<0.000000e+00> : vector<8x512xf32>
    %16 = tpu.matmul %11, %10, %cst_14 {dimension_numbers = #tpu.dot_dimension_numbers<[1], [0], [0], [1], [0, 0, 1, 1], [], []>} : vector<8x128xf32>, vector<128x512xf32>, vector<8x512xf32> -> vector<8x512xf32>
    %17 = arith.addf %15, %16 : vector<8x512xf32>
    %18 = vector.extract_strided_slice %17 {offsets = [0, 0], sizes = [8, 128], strides = [1, 1]} : vector<8x512xf32> to vector<8x128xf32>
    %19 = arith.negf %18 : vector<8x128xf32>
    %20 = math.exp %19 : vector<8x128xf32>
    %cst_15 = arith.constant 1.000000e+00 : f32
    %21 = vector.broadcast %cst_15 : f32 to vector<8x128xf32>
    %22 = arith.addf %21, %20 : vector<8x128xf32>
    %23 = arith.divf %21, %22 : vector<8x128xf32>
    %24 = vector.extract_strided_slice %17 {offsets = [0, 128], sizes = [8, 128], strides = [1, 1]} : vector<8x512xf32> to vector<8x128xf32>
    %25 = arith.negf %24 : vector<8x128xf32>
    %26 = math.exp %25 : vector<8x128xf32>
    %cst_16 = arith.constant 1.000000e+00 : f32
    %27 = vector.broadcast %cst_16 : f32 to vector<8x128xf32>
    %28 = arith.addf %27, %26 : vector<8x128xf32>
    %29 = arith.divf %27, %28 : vector<8x128xf32>
    %30 = vector.extract_strided_slice %17 {offsets = [0, 256], sizes = [8, 128], strides = [1, 1]} : vector<8x512xf32> to vector<8x128xf32>
    %31 = math.tanh %30 : vector<8x128xf32>
    %32 = vector.extract_strided_slice %17 {offsets = [0, 384], sizes = [8, 128], strides = [1, 1]} : vector<8x512xf32> to vector<8x128xf32>
    %33 = arith.negf %32 : vector<8x128xf32>
    %34 = math.exp %33 : vector<8x128xf32>
    %cst_17 = arith.constant 1.000000e+00 : f32
    %35 = vector.broadcast %cst_17 : f32 to vector<8x128xf32>
    %36 = arith.addf %35, %34 : vector<8x128xf32>
    %37 = arith.divf %35, %36 : vector<8x128xf32>
    %38 = arith.mulf %29, %11 : vector<8x128xf32>
    %39 = arith.mulf %23, %31 : vector<8x128xf32>
    %40 = arith.addf %38, %39 : vector<8x128xf32>
    %41 = math.tanh %40 : vector<8x128xf32>
    %42 = arith.mulf %37, %41 : vector<8x128xf32>
    %43 = arith.index_cast %13 : i32 to index
    %c0_18 = arith.constant 0 : index
    %44 = vector.load %arg5[%43, %c0_18] : memref<64x128xf32, #tpu.memory_space<vmem>>, vector<8x128xf32>
    tpu.vector_store %arg5[%43, %c0_18], %42 {strides = array<i32>} : memref<64x128xf32, #tpu.memory_space<vmem>>, vector<8x128xf32>,
    %c1_i32 = arith.constant 1 : i32
    %c8_i32_19 = arith.constant 8 : i32
    %45 = arith.muli %c1_i32, %c8_i32_19 : i32
    %46 = tpu.assume_multiple %45, 8 : i32
    %47 = arith.index_cast %46 : i32 to index
    %c0_20 = arith.constant 0 : index
    %48 = vector.load %arg6[%47, %c0_20] : memref<64x512xf32, #tpu.memory_space<vmem>>, vector<8x512xf32>
    %cst_21 = arith.constant dense<0.000000e+00> : vector<8x512xf32>
    %49 = tpu.matmul %42, %10, %cst_21 {dimension_numbers = #tpu.dot_dimension_numbers<[1], [0], [0], [1], [0, 0, 1, 1], [], []>} : vector<8x128xf32>, vector<128x512xf32>, vector<8x512xf32> -> vector<8x512xf32>
    %50 = arith.addf %48, %49 : vector<8x512xf32>
    %51 = vector.extract_strided_slice %50 {offsets = [0, 0], sizes = [8, 128], strides = [1, 1]} : vector<8x512xf32> to vector<8x128xf32>
    %52 = arith.negf %51 : vector<8x128xf32>
    %53 = math.exp %52 : vector<8x128xf32>
    %cst_22 = arith.constant 1.000000e+00 : f32
    %54 = vector.broadcast %cst_22 : f32 to vector<8x128xf32>
    %55 = arith.addf %54, %53 : vector<8x128xf32>
    %56 = arith.divf %54, %55 : vector<8x128xf32>
    %57 = vector.extract_strided_slice %50 {offsets = [0, 128], sizes = [8, 128], strides = [1, 1]} : vector<8x512xf32> to vector<8x128xf32>
    %58 = arith.negf %57 : vector<8x128xf32>
    %59 = math.exp %58 : vector<8x128xf32>
    %cst_23 = arith.constant 1.000000e+00 : f32
    %60 = vector.broadcast %cst_23 : f32 to vector<8x128xf32>
    %61 = arith.addf %60, %59 : vector<8x128xf32>
    %62 = arith.divf %60, %61 : vector<8x128xf32>
    %63 = vector.extract_strided_slice %50 {offsets = [0, 256], sizes = [8, 128], strides = [1, 1]} : vector<8x512xf32> to vector<8x128xf32>
    %64 = math.tanh %63 : vector<8x128xf32>
    %65 = vector.extract_strided_slice %50 {offsets = [0, 384], sizes = [8, 128], strides = [1, 1]} : vector<8x512xf32> to vector<8x128xf32>
    %66 = arith.negf %65 : vector<8x128xf32>
    %67 = math.exp %66 : vector<8x128xf32>
    %cst_24 = arith.constant 1.000000e+00 : f32
    %68 = vector.broadcast %cst_24 : f32 to vector<8x128xf32>
    %69 = arith.addf %68, %67 : vector<8x128xf32>
    %70 = arith.divf %68, %69 : vector<8x128xf32>
    %71 = arith.mulf %62, %40 : vector<8x128xf32>
    %72 = arith.mulf %56, %64 : vector<8x128xf32>
    %73 = arith.addf %71, %72 : vector<8x128xf32>
    %74 = math.tanh %73 : vector<8x128xf32>
    %75 = arith.mulf %70, %74 : vector<8x128xf32>
    %76 = arith.index_cast %46 : i32 to index
    %c0_25 = arith.constant 0 : index
    %77 = vector.load %arg5[%76, %c0_25] : memref<64x128xf32, #tpu.memory_space<vmem>>, vector<8x128xf32>
    tpu.vector_store %arg5[%76, %c0_25], %75 {strides = array<i32>} : memref<64x128xf32, #tpu.memory_space<vmem>>, vector<8x128xf32>,
    %c2_i32 = arith.constant 2 : i32
    %c8_i32_26 = arith.constant 8 : i32
    %78 = arith.muli %c2_i32, %c8_i32_26 : i32
    %79 = tpu.assume_multiple %78, 8 : i32
    %80 = arith.index_cast %79 : i32 to index
    %c0_27 = arith.constant 0 : index
    %81 = vector.load %arg6[%80, %c0_27] : memref<64x512xf32, #tpu.memory_space<vmem>>, vector<8x512xf32>
    %cst_28 = arith.constant dense<0.000000e+00> : vector<8x512xf32>
    %82 = tpu.matmul %75, %10, %cst_28 {dimension_numbers = #tpu.dot_dimension_numbers<[1], [0], [0], [1], [0, 0, 1, 1], [], []>} : vector<8x128xf32>, vector<128x512xf32>, vector<8x512xf32> -> vector<8x512xf32>
    %83 = arith.addf %81, %82 : vector<8x512xf32>
    %84 = vector.extract_strided_slice %83 {offsets = [0, 0], sizes = [8, 128], strides = [1, 1]} : vector<8x512xf32> to vector<8x128xf32>
    %85 = arith.negf %84 : vector<8x128xf32>
    %86 = math.exp %85 : vector<8x128xf32>
    %cst_29 = arith.constant 1.000000e+00 : f32
    %87 = vector.broadcast %cst_29 : f32 to vector<8x128xf32>
    %88 = arith.addf %87, %86 : vector<8x128xf32>
    %89 = arith.divf %87, %88 : vector<8x128xf32>
    %90 = vector.extract_strided_slice %83 {offsets = [0, 128], sizes = [8, 128], strides = [1, 1]} : vector<8x512xf32> to vector<8x128xf32>
    %91 = arith.negf %90 : vector<8x128xf32>
    %92 = math.exp %91 : vector<8x128xf32>
    %cst_30 = arith.constant 1.000000e+00 : f32
    %93 = vector.broadcast %cst_30 : f32 to vector<8x128xf32>
    %94 = arith.addf %93, %92 : vector<8x128xf32>
    %95 = arith.divf %93, %94 : vector<8x128xf32>
    %96 = vector.extract_strided_slice %83 {offsets = [0, 256], sizes = [8, 128], strides = [1, 1]} : vector<8x512xf32> to vector<8x128xf32>
    %97 = math.tanh %96 : vector<8x128xf32>
    %98 = vector.extract_strided_slice %83 {offsets = [0, 384], sizes = [8, 128], strides = [1, 1]} : vector<8x512xf32> to vector<8x128xf32>
    %99 = arith.negf %98 : vector<8x128xf32>
    %100 = math.exp %99 : vector<8x128xf32>
    %cst_31 = arith.constant 1.000000e+00 : f32
    %101 = vector.broadcast %cst_31 : f32 to vector<8x128xf32>
    %102 = arith.addf %101, %100 : vector<8x128xf32>
    %103 = arith.divf %101, %102 : vector<8x128xf32>
    %104 = arith.mulf %95, %73 : vector<8x128xf32>
    %105 = arith.mulf %89, %97 : vector<8x128xf32>
    %106 = arith.addf %104, %105 : vector<8x128xf32>
    %107 = math.tanh %106 : vector<8x128xf32>
    %108 = arith.mulf %103, %107 : vector<8x128xf32>
    %109 = arith.index_cast %79 : i32 to index
    %c0_32 = arith.constant 0 : index
    %110 = vector.load %arg5[%109, %c0_32] : memref<64x128xf32, #tpu.memory_space<vmem>>, vector<8x128xf32>
    tpu.vector_store %arg5[%109, %c0_32], %108 {strides = array<i32>} : memref<64x128xf32, #tpu.memory_space<vmem>>, vector<8x128xf32>,
    %c3_i32 = arith.constant 3 : i32
    %c8_i32_33 = arith.constant 8 : i32
    %111 = arith.muli %c3_i32, %c8_i32_33 : i32
    %112 = tpu.assume_multiple %111, 8 : i32
    %113 = arith.index_cast %112 : i32 to index
    %c0_34 = arith.constant 0 : index
    %114 = vector.load %arg6[%113, %c0_34] : memref<64x512xf32, #tpu.memory_space<vmem>>, vector<8x512xf32>
    %cst_35 = arith.constant dense<0.000000e+00> : vector<8x512xf32>
    %115 = tpu.matmul %108, %10, %cst_35 {dimension_numbers = #tpu.dot_dimension_numbers<[1], [0], [0], [1], [0, 0, 1, 1], [], []>} : vector<8x128xf32>, vector<128x512xf32>, vector<8x512xf32> -> vector<8x512xf32>
    %116 = arith.addf %114, %115 : vector<8x512xf32>
    %117 = vector.extract_strided_slice %116 {offsets = [0, 0], sizes = [8, 128], strides = [1, 1]} : vector<8x512xf32> to vector<8x128xf32>
    %118 = arith.negf %117 : vector<8x128xf32>
    %119 = math.exp %118 : vector<8x128xf32>
    %cst_36 = arith.constant 1.000000e+00 : f32
    %120 = vector.broadcast %cst_36 : f32 to vector<8x128xf32>
    %121 = arith.addf %120, %119 : vector<8x128xf32>
    %122 = arith.divf %120, %121 : vector<8x128xf32>
    %123 = vector.extract_strided_slice %116 {offsets = [0, 128], sizes = [8, 128], strides = [1, 1]} : vector<8x512xf32> to vector<8x128xf32>
    %124 = arith.negf %123 : vector<8x128xf32>
    %125 = math.exp %124 : vector<8x128xf32>
    %cst_37 = arith.constant 1.000000e+00 : f32
    %126 = vector.broadcast %cst_37 : f32 to vector<8x128xf32>
    %127 = arith.addf %126, %125 : vector<8x128xf32>
    %128 = arith.divf %126, %127 : vector<8x128xf32>
    %129 = vector.extract_strided_slice %116 {offsets = [0, 256], sizes = [8, 128], strides = [1, 1]} : vector<8x512xf32> to vector<8x128xf32>
    %130 = math.tanh %129 : vector<8x128xf32>
    %131 = vector.extract_strided_slice %116 {offsets = [0, 384], sizes = [8, 128], strides = [1, 1]} : vector<8x512xf32> to vector<8x128xf32>
    %132 = arith.negf %131 : vector<8x128xf32>
    %133 = math.exp %132 : vector<8x128xf32>
    %cst_38 = arith.constant 1.000000e+00 : f32
    %134 = vector.broadcast %cst_38 : f32 to vector<8x128xf32>
    %135 = arith.addf %134, %133 : vector<8x128xf32>
    %136 = arith.divf %134, %135 : vector<8x128xf32>
    %137 = arith.mulf %128, %106 : vector<8x128xf32>
    %138 = arith.mulf %122, %130 : vector<8x128xf32>
    %139 = arith.addf %137, %138 : vector<8x128xf32>
    %140 = math.tanh %139 : vector<8x128xf32>
    %141 = arith.mulf %136, %140 : vector<8x128xf32>
    %142 = arith.index_cast %112 : i32 to index
    %c0_39 = arith.constant 0 : index
    %143 = vector.load %arg5[%142, %c0_39] : memref<64x128xf32, #tpu.memory_space<vmem>>, vector<8x128xf32>
    tpu.vector_store %arg5[%142, %c0_39], %141 {strides = array<i32>} : memref<64x128xf32, #tpu.memory_space<vmem>>, vector<8x128xf32>,
    %c4_i32 = arith.constant 4 : i32
    %c8_i32_40 = arith.constant 8 : i32
    %144 = arith.muli %c4_i32, %c8_i32_40 : i32
    %145 = tpu.assume_multiple %144, 8 : i32
    %146 = arith.index_cast %145 : i32 to index
    %c0_41 = arith.constant 0 : index
    %147 = vector.load %arg6[%146, %c0_41] : memref<64x512xf32, #tpu.memory_space<vmem>>, vector<8x512xf32>
    %cst_42 = arith.constant dense<0.000000e+00> : vector<8x512xf32>
    %148 = tpu.matmul %141, %10, %cst_42 {dimension_numbers = #tpu.dot_dimension_numbers<[1], [0], [0], [1], [0, 0, 1, 1], [], []>} : vector<8x128xf32>, vector<128x512xf32>, vector<8x512xf32> -> vector<8x512xf32>
    %149 = arith.addf %147, %148 : vector<8x512xf32>
    %150 = vector.extract_strided_slice %149 {offsets = [0, 0], sizes = [8, 128], strides = [1, 1]} : vector<8x512xf32> to vector<8x128xf32>
    %151 = arith.negf %150 : vector<8x128xf32>
    %152 = math.exp %151 : vector<8x128xf32>
    %cst_43 = arith.constant 1.000000e+00 : f32
    %153 = vector.broadcast %cst_43 : f32 to vector<8x128xf32>
    %154 = arith.addf %153, %152 : vector<8x128xf32>
    %155 = arith.divf %153, %154 : vector<8x128xf32>
    %156 = vector.extract_strided_slice %149 {offsets = [0, 128], sizes = [8, 128], strides = [1, 1]} : vector<8x512xf32> to vector<8x128xf32>
    %157 = arith.negf %156 : vector<8x128xf32>
    %158 = math.exp %157 : vector<8x128xf32>
    %cst_44 = arith.constant 1.000000e+00 : f32
    %159 = vector.broadcast %cst_44 : f32 to vector<8x128xf32>
    %160 = arith.addf %159, %158 : vector<8x128xf32>
    %161 = arith.divf %159, %160 : vector<8x128xf32>
    %162 = vector.extract_strided_slice %149 {offsets = [0, 256], sizes = [8, 128], strides = [1, 1]} : vector<8x512xf32> to vector<8x128xf32>
    %163 = math.tanh %162 : vector<8x128xf32>
    %164 = vector.extract_strided_slice %149 {offsets = [0, 384], sizes = [8, 128], strides = [1, 1]} : vector<8x512xf32> to vector<8x128xf32>
    %165 = arith.negf %164 : vector<8x128xf32>
    %166 = math.exp %165 : vector<8x128xf32>
    %cst_45 = arith.constant 1.000000e+00 : f32
    %167 = vector.broadcast %cst_45 : f32 to vector<8x128xf32>
    %168 = arith.addf %167, %166 : vector<8x128xf32>
    %169 = arith.divf %167, %168 : vector<8x128xf32>
    %170 = arith.mulf %161, %139 : vector<8x128xf32>
    %171 = arith.mulf %155, %163 : vector<8x128xf32>
    %172 = arith.addf %170, %171 : vector<8x128xf32>
    %173 = math.tanh %172 : vector<8x128xf32>
    %174 = arith.mulf %169, %173 : vector<8x128xf32>
    %175 = arith.index_cast %145 : i32 to index
    %c0_46 = arith.constant 0 : index
    %176 = vector.load %arg5[%175, %c0_46] : memref<64x128xf32, #tpu.memory_space<vmem>>, vector<8x128xf32>
    tpu.vector_store %arg5[%175, %c0_46], %174 {strides = array<i32>} : memref<64x128xf32, #tpu.memory_space<vmem>>, vector<8x128xf32>,
    %c5_i32 = arith.constant 5 : i32
    %c8_i32_47 = arith.constant 8 : i32
    %177 = arith.muli %c5_i32, %c8_i32_47 : i32
    %178 = tpu.assume_multiple %177, 8 : i32
    %179 = arith.index_cast %178 : i32 to index
    %c0_48 = arith.constant 0 : index
    %180 = vector.load %arg6[%179, %c0_48] : memref<64x512xf32, #tpu.memory_space<vmem>>, vector<8x512xf32>
    %cst_49 = arith.constant dense<0.000000e+00> : vector<8x512xf32>
    %181 = tpu.matmul %174, %10, %cst_49 {dimension_numbers = #tpu.dot_dimension_numbers<[1], [0], [0], [1], [0, 0, 1, 1], [], []>} : vector<8x128xf32>, vector<128x512xf32>, vector<8x512xf32> -> vector<8x512xf32>
    %182 = arith.addf %180, %181 : vector<8x512xf32>
    %183 = vector.extract_strided_slice %182 {offsets = [0, 0], sizes = [8, 128], strides = [1, 1]} : vector<8x512xf32> to vector<8x128xf32>
    %184 = arith.negf %183 : vector<8x128xf32>
    %185 = math.exp %184 : vector<8x128xf32>
    %cst_50 = arith.constant 1.000000e+00 : f32
    %186 = vector.broadcast %cst_50 : f32 to vector<8x128xf32>
    %187 = arith.addf %186, %185 : vector<8x128xf32>
    %188 = arith.divf %186, %187 : vector<8x128xf32>
    %189 = vector.extract_strided_slice %182 {offsets = [0, 128], sizes = [8, 128], strides = [1, 1]} : vector<8x512xf32> to vector<8x128xf32>
    %190 = arith.negf %189 : vector<8x128xf32>
    %191 = math.exp %190 : vector<8x128xf32>
    %cst_51 = arith.constant 1.000000e+00 : f32
    %192 = vector.broadcast %cst_51 : f32 to vector<8x128xf32>
    %193 = arith.addf %192, %191 : vector<8x128xf32>
    %194 = arith.divf %192, %193 : vector<8x128xf32>
    %195 = vector.extract_strided_slice %182 {offsets = [0, 256], sizes = [8, 128], strides = [1, 1]} : vector<8x512xf32> to vector<8x128xf32>
    %196 = math.tanh %195 : vector<8x128xf32>
    %197 = vector.extract_strided_slice %182 {offsets = [0, 384], sizes = [8, 128], strides = [1, 1]} : vector<8x512xf32> to vector<8x128xf32>
    %198 = arith.negf %197 : vector<8x128xf32>
    %199 = math.exp %198 : vector<8x128xf32>
    %cst_52 = arith.constant 1.000000e+00 : f32
    %200 = vector.broadcast %cst_52 : f32 to vector<8x128xf32>
    %201 = arith.addf %200, %199 : vector<8x128xf32>
    %202 = arith.divf %200, %201 : vector<8x128xf32>
    %203 = arith.mulf %194, %172 : vector<8x128xf32>
    %204 = arith.mulf %188, %196 : vector<8x128xf32>
    %205 = arith.addf %203, %204 : vector<8x128xf32>
    %206 = math.tanh %205 : vector<8x128xf32>
    %207 = arith.mulf %202, %206 : vector<8x128xf32>
    %208 = arith.index_cast %178 : i32 to index
    %c0_53 = arith.constant 0 : index
    %209 = vector.load %arg5[%208, %c0_53] : memref<64x128xf32, #tpu.memory_space<vmem>>, vector<8x128xf32>
    tpu.vector_store %arg5[%208, %c0_53], %207 {strides = array<i32>} : memref<64x128xf32, #tpu.memory_space<vmem>>, vector<8x128xf32>,
    %c6_i32 = arith.constant 6 : i32
    %c8_i32_54 = arith.constant 8 : i32
    %210 = arith.muli %c6_i32, %c8_i32_54 : i32
    %211 = tpu.assume_multiple %210, 8 : i32
    %212 = arith.index_cast %211 : i32 to index
    %c0_55 = arith.constant 0 : index
    %213 = vector.load %arg6[%212, %c0_55] : memref<64x512xf32, #tpu.memory_space<vmem>>, vector<8x512xf32>
    %cst_56 = arith.constant dense<0.000000e+00> : vector<8x512xf32>
    %214 = tpu.matmul %207, %10, %cst_56 {dimension_numbers = #tpu.dot_dimension_numbers<[1], [0], [0], [1], [0, 0, 1, 1], [], []>} : vector<8x128xf32>, vector<128x512xf32>, vector<8x512xf32> -> vector<8x512xf32>
    %215 = arith.addf %213, %214 : vector<8x512xf32>
    %216 = vector.extract_strided_slice %215 {offsets = [0, 0], sizes = [8, 128], strides = [1, 1]} : vector<8x512xf32> to vector<8x128xf32>
    %217 = arith.negf %216 : vector<8x128xf32>
    %218 = math.exp %217 : vector<8x128xf32>
    %cst_57 = arith.constant 1.000000e+00 : f32
    %219 = vector.broadcast %cst_57 : f32 to vector<8x128xf32>
    %220 = arith.addf %219, %218 : vector<8x128xf32>
    %221 = arith.divf %219, %220 : vector<8x128xf32>
    %222 = vector.extract_strided_slice %215 {offsets = [0, 128], sizes = [8, 128], strides = [1, 1]} : vector<8x512xf32> to vector<8x128xf32>
    %223 = arith.negf %222 : vector<8x128xf32>
    %224 = math.exp %223 : vector<8x128xf32>
    %cst_58 = arith.constant 1.000000e+00 : f32
    %225 = vector.broadcast %cst_58 : f32 to vector<8x128xf32>
    %226 = arith.addf %225, %224 : vector<8x128xf32>
    %227 = arith.divf %225, %226 : vector<8x128xf32>
    %228 = vector.extract_strided_slice %215 {offsets = [0, 256], sizes = [8, 128], strides = [1, 1]} : vector<8x512xf32> to vector<8x128xf32>
    %229 = math.tanh %228 : vector<8x128xf32>
    %230 = vector.extract_strided_slice %215 {offsets = [0, 384], sizes = [8, 128], strides = [1, 1]} : vector<8x512xf32> to vector<8x128xf32>
    %231 = arith.negf %230 : vector<8x128xf32>
    %232 = math.exp %231 : vector<8x128xf32>
    %cst_59 = arith.constant 1.000000e+00 : f32
    %233 = vector.broadcast %cst_59 : f32 to vector<8x128xf32>
    %234 = arith.addf %233, %232 : vector<8x128xf32>
    %235 = arith.divf %233, %234 : vector<8x128xf32>
    %236 = arith.mulf %227, %205 : vector<8x128xf32>
    %237 = arith.mulf %221, %229 : vector<8x128xf32>
    %238 = arith.addf %236, %237 : vector<8x128xf32>
    %239 = math.tanh %238 : vector<8x128xf32>
    %240 = arith.mulf %235, %239 : vector<8x128xf32>
    %241 = arith.index_cast %211 : i32 to index
    %c0_60 = arith.constant 0 : index
    %242 = vector.load %arg5[%241, %c0_60] : memref<64x128xf32, #tpu.memory_space<vmem>>, vector<8x128xf32>
    tpu.vector_store %arg5[%241, %c0_60], %240 {strides = array<i32>} : memref<64x128xf32, #tpu.memory_space<vmem>>, vector<8x128xf32>,
    %c7_i32 = arith.constant 7 : i32
    %c8_i32_61 = arith.constant 8 : i32
    %243 = arith.muli %c7_i32, %c8_i32_61 : i32
    %244 = tpu.assume_multiple %243, 8 : i32
    %245 = arith.index_cast %244 : i32 to index
    %c0_62 = arith.constant 0 : index
    %246 = vector.load %arg6[%245, %c0_62] : memref<64x512xf32, #tpu.memory_space<vmem>>, vector<8x512xf32>
    %cst_63 = arith.constant dense<0.000000e+00> : vector<8x512xf32>
    %247 = tpu.matmul %240, %10, %cst_63 {dimension_numbers = #tpu.dot_dimension_numbers<[1], [0], [0], [1], [0, 0, 1, 1], [], []>} : vector<8x128xf32>, vector<128x512xf32>, vector<8x512xf32> -> vector<8x512xf32>
    %248 = arith.addf %246, %247 : vector<8x512xf32>
    %249 = vector.extract_strided_slice %248 {offsets = [0, 0], sizes = [8, 128], strides = [1, 1]} : vector<8x512xf32> to vector<8x128xf32>
    %250 = arith.negf %249 : vector<8x128xf32>
    %251 = math.exp %250 : vector<8x128xf32>
    %cst_64 = arith.constant 1.000000e+00 : f32
    %252 = vector.broadcast %cst_64 : f32 to vector<8x128xf32>
    %253 = arith.addf %252, %251 : vector<8x128xf32>
    %254 = arith.divf %252, %253 : vector<8x128xf32>
    %255 = vector.extract_strided_slice %248 {offsets = [0, 128], sizes = [8, 128], strides = [1, 1]} : vector<8x512xf32> to vector<8x128xf32>
    %256 = arith.negf %255 : vector<8x128xf32>
    %257 = math.exp %256 : vector<8x128xf32>
    %cst_65 = arith.constant 1.000000e+00 : f32
    %258 = vector.broadcast %cst_65 : f32 to vector<8x128xf32>
    %259 = arith.addf %258, %257 : vector<8x128xf32>
    %260 = arith.divf %258, %259 : vector<8x128xf32>
    %261 = vector.extract_strided_slice %248 {offsets = [0, 256], sizes = [8, 128], strides = [1, 1]} : vector<8x512xf32> to vector<8x128xf32>
    %262 = math.tanh %261 : vector<8x128xf32>
    %263 = vector.extract_strided_slice %248 {offsets = [0, 384], sizes = [8, 128], strides = [1, 1]} : vector<8x512xf32> to vector<8x128xf32>
    %264 = arith.negf %263 : vector<8x128xf32>
    %265 = math.exp %264 : vector<8x128xf32>
    %cst_66 = arith.constant 1.000000e+00 : f32
    %266 = vector.broadcast %cst_66 : f32 to vector<8x128xf32>
    %267 = arith.addf %266, %265 : vector<8x128xf32>
    %268 = arith.divf %266, %267 : vector<8x128xf32>
    %269 = arith.mulf %260, %238 : vector<8x128xf32>
    %270 = arith.mulf %254, %262 : vector<8x128xf32>
    %271 = arith.addf %269, %270 : vector<8x128xf32>
    %272 = math.tanh %271 : vector<8x128xf32>
    %273 = arith.mulf %268, %272 : vector<8x128xf32>
    %274 = arith.index_cast %244 : i32 to index
    %c0_67 = arith.constant 0 : index
    %275 = vector.load %arg5[%274, %c0_67] : memref<64x128xf32, #tpu.memory_space<vmem>>, vector<8x128xf32>
    tpu.vector_store %arg5[%274, %c0_67], %273 {strides = array<i32>} : memref<64x128xf32, #tpu.memory_space<vmem>>, vector<8x128xf32>,
    %c8_i32_68 = arith.constant 8 : i32
    %c0_69 = arith.constant 0 : index
    %c0_70 = arith.constant 0 : index
    %276 = vector.load %arg5[%c0_69, %c0_70] : memref<64x128xf32, #tpu.memory_space<vmem>>, vector<64x128xf32>
    %c1 = arith.constant 1 : index
    %c0_71 = arith.constant 0 : index
    %c0_72 = arith.constant 0 : index
    %277 = vector.load %arg2[%c1, %c0_71, %c0_72] : memref<2x128x512xf32, #tpu.memory_space<vmem>>, vector<1x128x512xf32>
    %278 = vector.shape_cast %277 : vector<1x128x512xf32> to vector<128x512xf32>
    %cst_73 = arith.constant dense<0.000000e+00> : vector<64x512xf32>
    %279 = tpu.matmul %276, %278, %cst_73 {dimension_numbers = #tpu.dot_dimension_numbers<[1], [0], [0], [1], [0, 0, 1, 1], [], []>} : vector<64x128xf32>, vector<128x512xf32>, vector<64x512xf32> -> vector<64x512xf32>
    %c1_74 = arith.constant 1 : index
    %c0_75 = arith.constant 0 : index
    %c0_76 = arith.constant 0 : index
    %280 = vector.load %arg4[%c1_74, %c0_75, %c0_76] : memref<2x1x512xf32, #tpu.memory_space<vmem>>, vector<1x1x512xf32>
    %281 = vector.shape_cast %280 : vector<1x1x512xf32> to vector<1x512xf32>
    %282 = vector.broadcast %281 : vector<1x512xf32> to vector<64x512xf32>
    %283 = arith.addf %279, %282 : vector<64x512xf32>
    %c0_77 = arith.constant 0 : index
    %c0_78 = arith.constant 0 : index
    %284 = vector.load %arg6[%c0_77, %c0_78] : memref<64x512xf32, #tpu.memory_space<vmem>>, vector<64x512xf32>
    tpu.vector_store %arg6[%c0_77, %c0_78], %283 {strides = array<i32>} : memref<64x512xf32, #tpu.memory_space<vmem>>, vector<64x512xf32>,
    %c1_79 = arith.constant 1 : index
    %c0_80 = arith.constant 0 : index
    %c0_81 = arith.constant 0 : index
    %285 = vector.load %arg3[%c1_79, %c0_80, %c0_81] : memref<2x128x512xf32, #tpu.memory_space<vmem>>, vector<1x128x512xf32>
    %286 = vector.shape_cast %285 : vector<1x128x512xf32> to vector<128x512xf32>
    %cst_82 = arith.constant 0.000000e+00 : f32
    %287 = vector.broadcast %cst_82 : f32 to vector<8x128xf32>
    %c0_i32_83 = arith.constant 0 : i32
    %c8_i32_84 = arith.constant 8 : i32
    %288 = arith.muli %c0_i32_83, %c8_i32_84 : i32
    %289 = tpu.assume_multiple %288, 8 : i32
    %290 = arith.index_cast %289 : i32 to index
    %c0_85 = arith.constant 0 : index
    %291 = vector.load %arg6[%290, %c0_85] : memref<64x512xf32, #tpu.memory_space<vmem>>, vector<8x512xf32>
    %cst_86 = arith.constant dense<0.000000e+00> : vector<8x512xf32>
    %292 = tpu.matmul %287, %286, %cst_86 {dimension_numbers = #tpu.dot_dimension_numbers<[1], [0], [0], [1], [0, 0, 1, 1], [], []>} : vector<8x128xf32>, vector<128x512xf32>, vector<8x512xf32> -> vector<8x512xf32>
    %293 = arith.addf %291, %292 : vector<8x512xf32>
    %294 = vector.extract_strided_slice %293 {offsets = [0, 0], sizes = [8, 128], strides = [1, 1]} : vector<8x512xf32> to vector<8x128xf32>
    %295 = arith.negf %294 : vector<8x128xf32>
    %296 = math.exp %295 : vector<8x128xf32>
    %cst_87 = arith.constant 1.000000e+00 : f32
    %297 = vector.broadcast %cst_87 : f32 to vector<8x128xf32>
    %298 = arith.addf %297, %296 : vector<8x128xf32>
    %299 = arith.divf %297, %298 : vector<8x128xf32>
    %300 = vector.extract_strided_slice %293 {offsets = [0, 128], sizes = [8, 128], strides = [1, 1]} : vector<8x512xf32> to vector<8x128xf32>
    %301 = arith.negf %300 : vector<8x128xf32>
    %302 = math.exp %301 : vector<8x128xf32>
    %cst_88 = arith.constant 1.000000e+00 : f32
    %303 = vector.broadcast %cst_88 : f32 to vector<8x128xf32>
    %304 = arith.addf %303, %302 : vector<8x128xf32>
    %305 = arith.divf %303, %304 : vector<8x128xf32>
    %306 = vector.extract_strided_slice %293 {offsets = [0, 256], sizes = [8, 128], strides = [1, 1]} : vector<8x512xf32> to vector<8x128xf32>
    %307 = math.tanh %306 : vector<8x128xf32>
    %308 = vector.extract_strided_slice %293 {offsets = [0, 384], sizes = [8, 128], strides = [1, 1]} : vector<8x512xf32> to vector<8x128xf32>
    %309 = arith.negf %308 : vector<8x128xf32>
    %310 = math.exp %309 : vector<8x128xf32>
    %cst_89 = arith.constant 1.000000e+00 : f32
    %311 = vector.broadcast %cst_89 : f32 to vector<8x128xf32>
    %312 = arith.addf %311, %310 : vector<8x128xf32>
    %313 = arith.divf %311, %312 : vector<8x128xf32>
    %314 = arith.mulf %305, %287 : vector<8x128xf32>
    %315 = arith.mulf %299, %307 : vector<8x128xf32>
    %316 = arith.addf %314, %315 : vector<8x128xf32>
    %317 = math.tanh %316 : vector<8x128xf32>
    %318 = arith.mulf %313, %317 : vector<8x128xf32>
    %319 = arith.index_cast %289 : i32 to index
    %c0_90 = arith.constant 0 : index
    %320 = vector.load %arg5[%319, %c0_90] : memref<64x128xf32, #tpu.memory_space<vmem>>, vector<8x128xf32>
    tpu.vector_store %arg5[%319, %c0_90], %318 {strides = array<i32>} : memref<64x128xf32, #tpu.memory_space<vmem>>, vector<8x128xf32>,
    %c1_i32_91 = arith.constant 1 : i32
    %c8_i32_92 = arith.constant 8 : i32
    %321 = arith.muli %c1_i32_91, %c8_i32_92 : i32
    %322 = tpu.assume_multiple %321, 8 : i32
    %323 = arith.index_cast %322 : i32 to index
    %c0_93 = arith.constant 0 : index
    %324 = vector.load %arg6[%323, %c0_93] : memref<64x512xf32, #tpu.memory_space<vmem>>, vector<8x512xf32>
    %cst_94 = arith.constant dense<0.000000e+00> : vector<8x512xf32>
    %325 = tpu.matmul %318, %286, %cst_94 {dimension_numbers = #tpu.dot_dimension_numbers<[1], [0], [0], [1], [0, 0, 1, 1], [], []>} : vector<8x128xf32>, vector<128x512xf32>, vector<8x512xf32> -> vector<8x512xf32>
    %326 = arith.addf %324, %325 : vector<8x512xf32>
    %327 = vector.extract_strided_slice %326 {offsets = [0, 0], sizes = [8, 128], strides = [1, 1]} : vector<8x512xf32> to vector<8x128xf32>
    %328 = arith.negf %327 : vector<8x128xf32>
    %329 = math.exp %328 : vector<8x128xf32>
    %cst_95 = arith.constant 1.000000e+00 : f32
    %330 = vector.broadcast %cst_95 : f32 to vector<8x128xf32>
    %331 = arith.addf %330, %329 : vector<8x128xf32>
    %332 = arith.divf %330, %331 : vector<8x128xf32>
    %333 = vector.extract_strided_slice %326 {offsets = [0, 128], sizes = [8, 128], strides = [1, 1]} : vector<8x512xf32> to vector<8x128xf32>
    %334 = arith.negf %333 : vector<8x128xf32>
    %335 = math.exp %334 : vector<8x128xf32>
    %cst_96 = arith.constant 1.000000e+00 : f32
    %336 = vector.broadcast %cst_96 : f32 to vector<8x128xf32>
    %337 = arith.addf %336, %335 : vector<8x128xf32>
    %338 = arith.divf %336, %337 : vector<8x128xf32>
    %339 = vector.extract_strided_slice %326 {offsets = [0, 256], sizes = [8, 128], strides = [1, 1]} : vector<8x512xf32> to vector<8x128xf32>
    %340 = math.tanh %339 : vector<8x128xf32>
    %341 = vector.extract_strided_slice %326 {offsets = [0, 384], sizes = [8, 128], strides = [1, 1]} : vector<8x512xf32> to vector<8x128xf32>
    %342 = arith.negf %341 : vector<8x128xf32>
    %343 = math.exp %342 : vector<8x128xf32>
    %cst_97 = arith.constant 1.000000e+00 : f32
    %344 = vector.broadcast %cst_97 : f32 to vector<8x128xf32>
    %345 = arith.addf %344, %343 : vector<8x128xf32>
    %346 = arith.divf %344, %345 : vector<8x128xf32>
    %347 = arith.mulf %338, %316 : vector<8x128xf32>
    %348 = arith.mulf %332, %340 : vector<8x128xf32>
    %349 = arith.addf %347, %348 : vector<8x128xf32>
    %350 = math.tanh %349 : vector<8x128xf32>
    %351 = arith.mulf %346, %350 : vector<8x128xf32>
    %352 = arith.index_cast %322 : i32 to index
    %c0_98 = arith.constant 0 : index
    %353 = vector.load %arg5[%352, %c0_98] : memref<64x128xf32, #tpu.memory_space<vmem>>, vector<8x128xf32>
    tpu.vector_store %arg5[%352, %c0_98], %351 {strides = array<i32>} : memref<64x128xf32, #tpu.memory_space<vmem>>, vector<8x128xf32>,
    %c2_i32_99 = arith.constant 2 : i32
    %c8_i32_100 = arith.constant 8 : i32
    %354 = arith.muli %c2_i32_99, %c8_i32_100 : i32
    %355 = tpu.assume_multiple %354, 8 : i32
    %356 = arith.index_cast %355 : i32 to index
    %c0_101 = arith.constant 0 : index
    %357 = vector.load %arg6[%356, %c0_101] : memref<64x512xf32, #tpu.memory_space<vmem>>, vector<8x512xf32>
    %cst_102 = arith.constant dense<0.000000e+00> : vector<8x512xf32>
    %358 = tpu.matmul %351, %286, %cst_102 {dimension_numbers = #tpu.dot_dimension_numbers<[1], [0], [0], [1], [0, 0, 1, 1], [], []>} : vector<8x128xf32>, vector<128x512xf32>, vector<8x512xf32> -> vector<8x512xf32>
    %359 = arith.addf %357, %358 : vector<8x512xf32>
    %360 = vector.extract_strided_slice %359 {offsets = [0, 0], sizes = [8, 128], strides = [1, 1]} : vector<8x512xf32> to vector<8x128xf32>
    %361 = arith.negf %360 : vector<8x128xf32>
    %362 = math.exp %361 : vector<8x128xf32>
    %cst_103 = arith.constant 1.000000e+00 : f32
    %363 = vector.broadcast %cst_103 : f32 to vector<8x128xf32>
    %364 = arith.addf %363, %362 : vector<8x128xf32>
    %365 = arith.divf %363, %364 : vector<8x128xf32>
    %366 = vector.extract_strided_slice %359 {offsets = [0, 128], sizes = [8, 128], strides = [1, 1]} : vector<8x512xf32> to vector<8x128xf32>
    %367 = arith.negf %366 : vector<8x128xf32>
    %368 = math.exp %367 : vector<8x128xf32>
    %cst_104 = arith.constant 1.000000e+00 : f32
    %369 = vector.broadcast %cst_104 : f32 to vector<8x128xf32>
    %370 = arith.addf %369, %368 : vector<8x128xf32>
    %371 = arith.divf %369, %370 : vector<8x128xf32>
    %372 = vector.extract_strided_slice %359 {offsets = [0, 256], sizes = [8, 128], strides = [1, 1]} : vector<8x512xf32> to vector<8x128xf32>
    %373 = math.tanh %372 : vector<8x128xf32>
    %374 = vector.extract_strided_slice %359 {offsets = [0, 384], sizes = [8, 128], strides = [1, 1]} : vector<8x512xf32> to vector<8x128xf32>
    %375 = arith.negf %374 : vector<8x128xf32>
    %376 = math.exp %375 : vector<8x128xf32>
    %cst_105 = arith.constant 1.000000e+00 : f32
    %377 = vector.broadcast %cst_105 : f32 to vector<8x128xf32>
    %378 = arith.addf %377, %376 : vector<8x128xf32>
    %379 = arith.divf %377, %378 : vector<8x128xf32>
    %380 = arith.mulf %371, %349 : vector<8x128xf32>
    %381 = arith.mulf %365, %373 : vector<8x128xf32>
    %382 = arith.addf %380, %381 : vector<8x128xf32>
    %383 = math.tanh %382 : vector<8x128xf32>
    %384 = arith.mulf %379, %383 : vector<8x128xf32>
    %385 = arith.index_cast %355 : i32 to index
    %c0_106 = arith.constant 0 : index
    %386 = vector.load %arg5[%385, %c0_106] : memref<64x128xf32, #tpu.memory_space<vmem>>, vector<8x128xf32>
    tpu.vector_store %arg5[%385, %c0_106], %384 {strides = array<i32>} : memref<64x128xf32, #tpu.memory_space<vmem>>, vector<8x128xf32>,
    %c3_i32_107 = arith.constant 3 : i32
    %c8_i32_108 = arith.constant 8 : i32
    %387 = arith.muli %c3_i32_107, %c8_i32_108 : i32
    %388 = tpu.assume_multiple %387, 8 : i32
    %389 = arith.index_cast %388 : i32 to index
    %c0_109 = arith.constant 0 : index
    %390 = vector.load %arg6[%389, %c0_109] : memref<64x512xf32, #tpu.memory_space<vmem>>, vector<8x512xf32>
    %cst_110 = arith.constant dense<0.000000e+00> : vector<8x512xf32>
    %391 = tpu.matmul %384, %286, %cst_110 {dimension_numbers = #tpu.dot_dimension_numbers<[1], [0], [0], [1], [0, 0, 1, 1], [], []>} : vector<8x128xf32>, vector<128x512xf32>, vector<8x512xf32> -> vector<8x512xf32>
    %392 = arith.addf %390, %391 : vector<8x512xf32>
    %393 = vector.extract_strided_slice %392 {offsets = [0, 0], sizes = [8, 128], strides = [1, 1]} : vector<8x512xf32> to vector<8x128xf32>
    %394 = arith.negf %393 : vector<8x128xf32>
    %395 = math.exp %394 : vector<8x128xf32>
    %cst_111 = arith.constant 1.000000e+00 : f32
    %396 = vector.broadcast %cst_111 : f32 to vector<8x128xf32>
    %397 = arith.addf %396, %395 : vector<8x128xf32>
    %398 = arith.divf %396, %397 : vector<8x128xf32>
    %399 = vector.extract_strided_slice %392 {offsets = [0, 128], sizes = [8, 128], strides = [1, 1]} : vector<8x512xf32> to vector<8x128xf32>
    %400 = arith.negf %399 : vector<8x128xf32>
    %401 = math.exp %400 : vector<8x128xf32>
    %cst_112 = arith.constant 1.000000e+00 : f32
    %402 = vector.broadcast %cst_112 : f32 to vector<8x128xf32>
    %403 = arith.addf %402, %401 : vector<8x128xf32>
    %404 = arith.divf %402, %403 : vector<8x128xf32>
    %405 = vector.extract_strided_slice %392 {offsets = [0, 256], sizes = [8, 128], strides = [1, 1]} : vector<8x512xf32> to vector<8x128xf32>
    %406 = math.tanh %405 : vector<8x128xf32>
    %407 = vector.extract_strided_slice %392 {offsets = [0, 384], sizes = [8, 128], strides = [1, 1]} : vector<8x512xf32> to vector<8x128xf32>
    %408 = arith.negf %407 : vector<8x128xf32>
    %409 = math.exp %408 : vector<8x128xf32>
    %cst_113 = arith.constant 1.000000e+00 : f32
    %410 = vector.broadcast %cst_113 : f32 to vector<8x128xf32>
    %411 = arith.addf %410, %409 : vector<8x128xf32>
    %412 = arith.divf %410, %411 : vector<8x128xf32>
    %413 = arith.mulf %404, %382 : vector<8x128xf32>
    %414 = arith.mulf %398, %406 : vector<8x128xf32>
    %415 = arith.addf %413, %414 : vector<8x128xf32>
    %416 = math.tanh %415 : vector<8x128xf32>
    %417 = arith.mulf %412, %416 : vector<8x128xf32>
    %418 = arith.index_cast %388 : i32 to index
    %c0_114 = arith.constant 0 : index
    %419 = vector.load %arg5[%418, %c0_114] : memref<64x128xf32, #tpu.memory_space<vmem>>, vector<8x128xf32>
    tpu.vector_store %arg5[%418, %c0_114], %417 {strides = array<i32>} : memref<64x128xf32, #tpu.memory_space<vmem>>, vector<8x128xf32>,
    %c4_i32_115 = arith.constant 4 : i32
    %c8_i32_116 = arith.constant 8 : i32
    %420 = arith.muli %c4_i32_115, %c8_i32_116 : i32
    %421 = tpu.assume_multiple %420, 8 : i32
    %422 = arith.index_cast %421 : i32 to index
    %c0_117 = arith.constant 0 : index
    %423 = vector.load %arg6[%422, %c0_117] : memref<64x512xf32, #tpu.memory_space<vmem>>, vector<8x512xf32>
    %cst_118 = arith.constant dense<0.000000e+00> : vector<8x512xf32>
    %424 = tpu.matmul %417, %286, %cst_118 {dimension_numbers = #tpu.dot_dimension_numbers<[1], [0], [0], [1], [0, 0, 1, 1], [], []>} : vector<8x128xf32>, vector<128x512xf32>, vector<8x512xf32> -> vector<8x512xf32>
    %425 = arith.addf %423, %424 : vector<8x512xf32>
    %426 = vector.extract_strided_slice %425 {offsets = [0, 0], sizes = [8, 128], strides = [1, 1]} : vector<8x512xf32> to vector<8x128xf32>
    %427 = arith.negf %426 : vector<8x128xf32>
    %428 = math.exp %427 : vector<8x128xf32>
    %cst_119 = arith.constant 1.000000e+00 : f32
    %429 = vector.broadcast %cst_119 : f32 to vector<8x128xf32>
    %430 = arith.addf %429, %428 : vector<8x128xf32>
    %431 = arith.divf %429, %430 : vector<8x128xf32>
    %432 = vector.extract_strided_slice %425 {offsets = [0, 128], sizes = [8, 128], strides = [1, 1]} : vector<8x512xf32> to vector<8x128xf32>
    %433 = arith.negf %432 : vector<8x128xf32>
    %434 = math.exp %433 : vector<8x128xf32>
    %cst_120 = arith.constant 1.000000e+00 : f32
    %435 = vector.broadcast %cst_120 : f32 to vector<8x128xf32>
    %436 = arith.addf %435, %434 : vector<8x128xf32>
    %437 = arith.divf %435, %436 : vector<8x128xf32>
    %438 = vector.extract_strided_slice %425 {offsets = [0, 256], sizes = [8, 128], strides = [1, 1]} : vector<8x512xf32> to vector<8x128xf32>
    %439 = math.tanh %438 : vector<8x128xf32>
    %440 = vector.extract_strided_slice %425 {offsets = [0, 384], sizes = [8, 128], strides = [1, 1]} : vector<8x512xf32> to vector<8x128xf32>
    %441 = arith.negf %440 : vector<8x128xf32>
    %442 = math.exp %441 : vector<8x128xf32>
    %cst_121 = arith.constant 1.000000e+00 : f32
    %443 = vector.broadcast %cst_121 : f32 to vector<8x128xf32>
    %444 = arith.addf %443, %442 : vector<8x128xf32>
    %445 = arith.divf %443, %444 : vector<8x128xf32>
    %446 = arith.mulf %437, %415 : vector<8x128xf32>
    %447 = arith.mulf %431, %439 : vector<8x128xf32>
    %448 = arith.addf %446, %447 : vector<8x128xf32>
    %449 = math.tanh %448 : vector<8x128xf32>
    %450 = arith.mulf %445, %449 : vector<8x128xf32>
    %451 = arith.index_cast %421 : i32 to index
    %c0_122 = arith.constant 0 : index
    %452 = vector.load %arg5[%451, %c0_122] : memref<64x128xf32, #tpu.memory_space<vmem>>, vector<8x128xf32>
    tpu.vector_store %arg5[%451, %c0_122], %450 {strides = array<i32>} : memref<64x128xf32, #tpu.memory_space<vmem>>, vector<8x128xf32>,
    %c5_i32_123 = arith.constant 5 : i32
    %c8_i32_124 = arith.constant 8 : i32
    %453 = arith.muli %c5_i32_123, %c8_i32_124 : i32
    %454 = tpu.assume_multiple %453, 8 : i32
    %455 = arith.index_cast %454 : i32 to index
    %c0_125 = arith.constant 0 : index
    %456 = vector.load %arg6[%455, %c0_125] : memref<64x512xf32, #tpu.memory_space<vmem>>, vector<8x512xf32>
    %cst_126 = arith.constant dense<0.000000e+00> : vector<8x512xf32>
    %457 = tpu.matmul %450, %286, %cst_126 {dimension_numbers = #tpu.dot_dimension_numbers<[1], [0], [0], [1], [0, 0, 1, 1], [], []>} : vector<8x128xf32>, vector<128x512xf32>, vector<8x512xf32> -> vector<8x512xf32>
    %458 = arith.addf %456, %457 : vector<8x512xf32>
    %459 = vector.extract_strided_slice %458 {offsets = [0, 0], sizes = [8, 128], strides = [1, 1]} : vector<8x512xf32> to vector<8x128xf32>
    %460 = arith.negf %459 : vector<8x128xf32>
    %461 = math.exp %460 : vector<8x128xf32>
    %cst_127 = arith.constant 1.000000e+00 : f32
    %462 = vector.broadcast %cst_127 : f32 to vector<8x128xf32>
    %463 = arith.addf %462, %461 : vector<8x128xf32>
    %464 = arith.divf %462, %463 : vector<8x128xf32>
    %465 = vector.extract_strided_slice %458 {offsets = [0, 128], sizes = [8, 128], strides = [1, 1]} : vector<8x512xf32> to vector<8x128xf32>
    %466 = arith.negf %465 : vector<8x128xf32>
    %467 = math.exp %466 : vector<8x128xf32>
    %cst_128 = arith.constant 1.000000e+00 : f32
    %468 = vector.broadcast %cst_128 : f32 to vector<8x128xf32>
    %469 = arith.addf %468, %467 : vector<8x128xf32>
    %470 = arith.divf %468, %469 : vector<8x128xf32>
    %471 = vector.extract_strided_slice %458 {offsets = [0, 256], sizes = [8, 128], strides = [1, 1]} : vector<8x512xf32> to vector<8x128xf32>
    %472 = math.tanh %471 : vector<8x128xf32>
    %473 = vector.extract_strided_slice %458 {offsets = [0, 384], sizes = [8, 128], strides = [1, 1]} : vector<8x512xf32> to vector<8x128xf32>
    %474 = arith.negf %473 : vector<8x128xf32>
    %475 = math.exp %474 : vector<8x128xf32>
    %cst_129 = arith.constant 1.000000e+00 : f32
    %476 = vector.broadcast %cst_129 : f32 to vector<8x128xf32>
    %477 = arith.addf %476, %475 : vector<8x128xf32>
    %478 = arith.divf %476, %477 : vector<8x128xf32>
    %479 = arith.mulf %470, %448 : vector<8x128xf32>
    %480 = arith.mulf %464, %472 : vector<8x128xf32>
    %481 = arith.addf %479, %480 : vector<8x128xf32>
    %482 = math.tanh %481 : vector<8x128xf32>
    %483 = arith.mulf %478, %482 : vector<8x128xf32>
    %484 = arith.index_cast %454 : i32 to index
    %c0_130 = arith.constant 0 : index
    %485 = vector.load %arg5[%484, %c0_130] : memref<64x128xf32, #tpu.memory_space<vmem>>, vector<8x128xf32>
    tpu.vector_store %arg5[%484, %c0_130], %483 {strides = array<i32>} : memref<64x128xf32, #tpu.memory_space<vmem>>, vector<8x128xf32>,
    %c6_i32_131 = arith.constant 6 : i32
    %c8_i32_132 = arith.constant 8 : i32
    %486 = arith.muli %c6_i32_131, %c8_i32_132 : i32
    %487 = tpu.assume_multiple %486, 8 : i32
    %488 = arith.index_cast %487 : i32 to index
    %c0_133 = arith.constant 0 : index
    %489 = vector.load %arg6[%488, %c0_133] : memref<64x512xf32, #tpu.memory_space<vmem>>, vector<8x512xf32>
    %cst_134 = arith.constant dense<0.000000e+00> : vector<8x512xf32>
    %490 = tpu.matmul %483, %286, %cst_134 {dimension_numbers = #tpu.dot_dimension_numbers<[1], [0], [0], [1], [0, 0, 1, 1], [], []>} : vector<8x128xf32>, vector<128x512xf32>, vector<8x512xf32> -> vector<8x512xf32>
    %491 = arith.addf %489, %490 : vector<8x512xf32>
    %492 = vector.extract_strided_slice %491 {offsets = [0, 0], sizes = [8, 128], strides = [1, 1]} : vector<8x512xf32> to vector<8x128xf32>
    %493 = arith.negf %492 : vector<8x128xf32>
    %494 = math.exp %493 : vector<8x128xf32>
    %cst_135 = arith.constant 1.000000e+00 : f32
    %495 = vector.broadcast %cst_135 : f32 to vector<8x128xf32>
    %496 = arith.addf %495, %494 : vector<8x128xf32>
    %497 = arith.divf %495, %496 : vector<8x128xf32>
    %498 = vector.extract_strided_slice %491 {offsets = [0, 128], sizes = [8, 128], strides = [1, 1]} : vector<8x512xf32> to vector<8x128xf32>
    %499 = arith.negf %498 : vector<8x128xf32>
    %500 = math.exp %499 : vector<8x128xf32>
    %cst_136 = arith.constant 1.000000e+00 : f32
    %501 = vector.broadcast %cst_136 : f32 to vector<8x128xf32>
    %502 = arith.addf %501, %500 : vector<8x128xf32>
    %503 = arith.divf %501, %502 : vector<8x128xf32>
    %504 = vector.extract_strided_slice %491 {offsets = [0, 256], sizes = [8, 128], strides = [1, 1]} : vector<8x512xf32> to vector<8x128xf32>
    %505 = math.tanh %504 : vector<8x128xf32>
    %506 = vector.extract_strided_slice %491 {offsets = [0, 384], sizes = [8, 128], strides = [1, 1]} : vector<8x512xf32> to vector<8x128xf32>
    %507 = arith.negf %506 : vector<8x128xf32>
    %508 = math.exp %507 : vector<8x128xf32>
    %cst_137 = arith.constant 1.000000e+00 : f32
    %509 = vector.broadcast %cst_137 : f32 to vector<8x128xf32>
    %510 = arith.addf %509, %508 : vector<8x128xf32>
    %511 = arith.divf %509, %510 : vector<8x128xf32>
    %512 = arith.mulf %503, %481 : vector<8x128xf32>
    %513 = arith.mulf %497, %505 : vector<8x128xf32>
    %514 = arith.addf %512, %513 : vector<8x128xf32>
    %515 = math.tanh %514 : vector<8x128xf32>
    %516 = arith.mulf %511, %515 : vector<8x128xf32>
    %517 = arith.index_cast %487 : i32 to index
    %c0_138 = arith.constant 0 : index
    %518 = vector.load %arg5[%517, %c0_138] : memref<64x128xf32, #tpu.memory_space<vmem>>, vector<8x128xf32>
    tpu.vector_store %arg5[%517, %c0_138], %516 {strides = array<i32>} : memref<64x128xf32, #tpu.memory_space<vmem>>, vector<8x128xf32>,
    %c7_i32_139 = arith.constant 7 : i32
    %c8_i32_140 = arith.constant 8 : i32
    %519 = arith.muli %c7_i32_139, %c8_i32_140 : i32
    %520 = tpu.assume_multiple %519, 8 : i32
    %521 = arith.index_cast %520 : i32 to index
    %c0_141 = arith.constant 0 : index
    %522 = vector.load %arg6[%521, %c0_141] : memref<64x512xf32, #tpu.memory_space<vmem>>, vector<8x512xf32>
    %cst_142 = arith.constant dense<0.000000e+00> : vector<8x512xf32>
    %523 = tpu.matmul %516, %286, %cst_142 {dimension_numbers = #tpu.dot_dimension_numbers<[1], [0], [0], [1], [0, 0, 1, 1], [], []>} : vector<8x128xf32>, vector<128x512xf32>, vector<8x512xf32> -> vector<8x512xf32>
    %524 = arith.addf %522, %523 : vector<8x512xf32>
    %525 = vector.extract_strided_slice %524 {offsets = [0, 0], sizes = [8, 128], strides = [1, 1]} : vector<8x512xf32> to vector<8x128xf32>
    %526 = arith.negf %525 : vector<8x128xf32>
    %527 = math.exp %526 : vector<8x128xf32>
    %cst_143 = arith.constant 1.000000e+00 : f32
    %528 = vector.broadcast %cst_143 : f32 to vector<8x128xf32>
    %529 = arith.addf %528, %527 : vector<8x128xf32>
    %530 = arith.divf %528, %529 : vector<8x128xf32>
    %531 = vector.extract_strided_slice %524 {offsets = [0, 128], sizes = [8, 128], strides = [1, 1]} : vector<8x512xf32> to vector<8x128xf32>
    %532 = arith.negf %531 : vector<8x128xf32>
    %533 = math.exp %532 : vector<8x128xf32>
    %cst_144 = arith.constant 1.000000e+00 : f32
    %534 = vector.broadcast %cst_144 : f32 to vector<8x128xf32>
    %535 = arith.addf %534, %533 : vector<8x128xf32>
    %536 = arith.divf %534, %535 : vector<8x128xf32>
    %537 = vector.extract_strided_slice %524 {offsets = [0, 256], sizes = [8, 128], strides = [1, 1]} : vector<8x512xf32> to vector<8x128xf32>
    %538 = math.tanh %537 : vector<8x128xf32>
    %539 = vector.extract_strided_slice %524 {offsets = [0, 384], sizes = [8, 128], strides = [1, 1]} : vector<8x512xf32> to vector<8x128xf32>
    %540 = arith.negf %539 : vector<8x128xf32>
    %541 = math.exp %540 : vector<8x128xf32>
    %cst_145 = arith.constant 1.000000e+00 : f32
    %542 = vector.broadcast %cst_145 : f32 to vector<8x128xf32>
    %543 = arith.addf %542, %541 : vector<8x128xf32>
    %544 = arith.divf %542, %543 : vector<8x128xf32>
    %545 = arith.mulf %536, %514 : vector<8x128xf32>
    %546 = arith.mulf %530, %538 : vector<8x128xf32>
    %547 = arith.addf %545, %546 : vector<8x128xf32>
    %548 = math.tanh %547 : vector<8x128xf32>
    %549 = arith.mulf %544, %548 : vector<8x128xf32>
    %550 = arith.index_cast %520 : i32 to index
    %c0_146 = arith.constant 0 : index
    %551 = vector.load %arg5[%550, %c0_146] : memref<64x128xf32, #tpu.memory_space<vmem>>, vector<8x128xf32>
    tpu.vector_store %arg5[%550, %c0_146], %549 {strides = array<i32>} : memref<64x128xf32, #tpu.memory_space<vmem>>, vector<8x128xf32>,
    %c8_i32_147 = arith.constant 8 : i32
    return
  }
  func.func @transform_0(%arg0: i32) -> (i32, i32) {
    %c0_i32 = arith.constant 0 : i32
    %c0_i32_0 = arith.constant 0 : i32
    %c0_i32_1 = arith.constant 0 : i32
    return %c0_i32, %c0_i32_0 : i32, i32
  }
  func.func @transform_1(%arg0: i32) -> (i32, i32, i32) {
    %c0_i32 = arith.constant 0 : i32
    %c0_i32_0 = arith.constant 0 : i32
    %c0_i32_1 = arith.constant 0 : i32
    %c0_i32_2 = arith.constant 0 : i32
    return %c0_i32, %c0_i32_0, %c0_i32_1 : i32, i32, i32
  }
  func.func @transform_2(%arg0: i32) -> (i32, i32, i32) {
    %c0_i32 = arith.constant 0 : i32
    %c0_i32_0 = arith.constant 0 : i32
    %c0_i32_1 = arith.constant 0 : i32
    %c0_i32_2 = arith.constant 0 : i32
    return %c0_i32, %c0_i32_0, %c0_i32_1 : i32, i32, i32
  }
  func.func @transform_3(%arg0: i32) -> (i32, i32, i32) {
    %c0_i32 = arith.constant 0 : i32
    %c0_i32_0 = arith.constant 0 : i32
    %c0_i32_1 = arith.constant 0 : i32
    %c0_i32_2 = arith.constant 0 : i32
    return %c0_i32, %c0_i32_0, %c0_i32_1 : i32, i32, i32
  }
  func.func @transform_4(%arg0: i32) -> (i32, i32) {
    %c0_i32 = arith.constant 0 : i32
    %c0_i32_0 = arith.constant 0 : i32
    %c0_i32_1 = arith.constant 0 : i32
    return %c0_i32, %c0_i32_0 : i32, i32
  }
}

</mosaic_0001>

<bundles_post_ra>
// kernel: tpu_custom_call.1
= control target key start
LH: loop header
LB: loop body
LE: loop exit
PB: predicated region body
PF: predicated region fallthrough
CT: control target
= control target key end

     0   :  { %9 = vsyncpa [#allocation4], 0  ;;  %s6323_s0 = inlined_call_operand.hbm [shape: f32[64,128], index: 0, kind: input, shape index: {}]   ;;  %s6324_s1 = inlined_call_operand.hbm [shape: f32[2,128,512], index: 1, kind: input, shape index: {}]   ;;  %s6325_s2 = inlined_call_operand.hbm [shape: f32[2,128,512], index: 2, kind: input, shape index: {}]   ;;  %s6326_s3 = inlined_call_operand.hbm [shape: f32[2,1,512], index: 3, kind: input, shape index: {}]   ;;  %s6327_s4 = inlined_call_operand.hbm [shape: f32[64,128], index: 4, kind: output, shape index: {}]  }
   0x1   :  { %10 = vsyncpa [#allocation7], 0 }
   0x2   :  { %11 = vsyncpa [#allocation10], 0 }
   0x3   :  { %12 = vsyncpa [#allocation5], 0  ;;  %s4317_s15 = smov [#allocation6]  }
   0x4   :  { %s30_s16 = sshll.u32 %s4317_s15, 4  ;;  %s31_s16 = int_to_ptr.vmem [resolvable:$true] %s30_s16 }
   0x5   :  { %s4217_s17 = scalar_lea.vmem %s31_s16, 16384  ;;  %p4222_p1 = scmp.lt.s32.totalorder %s31_s16, %s31_s16 }
   0x6   :  { %p4218_p0 = scmp.ne.s32.totalorder %s31_s16, %s4217_s17  ;;  %p4223_p2 = scmp.lt.s32.totalorder %s4217_s17, %s4217_s17 }
   0x8   :  { %p4224_p3 = por %p4223_p2, %p4222_p1 }
   0xa   :  { %p4225_p4 = pnand %p4224_p3, %p4218_p0 }
   0xc   :  { %4228 = shalt.err (!%p4225_p4)
}
   0xd   :  { %s4318_s18 = smov 512   ;;  %s4319_s19 = smov 32  }
   0xe   :  { %36 = dma.hbm_to_vmem [thread:$0]  %s6324_s1, 16384, %s31_s16, [#allocation7], %s4318_s18, %s4318_s18, %s4319_s19  }
   0xf   :  { %s4320_s22 = smov [#allocation3]  }
  0x10   :  { %s18_s23 = sshll.u32 %s4320_s22, 4  ;;  %s19_s23 = int_to_ptr.vmem [resolvable:$true] %s18_s23 }
  0x11   :  { %s4237_s24 = scalar_lea.vmem %s19_s23, 1024  ;;  %p4242_p6 = scmp.lt.s32.totalorder %s19_s23, %s19_s23 }
  0x12   :  { %p4238_p5 = scmp.ne.s32.totalorder %s19_s23, %s4237_s24  ;;  %p4243_p7 = scmp.lt.s32.totalorder %s4237_s24, %s4237_s24 }
  0x14   :  { %p4244_p8 = por %p4243_p7, %p4242_p6 }
  0x16   :  { %p4245_p9 = pnand %p4244_p8, %p4238_p5 }
  0x18   :  { %4248 = shalt.err (!%p4245_p9)
}
  0x19   :  { %s4321_s25 = smov 128   ;;  %s4322_s26 = smov 8  }
  0x1a   :  { %24 = dma.hbm_to_vmem [thread:$0]  %s6323_s0, 1024, %s19_s23, [#allocation4], %s4321_s25, %s4321_s25, %s4322_s26  }
  0x1b   :  { %s4323_s1 = smov [#allocation8]   ;;  %s4324_s30 = smov [#allocation9]  }
  0x1c   :  { %s42_s29 = sshll.u32 %s4323_s1, 4  ;;  %s54_s5 = sshll.u32 %s4324_s30, 4  ;;  %s43_s29 = int_to_ptr.vmem [resolvable:$true] %s42_s29  ;;  %s55_s5 = int_to_ptr.vmem [resolvable:$true] %s54_s5 }
  0x1d   :  { %s4257_s6 = scalar_lea.vmem %s43_s29, 16384  ;;  %p4262_p11 = scmp.lt.s32.totalorder %s43_s29, %s43_s29 }
  0x1e   :  { %p4258_p10 = scmp.ne.s32.totalorder %s43_s29, %s4257_s6  ;;  %p4263_p12 = scmp.lt.s32.totalorder %s4257_s6, %s4257_s6 }
  0x20   :  { %p4264_p13 = por %p4263_p12, %p4262_p11 }
  0x22   :  { %p4265_p0 = pnand %p4264_p13, %p4258_p10 }
  0x24   :  { %4268 = shalt.err (!%p4265_p0)
}
  0x25   :  { %48 = dma.hbm_to_vmem [thread:$0]  %s6325_s2, 16384, %s43_s29, [#allocation7], %s4318_s18, %s4318_s18, %s4319_s19  }
  0x26   :  { %s4277_s0 = scalar_lea.vmem %s55_s5, 128  ;;  %p4282_p2 = scmp.lt.s32.totalorder %s55_s5, %s55_s5 }
  0x27   :  { %p4278_p1 = scmp.ne.s32.totalorder %s55_s5, %s4277_s0  ;;  %p4283_p3 = scmp.lt.s32.totalorder %s4277_s0, %s4277_s0 }
  0x29   :  { %p4284_p4 = por %p4283_p3, %p4282_p2 }
  0x2b   :  { %p4285_p5 = pnand %p4284_p4, %p4278_p1 }
  0x2d   :  { %4288 = shalt.err (!%p4285_p5)
}
  0x2e   :  { %s4325_s9 = smov 64   ;;  %s4326_s10 = smov 4  }
  0x2f   :  { %60 = dma.hbm_to_vmem [thread:$0]  %s6326_s3, 128, %s55_s5, [#allocation10], %s4325_s9, %s4325_s9, %s4326_s10  }
  0x30   :  { %4309 = dma.done.wait [#allocation4], 1024  }
  0x31   :  { %4310 = vsyncadd [#allocation4], 4294966272 }
  0x32   :  { %4311 = dma.done.wait [#allocation7], 32768  }
  0x33   :  { %4312 = vsyncadd [#allocation7], 4294934528 }
  0x34   :  { %4313 = dma.done.wait [#allocation10], 128  }
  0x35   :  { %4314 = vsyncadd [#allocation10], 4294967168  ;;  %v6328_v0 = vmov 0.0   ;;  %v142_v1 = vld [vmem:[#allocation6 + $0x1e8] sm:$0xff]  ;;  %v144_v2 = vld [vmem:[#allocation6 + $0x1f8] sm:$0xff]  ;;  %s4328_s2 = smov [#allocation11]  }
  0x36   :  { %231 = vmatprep.mubr.f32.mxu0 %v6328_v0  ;;  %344 = vmatprep.mubr.f32.mxu1 %v6328_v0  ;;  %v141_v3 = vld [vmem:[#allocation6 + $0x1e0] sm:$0xff]  ;;  %v143_v4 = vld [vmem:[#allocation6 + $0x1f0] sm:$0xff]  ;;  %v138_v5 = vld [vmem:[#allocation6 + $0x1c8] sm:$0xff]  ;;  %s3744_s3 = sshll.u32 %s4328_s2, 4  ;;  %s3745_s3 = int_to_ptr.vmem [resolvable:$true] %s3744_s3 }
  0x37   :  { %167 = vmatprep.subr.mxu0 %v142_v1  ;;  %280 = vmatprep.subr.mxu1 %v144_v2  ;;  %v140_v6 = vld [vmem:[#allocation6 + $0x1d8] sm:$0xff]  ;;  %v137_v7 = vld [vmem:[#allocation6 + $0x1c0] sm:$0xff]  ;;  %v139_v8 = vld [vmem:[#allocation6 + $0x1d0] sm:$0xff]  ;;  %s4289_s13 = scalar_lea.vmem %s3745_s3, 1024  ;;  %p4294_p7 = scmp.lt.s32.totalorder %s3745_s3, %s3745_s3 }
  0x38   :  { %168 = vmatpush1.msra.mxu0 %v141_v3  ;;  %281 = vmatpush1.msra.mxu1 %v143_v4  ;;  %v134_v9 = vld [vmem:[#allocation6 + $0x1a8] sm:$0xff]  ;;  %v136_v10 = vld [vmem:[#allocation6 + $0x1b8] sm:$0xff]  ;;  %v133_v11 = vld [vmem:[#allocation6 + $0x1a0] sm:$0xff]  ;;  %p4290_p6 = scmp.ne.s32.totalorder %s3745_s3, %s4289_s13  ;;  %p4295_p8 = scmp.lt.s32.totalorder %s4289_s13, %s4289_s13 }
  0x39   :  { %169 = vmatprep.subr.mxu0 %v138_v5  ;;  %282 = vmatprep.subr.mxu1 %v140_v6  ;;  %v135_v12 = vld [vmem:[#allocation6 + $0x1b0] sm:$0xff]  ;;  %v130_v13 = vld [vmem:[#allocation6 + $0x188] sm:$0xff]  ;;  %v132_v14 = vld [vmem:[#allocation6 + $0x198] sm:$0xff] }
  0x3a   :  { %170 = vmatpush1.msra.mxu0 %v137_v7  ;;  %283 = vmatpush1.msra.mxu1 %v139_v8  ;;  %v129_v15 = vld [vmem:[#allocation6 + $0x180] sm:$0xff]  ;;  %v131_v16 = vld [vmem:[#allocation6 + $0x190] sm:$0xff]  ;;  %v126_v17 = vld [vmem:[#allocation6 + $0x168] sm:$0xff]  ;;  %p4296_p9 = por %p4295_p8, %p4294_p7 }
  0x3b   :  { %171 = vmatprep.subr.mxu0 %v134_v9  ;;  %284 = vmatprep.subr.mxu1 %v136_v10  ;;  %v128_v18 = vld [vmem:[#allocation6 + $0x178] sm:$0xff]  ;;  %v125_v19 = vld [vmem:[#allocation6 + $0x160] sm:$0xff]  ;;  %v127_v20 = vld [vmem:[#allocation6 + $0x170] sm:$0xff] }
  0x3c   :  { %172 = vmatpush1.msra.mxu0 %v133_v11  ;;  %285 = vmatpush1.msra.mxu1 %v135_v12  ;;  %v122_v21 = vld [vmem:[#allocation6 + $0x148] sm:$0xff]  ;;  %v124_v22 = vld [vmem:[#allocation6 + $0x158] sm:$0xff]  ;;  %v121_v23 = vld [vmem:[#allocation6 + $0x140] sm:$0xff]  ;;  %p4297_p10 = pnand %p4296_p9, %p4290_p6 }
  0x3d   :  { %173 = vmatprep.subr.mxu0 %v130_v13  ;;  %286 = vmatprep.subr.mxu1 %v132_v14  ;;  %v123_v24 = vld [vmem:[#allocation6 + $0x150] sm:$0xff]  ;;  %v118_v25 = vld [vmem:[#allocation6 + $0x128] sm:$0xff]  ;;  %v120_v26 = vld [vmem:[#allocation6 + $0x138] sm:$0xff] }
  0x3e   :  { %174 = vmatpush1.msra.mxu0 %v129_v15  ;;  %287 = vmatpush1.msra.mxu1 %v131_v16  ;;  %v117_v27 = vld [vmem:[#allocation6 + $0x120] sm:$0xff]  ;;  %v119_v28 = vld [vmem:[#allocation6 + $0x130] sm:$0xff]  ;;  %v114_v29 = vld [vmem:[#allocation6 + $0x108] sm:$0xff] }
  0x3f   :  { %175 = vmatprep.subr.mxu0 %v126_v17  ;;  %288 = vmatprep.subr.mxu1 %v128_v18  ;;  %v116_v30 = vld [vmem:[#allocation6 + $0x118] sm:$0xff]  ;;  %v113_v31 = vld [vmem:[#allocation6 + $0x100] sm:$0xff]  ;;  %v115_v32 = vld [vmem:[#allocation6 + $0x110] sm:$0xff] }
  0x40   :  { %176 = vmatpush1.msra.mxu0 %v125_v19  ;;  %289 = vmatpush1.msra.mxu1 %v127_v20  ;;  %v110_v33 = vld [vmem:[#allocation6 + $0xe8] sm:$0xff]  ;;  %v112_v34 = vld [vmem:[#allocation6 + $0xf8] sm:$0xff]  ;;  %v109_v35 = vld [vmem:[#allocation6 + $0xe0] sm:$0xff] }
  0x41   :  { %177 = vmatprep.subr.mxu0 %v122_v21  ;;  %290 = vmatprep.subr.mxu1 %v124_v22  ;;  %v111_v36 = vld [vmem:[#allocation6 + $0xf0] sm:$0xff]  ;;  %v106_v37 = vld [vmem:[#allocation6 + $0xc8] sm:$0xff]  ;;  %v108_v38 = vld [vmem:[#allocation6 + $0xd8] sm:$0xff] }
  0x42   :  { %178 = vmatpush1.msra.mxu0 %v121_v23  ;;  %291 = vmatpush1.msra.mxu1 %v123_v24  ;;  %v105_v39 = vld [vmem:[#allocation6 + $0xc0] sm:$0xff]  ;;  %v107_v40 = vld [vmem:[#allocation6 + $0xd0] sm:$0xff]  ;;  %v102_v41 = vld [vmem:[#allocation6 + $0xa8] sm:$0xff] }
  0x43   :  { %179 = vmatprep.subr.mxu0 %v118_v25  ;;  %292 = vmatprep.subr.mxu1 %v120_v26  ;;  %v104_v42 = vld [vmem:[#allocation6 + $0xb8] sm:$0xff]  ;;  %v101_v43 = vld [vmem:[#allocation6 + $0xa0] sm:$0xff]  ;;  %v103_v44 = vld [vmem:[#allocation6 + $0xb0] sm:$0xff] }
  0x44   :  { %180 = vmatpush1.msra.mxu0 %v117_v27  ;;  %293 = vmatpush1.msra.mxu1 %v119_v28  ;;  %v98_v45 = vld [vmem:[#allocation6 + $0x88] sm:$0xff]  ;;  %v100_v46 = vld [vmem:[#allocation6 + $0x98] sm:$0xff]  ;;  %v97_v47 = vld [vmem:[#allocation6 + $0x80] sm:$0xff] }
  0x45   :  { %181 = vmatprep.subr.mxu0 %v114_v29  ;;  %294 = vmatprep.subr.mxu1 %v116_v30  ;;  %v99_v48 = vld [vmem:[#allocation6 + $0x90] sm:$0xff]  ;;  %v94_v49 = vld [vmem:[#allocation6 + $0x68] sm:$0xff]  ;;  %v96_v50 = vld [vmem:[#allocation6 + $0x78] sm:$0xff] }
  0x46   :  { %182 = vmatpush1.msra.mxu0 %v113_v31  ;;  %295 = vmatpush1.msra.mxu1 %v115_v32  ;;  %v93_v51 = vld [vmem:[#allocation6 + $0x60] sm:$0xff]  ;;  %v95_v52 = vld [vmem:[#allocation6 + $0x70] sm:$0xff]  ;;  %v90_v53 = vld [vmem:[#allocation6 + $0x48] sm:$0xff] }
  0x47   :  { %183 = vmatprep.subr.mxu0 %v110_v33  ;;  %296 = vmatprep.subr.mxu1 %v112_v34  ;;  %v92_v54 = vld [vmem:[#allocation6 + $0x58] sm:$0xff]  ;;  %v89_v55 = vld [vmem:[#allocation6 + $0x40] sm:$0xff]  ;;  %v91_v56 = vld [vmem:[#allocation6 + $0x50] sm:$0xff] }
  0x48   :  { %184 = vmatpush1.msra.mxu0 %v109_v35  ;;  %297 = vmatpush1.msra.mxu1 %v111_v36  ;;  %v86_v57 = vld [vmem:[#allocation6 + $0x28] sm:$0xff]  ;;  %v88_v58 = vld [vmem:[#allocation6 + $0x38] sm:$0xff]  ;;  %v85_v59 = vld [vmem:[#allocation6 + $0x20] sm:$0xff] }
  0x49   :  { %185 = vmatprep.subr.mxu0 %v106_v37  ;;  %298 = vmatprep.subr.mxu1 %v108_v38  ;;  %v87_v60 = vld [vmem:[#allocation6 + $0x30] sm:$0xff]  ;;  %v82_v61 = vld [vmem:[#allocation6 + $0x8] sm:$0xff]  ;;  %v84_v62 = vld [vmem:[#allocation6 + $0x18] sm:$0xff] }
  0x4a   :  { %186 = vmatpush1.msra.mxu0 %v105_v39  ;;  %299 = vmatpush1.msra.mxu1 %v107_v40  ;;  %v81_v63 = vld [vmem:[#allocation6] sm:$0xff]  ;;  %v83_v1 = vld [vmem:[#allocation6 + $0x10] sm:$0xff]  ;;  %v4377_v3 = vld [vmem:[#allocation8 + $0x1e8] sm:$0xff] }
  0x4b   :  { %187 = vmatprep.subr.mxu0 %v102_v41  ;;  %300 = vmatprep.subr.mxu1 %v104_v42  ;;  %v73_v2 = vld [vmem:[#allocation3] sm:$0xff]  ;;  %6528 = vst [vmem:[#allocation16_spill] sm:$0xff] %v4377_v3  ;;  %v4379_v4 = vld [vmem:[#allocation8 + $0x1f8] sm:$0xff]  ;;  %v4383_v6 = vld [vmem:[#allocation8 + $0x1f0] sm:$0xff] }
  0x4c   :  { %188 = vmatpush1.msra.mxu0 %v101_v43  ;;  %301 = vmatpush1.msra.mxu1 %v103_v44  ;;  %6529 = vst [vmem:[#allocation17_spill] sm:$0xff] %v4379_v4  ;;  %v4381_v5 = vld [vmem:[#allocation8 + $0x1e0] sm:$0xff]  ;;  %v4385_v7 = vld [vmem:[#allocation8 + $0x1c8] sm:$0xff]  ;;  %v4387_v8 = vld [vmem:[#allocation8 + $0x1d8] sm:$0xff] }
  0x4d   :  { %189 = vmatprep.subr.mxu0 %v98_v45  ;;  %302 = vmatprep.subr.mxu1 %v100_v46  ;;  %v4393_v9 = vld [vmem:[#allocation8 + $0x1c0] sm:$0xff]  ;;  %v4395_v10 = vld [vmem:[#allocation8 + $0x1d0] sm:$0xff]  ;;  %v74_v11 = vld [vmem:[#allocation3 + $0x8] sm:$0xff] }
  0x4e   :  { %190 = vmatpush1.msra.mxu0 %v97_v47  ;;  %303 = vmatpush1.msra.mxu1 %v99_v48  ;;  %v4401_v12 = vld [vmem:[#allocation8 + $0x1a8] sm:$0xff]  ;;  %v4403_v13 = vld [vmem:[#allocation8 + $0x1b8] sm:$0xff]  ;;  %v4407_v14 = vld [vmem:[#allocation8 + $0x1a0] sm:$0xff] }
  0x4f   :  { %191 = vmatprep.subr.mxu0 %v94_v49  ;;  %304 = vmatprep.subr.mxu1 %v96_v50  ;;  %v4409_v15 = vld [vmem:[#allocation8 + $0x1b0] sm:$0xff]  ;;  %v4411_v16 = vld [vmem:[#allocation8 + $0x188] sm:$0xff]  ;;  %v4413_v17 = vld [vmem:[#allocation8 + $0x198] sm:$0xff] }
  0x50   :  { %192 = vmatpush1.msra.mxu0 %v93_v51  ;;  %305 = vmatpush1.msra.mxu1 %v95_v52  ;;  %v4419_v18 = vld [vmem:[#allocation8 + $0x180] sm:$0xff]  ;;  %v4421_v19 = vld [vmem:[#allocation8 + $0x190] sm:$0xff]  ;;  %v4427_v21 = vld [vmem:[#allocation8 + $0x168] sm:$0xff] }
  0x51   :  { %193 = vmatprep.subr.mxu0 %v90_v53  ;;  %306 = vmatprep.subr.mxu1 %v92_v54  ;;  %v75_v20 = vld [vmem:[#allocation3 + $0x10] sm:$0xff]  ;;  %v4429_v22 = vld [vmem:[#allocation8 + $0x178] sm:$0xff]  ;;  %v4433_v23 = vld [vmem:[#allocation8 + $0x160] sm:$0xff] }
  0x52   :  { %194 = vmatpush1.msra.mxu0 %v89_v55  ;;  %307 = vmatpush1.msra.mxu1 %v91_v56  ;;  %v4435_v24 = vld [vmem:[#allocation8 + $0x170] sm:$0xff]  ;;  %v4437_v25 = vld [vmem:[#allocation8 + $0x148] sm:$0xff]  ;;  %v4439_v26 = vld [vmem:[#allocation8 + $0x158] sm:$0xff] }
  0x53   :  { %195 = vmatprep.subr.mxu0 %v86_v57  ;;  %308 = vmatprep.subr.mxu1 %v88_v58  ;;  %v4445_v27 = vld [vmem:[#allocation8 + $0x140] sm:$0xff]  ;;  %v4447_v28 = vld [vmem:[#allocation8 + $0x150] sm:$0xff]  ;;  %v76_v29 = vld [vmem:[#allocation3 + $0x18] sm:$0xff] }
  0x54   :  { %196 = vmatpush1.msra.mxu0 %v85_v59  ;;  %309 = vmatpush1.msra.mxu1 %v87_v60  ;;  %v4453_v30 = vld [vmem:[#allocation8 + $0x128] sm:$0xff]  ;;  %v4455_v31 = vld [vmem:[#allocation8 + $0x138] sm:$0xff]  ;;  %v4459_v32 = vld [vmem:[#allocation8 + $0x120] sm:$0xff] }
  0x55   :  { %197 = vmatprep.subr.mxu0 %v82_v61  ;;  %310 = vmatprep.subr.mxu1 %v84_v62  ;;  %v4461_v33 = vld [vmem:[#allocation8 + $0x130] sm:$0xff]  ;;  %v4463_v34 = vld [vmem:[#allocation8 + $0x108] sm:$0xff]  ;;  %v4465_v35 = vld [vmem:[#allocation8 + $0x118] sm:$0xff] }
  0x56   :  { %198 = vmatpush1.msra.mxu0 %v81_v63  ;;  %311 = vmatpush1.msra.mxu1 %v83_v1  ;;  %v4471_v36 = vld [vmem:[#allocation8 + $0x100] sm:$0xff]  ;;  %v4473_v37 = vld [vmem:[#allocation8 + $0x110] sm:$0xff]  ;;  %v4479_v39 = vld [vmem:[#allocation8 + $0xe8] sm:$0xff] }
  0x57   :  { %232 = vmatmul.mubr.f32.vlgmr.msra.gmra.mxu0 %v73_v2  ;;  %345 = vmatmul.mubr.f32.vlgmr.msra.gmra.mxu1 %v73_v2  ;;  %v77_v38 = vld [vmem:[#allocation3 + $0x20] sm:$0xff]  ;;  %v4481_v40 = vld [vmem:[#allocation8 + $0xf8] sm:$0xff]  ;;  %v4487_v42 = vld [vmem:[#allocation8 + $0xf0] sm:$0xff] }
  0x58   :  { %496 = vmatprep.subr.mxu0 %v4377_v3  ;;  %567 = vmatprep.subr.mxu1 %v4379_v4  ;;  %v4485_v41 = vld [vmem:[#allocation8 + $0xe0] sm:$0xff]  ;;  %v4489_v43 = vld [vmem:[#allocation8 + $0xc8] sm:$0xff]  ;;  %v4491_v44 = vld [vmem:[#allocation8 + $0xd8] sm:$0xff] }
  0x59   :  { %497 = vmatpush1.msra.mxu0 %v4381_v5  ;;  %568 = vmatpush1.msra.mxu1 %v4383_v6  ;;  %v4497_v45 = vld [vmem:[#allocation8 + $0xc0] sm:$0xff]  ;;  %v4499_v46 = vld [vmem:[#allocation8 + $0xd0] sm:$0xff]  ;;  %v78_v47 = vld [vmem:[#allocation3 + $0x28] sm:$0xff] }
  0x5a   :  { %498 = vmatprep.subr.mxu0 %v4385_v7  ;;  %569 = vmatprep.subr.mxu1 %v4387_v8  ;;  %v4505_v48 = vld [vmem:[#allocation8 + $0xa8] sm:$0xff]  ;;  %v4507_v49 = vld [vmem:[#allocation8 + $0xb8] sm:$0xff]  ;;  %v4511_v50 = vld [vmem:[#allocation8 + $0xa0] sm:$0xff] }
  0x5b   :  { %237 = vmatprep.mubr.f32.mxu0 %v6328_v0  ;;  %350 = vmatprep.mubr.f32.mxu1 %v6328_v0  ;;  %v4513_v51 = vld [vmem:[#allocation8 + $0xb0] sm:$0xff]  ;;  %v4515_v52 = vld [vmem:[#allocation8 + $0x88] sm:$0xff]  ;;  %v4517_v53 = vld [vmem:[#allocation8 + $0x98] sm:$0xff] }
  0x5c   :  { %499 = vmatpush1.msra.mxu0 %v4393_v9  ;;  %570 = vmatpush1.msra.mxu1 %v4395_v10  ;;  %6530 = vst [vmem:[#allocation18_spill] sm:$0xff] %v4513_v51  ;;  %6531 = vst [vmem:[#allocation19_spill] sm:$0xff] %v4515_v52  ;;  %v4523_v54 = vld [vmem:[#allocation8 + $0x80] sm:$0xff]  ;;  %v4525_v55 = vld [vmem:[#allocation8 + $0x90] sm:$0xff] }
  0x5d   :  { %238 = vmatmul.mubr.f32.gmra.mxu0 %v74_v11  ;;  %351 = vmatmul.mubr.f32.gmra.mxu1 %v74_v11  ;;  %6532 = vst [vmem:[#allocation20_spill] sm:$0xff] %v4517_v53  ;;  %6533 = vst [vmem:[#allocation21_spill] sm:$0xff] %v4523_v54  ;;  %v79_v56 = vld [vmem:[#allocation3 + $0x30] sm:$0xff]  ;;  %v4531_v57 = vld [vmem:[#allocation8 + $0x68] sm:$0xff] }
  0x5e   :  { %500 = vmatprep.subr.mxu0 %v4401_v12  ;;  %571 = vmatprep.subr.mxu1 %v4403_v13  ;;  %6534 = vst [vmem:[#allocation22_spill] sm:$0xff] %v4525_v55  ;;  %6535 = vst [vmem:[#allocation23_spill] sm:$0xff] %v4531_v57  ;;  %v4533_v58 = vld [vmem:[#allocation8 + $0x78] sm:$0xff]  ;;  %v4537_v59 = vld [vmem:[#allocation8 + $0x60] sm:$0xff] }
  0x5f   :  { %501 = vmatpush1.msra.mxu0 %v4407_v14  ;;  %572 = vmatpush1.msra.mxu1 %v4409_v15  ;;  %6536 = vst [vmem:[#allocation24_spill] sm:$0xff] %v4533_v58  ;;  %6537 = vst [vmem:[#allocation25_spill] sm:$0xff] %v4537_v59  ;;  %v4539_v60 = vld [vmem:[#allocation8 + $0x70] sm:$0xff]  ;;  %v4541_v61 = vld [vmem:[#allocation8 + $0x48] sm:$0xff] }
  0x60   :  { %502 = vmatprep.subr.mxu0 %v4411_v16  ;;  %573 = vmatprep.subr.mxu1 %v4413_v17  ;;  %6538 = vst [vmem:[#allocation26_spill] sm:$0xff] %v4539_v60  ;;  %6539 = vst [vmem:[#allocation27_spill] sm:$0xff] %v4541_v61  ;;  %v4543_v62 = vld [vmem:[#allocation8 + $0x58] sm:$0xff]  ;;  %v4549_v63 = vld [vmem:[#allocation8 + $0x40] sm:$0xff] }
  0x61   :  { %243 = vmatprep.mubr.f32.mxu0 %v6328_v0  ;;  %356 = vmatprep.mubr.f32.mxu1 %v6328_v0  ;;  %6540 = vst [vmem:[#allocation28_spill] sm:$0xff] %v4543_v62  ;;  %6541 = vst [vmem:[#allocation29_spill] sm:$0xff] %v4549_v63  ;;  %v4551_v1 = vld [vmem:[#allocation8 + $0x50] sm:$0xff]  ;;  %v80_v2 = vld [vmem:[#allocation3 + $0x38] sm:$0xff] }
  0x62   :  { %503 = vmatpush1.msra.mxu0 %v4419_v18  ;;  %574 = vmatpush1.msra.mxu1 %v4421_v19  ;;  %6542 = vst [vmem:[#allocation30_spill] sm:$0xff] %v4551_v1  ;;  %v4557_v11 = vld [vmem:[#allocation8 + $0x28] sm:$0xff] }
  0x63   :  { %244 = vmatmul.mubr.f32.gmra.mxu0 %v75_v20  ;;  %357 = vmatmul.mubr.f32.gmra.mxu1 %v75_v20  ;;  %6543 = vst [vmem:[#allocation31_spill] sm:$0xff] %v4557_v11  ;;  %v4559_v20 = vld [vmem:[#allocation8 + $0x38] sm:$0xff] }
  0x64   :  { %504 = vmatprep.subr.mxu0 %v4427_v21  ;;  %575 = vmatprep.subr.mxu1 %v4429_v22  ;;  %6544 = vst [vmem:[#allocation32_spill] sm:$0xff] %v4559_v20 }
  0x65   :  { %505 = vmatpush1.msra.mxu0 %v4433_v23  ;;  %576 = vmatpush1.msra.mxu1 %v4435_v24 }
  0x66   :  { %506 = vmatprep.subr.mxu0 %v4437_v25  ;;  %577 = vmatprep.subr.mxu1 %v4439_v26 }
  0x67   :  { %249 = vmatprep.mubr.f32.mxu0 %v6328_v0  ;;  %362 = vmatprep.mubr.f32.mxu1 %v6328_v0 }
  0x68   :  { %507 = vmatpush1.msra.mxu0 %v4445_v27  ;;  %578 = vmatpush1.msra.mxu1 %v4447_v28 }
  0x69   :  { %250 = vmatmul.mubr.f32.gmra.mxu0 %v76_v29  ;;  %363 = vmatmul.mubr.f32.gmra.mxu1 %v76_v29  ;;  %v4563_v29 = vld [vmem:[#allocation8 + $0x20] sm:$0xff] }
  0x6a   :  { %508 = vmatprep.subr.mxu0 %v4453_v30  ;;  %579 = vmatprep.subr.mxu1 %v4455_v31  ;;  %6545 = vst [vmem:[#allocation33_spill] sm:$0xff] %v4563_v29 }
  0x6b   :  { %509 = vmatpush1.msra.mxu0 %v4459_v32  ;;  %580 = vmatpush1.msra.mxu1 %v4461_v33 }
  0x6c   :  { %510 = vmatprep.subr.mxu0 %v4463_v34  ;;  %581 = vmatprep.subr.mxu1 %v4465_v35 }
  0x6d   :  { %255 = vmatprep.mubr.f32.mxu0 %v6328_v0  ;;  %368 = vmatprep.mubr.f32.mxu1 %v6328_v0 }
  0x6e   :  { %511 = vmatpush1.msra.mxu0 %v4471_v36  ;;  %582 = vmatpush1.msra.mxu1 %v4473_v37 }
  0x6f   :  { %256 = vmatmul.mubr.f32.gmra.mxu0 %v77_v38  ;;  %369 = vmatmul.mubr.f32.gmra.mxu1 %v77_v38  ;;  %v4565_v38 = vld [vmem:[#allocation8 + $0x30] sm:$0xff] }
  0x70   :  { %512 = vmatprep.subr.mxu0 %v4479_v39  ;;  %583 = vmatprep.subr.mxu1 %v4481_v40  ;;  %6546 = vst [vmem:[#allocation34_spill] sm:$0xff] %v4565_v38 }
  0x71   :  { %513 = vmatpush1.msra.mxu0 %v4485_v41  ;;  %584 = vmatpush1.msra.mxu1 %v4487_v42 }
  0x72   :  { %514 = vmatprep.subr.mxu0 %v4489_v43  ;;  %585 = vmatprep.subr.mxu1 %v4491_v44 }
  0x73   :  { %261 = vmatprep.mubr.f32.mxu0 %v6328_v0  ;;  %374 = vmatprep.mubr.f32.mxu1 %v6328_v0 }
  0x74   :  { %515 = vmatpush1.msra.mxu0 %v4497_v45  ;;  %586 = vmatpush1.msra.mxu1 %v4499_v46 }
  0x75   :  { %262 = vmatmul.mubr.f32.gmra.mxu0 %v78_v47  ;;  %375 = vmatmul.mubr.f32.gmra.mxu1 %v78_v47  ;;  %v4567_v47 = vld [vmem:[#allocation8 + $0x8] sm:$0xff] }
  0x76   :  { %516 = vmatprep.subr.mxu0 %v4505_v48  ;;  %587 = vmatprep.subr.mxu1 %v4507_v49  ;;  %6547 = vst [vmem:[#allocation35_spill] sm:$0xff] %v4567_v47 }
  0x77   :  { %517 = vmatpush1.msra.mxu0 %v4511_v50  ;;  %588 = vmatpush1.msra.mxu1 %v4513_v51 }
  0x78   :  { %518 = vmatprep.subr.mxu0 %v4515_v52  ;;  %589 = vmatprep.subr.mxu1 %v4517_v53 }
  0x79   :  { %267 = vmatprep.mubr.f32.mxu0 %v6328_v0  ;;  %380 = vmatprep.mubr.f32.mxu1 %v6328_v0 }
  0x7a   :  { %519 = vmatpush1.msra.mxu0 %v4523_v54  ;;  %590 = vmatpush1.msra.mxu1 %v4525_v55 }
  0x7b   :  { %268 = vmatmul.mubr.f32.gmra.mxu0 %v79_v56  ;;  %381 = vmatmul.mubr.f32.gmra.mxu1 %v79_v56  ;;  %v4569_v56 = vld [vmem:[#allocation8 + $0x18] sm:$0xff] }
  0x7c   :  { %520 = vmatprep.subr.mxu0 %v4531_v57  ;;  %591 = vmatprep.subr.mxu1 %v4533_v58  ;;  %6548 = vst [vmem:[#allocation36_spill] sm:$0xff] %v4569_v56 }
  0x7d   :  { %521 = vmatpush1.msra.mxu0 %v4537_v59  ;;  %592 = vmatpush1.msra.mxu1 %v4539_v60 }
  0x7e   :  { %522 = vmatprep.subr.mxu0 %v4541_v61  ;;  %593 = vmatprep.subr.mxu1 %v4543_v62 }
  0x7f   :  { %273 = vmatprep.mubr.f32.mxu0 %v6328_v0  ;;  %386 = vmatprep.mubr.f32.mxu1 %v6328_v0  ;;  %v4573_v0 = vld [vmem:[#allocation8] sm:$0xff] }
  0x80   :  { %523 = vmatpush1.msra.mxu0 %v4549_v63  ;;  %594 = vmatpush1.msra.mxu1 %v4551_v1  ;;  %6549 = vst [vmem:[#allocation37_spill] sm:$0xff] %v4573_v0  ;;  %v4577_v1 = vld [vmem:[#allocation8 + $0x10] sm:$0xff] }
  0x81   :  { %274 = vmatmul.mubr.f32.gmra.mxu0 %v80_v2  ;;  %387 = vmatmul.mubr.f32.gmra.mxu1 %v80_v2  ;;  %6550 = vst [vmem:[#allocation38_spill] sm:$0xff] %v4577_v1  ;;  %v6551_v2 = vmov 0.0  }
  0x82   :  { %524 = vmatprep.subr.mxu0 %v4557_v11  ;;  %595 = vmatprep.subr.mxu1 %v4559_v20 }
  0x83   :  { %525 = vmatpush1.msra.mxu0 %v4563_v29  ;;  %596 = vmatpush1.msra.mxu1 %v4565_v38 }
  0x84   :  { %526 = vmatprep.subr.mxu0 %v4567_v47  ;;  %597 = vmatprep.subr.mxu1 %v4569_v56 }
  0x85   :  { %527 = vmatpush1.msra.mxu0 %v4573_v0  ;;  %560 = vmatprep.mubr.f32.mxu0 %v6551_v2 }
  0x86   :  { %598 = vmatpush1.msra.mxu1 %v4577_v1  ;;  %631 = vmatprep.mubr.f32.mxu1 %v6551_v2 }
  0x87   :  { %561 = vmatmul.mubr.f32.vlgmr.msra.gmra.mxu0 %v6551_v2  ;;  %632 = vmatmul.mubr.f32.vlgmr.msra.gmra.mxu1 %v6551_v2 }
  0x88   :  { %674 = vmatprep.subr.mxu0 %v4377_v3  ;;  %745 = vmatprep.subr.mxu1 %v4379_v4 }
  0x89   :  { %675 = vmatpush1.msra.mxu0 %v4381_v5  ;;  %746 = vmatpush1.msra.mxu1 %v4383_v6 }
  0x8a   :  { %676 = vmatprep.subr.mxu0 %v4385_v7  ;;  %747 = vmatprep.subr.mxu1 %v4387_v8 }
  0x8b   :  { %677 = vmatpush1.msra.mxu0 %v4393_v9  ;;  %748 = vmatpush1.msra.mxu1 %v4395_v10 }
  0x8c   :  { %678 = vmatprep.subr.mxu0 %v4401_v12  ;;  %749 = vmatprep.subr.mxu1 %v4403_v13 }
  0x8d   :  { %679 = vmatpush1.msra.mxu0 %v4407_v14  ;;  %750 = vmatpush1.msra.mxu1 %v4409_v15 }
  0x8e   :  { %680 = vmatprep.subr.mxu0 %v4411_v16  ;;  %751 = vmatprep.subr.mxu1 %v4413_v17 }
  0x8f   :  { %681 = vmatpush1.msra.mxu0 %v4419_v18  ;;  %752 = vmatpush1.msra.mxu1 %v4421_v19 }
  0x90   :  { %682 = vmatprep.subr.mxu0 %v4427_v21  ;;  %753 = vmatprep.subr.mxu1 %v4429_v22 }
  0x91   :  { %683 = vmatpush1.msra.mxu0 %v4433_v23  ;;  %754 = vmatpush1.msra.mxu1 %v4435_v24 }
  0x92   :  { %684 = vmatprep.subr.mxu0 %v4437_v25  ;;  %755 = vmatprep.subr.mxu1 %v4439_v26 }
  0x93   :  { %685 = vmatpush1.msra.mxu0 %v4445_v27  ;;  %756 = vmatpush1.msra.mxu1 %v4447_v28 }
  0x94   :  { %686 = vmatprep.subr.mxu0 %v4453_v30  ;;  %757 = vmatprep.subr.mxu1 %v4455_v31 }
  0x95   :  { %687 = vmatpush1.msra.mxu0 %v4459_v32  ;;  %758 = vmatpush1.msra.mxu1 %v4461_v33 }
  0x96   :  { %688 = vmatprep.subr.mxu0 %v4463_v34  ;;  %759 = vmatprep.subr.mxu1 %v4465_v35 }
  0x97   :  { %689 = vmatpush1.msra.mxu0 %v4471_v36  ;;  %760 = vmatpush1.msra.mxu1 %v4473_v37 }
  0x98   :  { %690 = vmatprep.subr.mxu0 %v4479_v39  ;;  %761 = vmatprep.subr.mxu1 %v4481_v40 }
  0x99   :  { %691 = vmatpush1.msra.mxu0 %v4485_v41  ;;  %762 = vmatpush1.msra.mxu1 %v4487_v42 }
  0x9a   :  { %692 = vmatprep.subr.mxu0 %v4489_v43  ;;  %763 = vmatprep.subr.mxu1 %v4491_v44 }
  0x9b   :  { %693 = vmatpush1.msra.mxu0 %v4497_v45  ;;  %764 = vmatpush1.msra.mxu1 %v4499_v46 }
  0x9c   :  { %694 = vmatprep.subr.mxu0 %v4505_v48  ;;  %765 = vmatprep.subr.mxu1 %v4507_v49 }
  0x9d   :  { %695 = vmatpush1.msra.mxu0 %v4511_v50  ;;  %766 = vmatpush1.msra.mxu1 %v4513_v51 }
  0x9e   :  { %696 = vmatprep.subr.mxu0 %v4515_v52  ;;  %767 = vmatprep.subr.mxu1 %v4517_v53  ;;  %v6552_v52 = vld [vmem:[#allocation30_spill] sm:$0xff] }
  0x9f   :  { %697 = vmatpush1.msra.mxu0 %v4523_v54  ;;  %768 = vmatpush1.msra.mxu1 %v4525_v55 }
  0xa0   :  { %698 = vmatprep.subr.mxu0 %v4531_v57  ;;  %769 = vmatprep.subr.mxu1 %v4533_v58 }
  0xa1   :  { %699 = vmatpush1.msra.mxu0 %v4537_v59  ;;  %770 = vmatpush1.msra.mxu1 %v4539_v60 }
  0xa2   :  { %700 = vmatprep.subr.mxu0 %v4541_v61  ;;  %771 = vmatprep.subr.mxu1 %v4543_v62 }
  0xa3   :  { %701 = vmatpush1.msra.mxu0 %v4549_v63  ;;  %772 = vmatpush1.msra.mxu1 %v6552_v52 }
  0xa4   :  { %702 = vmatprep.subr.mxu0 %v4557_v11  ;;  %773 = vmatprep.subr.mxu1 %v4559_v20  ;;  %v147_v20 = vlaneseq  ;;  %v145_v11 = vld [vmem:[#allocation9] sm:$0xf] }
  0xa5   :  { %703 = vmatpush1.msra.mxu0 %v4563_v29  ;;  %774 = vmatpush1.msra.mxu1 %v4565_v38 }
  0xa6   :  { %704 = vmatprep.subr.mxu0 %v4567_v47  ;;  %775 = vmatprep.subr.mxu1 %v4569_v56  ;;  %v4655_v29 = vshrl.u32 %v147_v20, 7 }
  0xa7   :  { %705 = vmatpush1.msra.mxu0 %v4573_v0  ;;  %738 = vmatprep.mubr.f32.mxu0 %v6551_v2 }
  0xa8   :  { %776 = vmatpush1.msra.mxu1 %v4577_v1  ;;  %809 = vmatprep.mubr.f32.mxu1 %v6551_v2  ;;  %6553 = vst [vmem:[#allocation39_spill] sm:$0xff] %v4655_v29  ;;  %v6367_v56 = vsub.s32 0, %v4655_v29  ;;  %v6370_v0 = vsub.s32 2, %v4655_v29 }
  0xa9   :  { %853 = vmatprep.subr.mxu0 %v4377_v3  ;;  %924 = vmatprep.subr.mxu1 %v4379_v4  ;;  %v6377_v3 = vsub.s32 1, %v4655_v29  ;;  %v6378_v4 = vsub.s32 3, %v4655_v29 }
  0xaa   :  { %v150_v20 = vrot.slane %v145_v11, %v6367_v56  ;;  %v4673_v2 = vrot.slane %v145_v11, %v6370_v0 }
  0xab   :  { %v154_v61 = vrot.slane %v145_v11, %v6377_v3  ;;  %v4679_v60 = vrot.slane %v145_v11, %v6378_v4 }
 0x117   :  { %v4657_v38 = vpop.f32.mrf.mxu0  ;;  %v4659_v47 = vpop.f32.mrf.mxu1 }
 0x119   :  { %v4663_v52 = vpop.f32.mrf.mxu0  ;;  %v4665_v1 = vpop.f32.mrf.mxu1 }
 0x11d   :  { %v239_v63 = vpop.f32.mrf.mxu0  ;;  %v352_v62 = vpop.f32.mrf.mxu1 }
 0x11e   :  { %v4681_v59 = vadd.f32 %v239_v63, %v150_v20  ;;  %v4684_v58 = vadd.f32 %v352_v62, %v4673_v2 }
 0x11f   :  { %v241_v57 = vpop.f32.mrf.mxu0  ;;  %v354_v56 = vpop.f32.mrf.mxu1 }
 0x120   :  { %6554 = vst [vmem:[#allocation40_spill] sm:$0xff] %v4684_v58  ;;  %v4686_v55 = vadd.f32 %v241_v57, %v154_v61  ;;  %v4689_v0 = vadd.f32 %v354_v56, %v4679_v60 }
 0x122   :  { %6555 = vst [vmem:[#allocation41_spill] sm:$0xff] %v4686_v55  ;;  %6556 = vst [vmem:[#allocation42_spill] sm:$0xff] %v4689_v0 }
 0x123   :  { %v245_v54 = vpop.f32.mrf.mxu0  ;;  %v358_v53 = vpop.f32.mrf.mxu1 }
 0x124   :  { %v4691_v51 = vadd.f32 %v245_v54, %v150_v20  ;;  %v4694_v3 = vadd.f32 %v358_v53, %v4673_v2 }
 0x125   :  { %v247_v11 = vpop.f32.mrf.mxu0  ;;  %v360_v63 = vpop.f32.mrf.mxu1 }
 0x126   :  { %6557 = vst [vmem:[#allocation43_spill] sm:$0xff] %v4691_v51  ;;  %6558 = vst [vmem:[#allocation44_spill] sm:$0xff] %v4694_v3  ;;  %v4696_v4 = vadd.f32 %v247_v11, %v154_v61  ;;  %v4699_v62 = vadd.f32 %v360_v63, %v4679_v60 }
 0x128   :  { %6559 = vst [vmem:[#allocation45_spill] sm:$0xff] %v4696_v4  ;;  %6560 = vst [vmem:[#allocation46_spill] sm:$0xff] %v4699_v62 }
 0x129   :  { %v251_v29 = vpop.f32.mrf.mxu0  ;;  %v364_v57 = vpop.f32.mrf.mxu1 }
 0x12a   :  { %v4701_v58 = vadd.f32 %v251_v29, %v150_v20  ;;  %v4704_v56 = vadd.f32 %v364_v57, %v4673_v2 }
 0x12b   :  { %v253_v0 = vpop.f32.mrf.mxu0  ;;  %v366_v54 = vpop.f32.mrf.mxu1 }
 0x12c   :  { %6561 = vst [vmem:[#allocation47_spill] sm:$0xff] %v4701_v58  ;;  %6562 = vst [vmem:[#allocation48_spill] sm:$0xff] %v4704_v56  ;;  %v4706_v51 = vadd.f32 %v253_v0, %v154_v61  ;;  %v4709_v53 = vadd.f32 %v366_v54, %v4679_v60 }
 0x12e   :  { %6563 = vst [vmem:[#allocation49_spill] sm:$0xff] %v4706_v51  ;;  %6564 = vst [vmem:[#allocation50_spill] sm:$0xff] %v4709_v53 }
 0x12f   :  { %v257_v3 = vpop.f32.mrf.mxu0  ;;  %v370_v11 = vpop.f32.mrf.mxu1 }
 0x130   :  { %v4711_v4 = vadd.f32 %v257_v3, %v150_v20  ;;  %v4714_v63 = vadd.f32 %v370_v11, %v4673_v2 }
 0x131   :  { %v259_v62 = vpop.f32.mrf.mxu0  ;;  %v372_v29 = vpop.f32.mrf.mxu1 }
 0x132   :  { %6565 = vst [vmem:[#allocation51_spill] sm:$0xff] %v4711_v4  ;;  %6566 = vst [vmem:[#allocation52_spill] sm:$0xff] %v4714_v63  ;;  %v4716_v58 = vadd.f32 %v259_v62, %v154_v61  ;;  %v4719_v57 = vadd.f32 %v372_v29, %v4679_v60 }
 0x134   :  { %6567 = vst [vmem:[#allocation53_spill] sm:$0xff] %v4716_v58  ;;  %6568 = vst [vmem:[#allocation54_spill] sm:$0xff] %v4719_v57 }
 0x135   :  { %v263_v56 = vpop.f32.mrf.mxu0  ;;  %v376_v0 = vpop.f32.mrf.mxu1 }
 0x136   :  { %v4721_v51 = vadd.f32 %v263_v56, %v150_v20  ;;  %v4724_v54 = vadd.f32 %v376_v0, %v4673_v2 }
 0x137   :  { %v265_v53 = vpop.f32.mrf.mxu0  ;;  %v378_v3 = vpop.f32.mrf.mxu1 }
 0x138   :  { %6569 = vst [vmem:[#allocation55_spill] sm:$0xff] %v4721_v51  ;;  %6570 = vst [vmem:[#allocation56_spill] sm:$0xff] %v4724_v54  ;;  %v4726_v4 = vadd.f32 %v265_v53, %v154_v61  ;;  %v4729_v11 = vadd.f32 %v378_v3, %v4679_v60 }
 0x13a   :  { %6571 = vst [vmem:[#allocation57_spill] sm:$0xff] %v4726_v4  ;;  %6572 = vst [vmem:[#allocation58_spill] sm:$0xff] %v4729_v11 }
 0x13b   :  { %v269_v63 = vpop.f32.mrf.mxu0  ;;  %v382_v62 = vpop.f32.mrf.mxu1 }
 0x13c   :  { %v4731_v58 = vadd.f32 %v269_v63, %v150_v20  ;;  %v4734_v29 = vadd.f32 %v382_v62, %v4673_v2 }
 0x13d   :  { %v271_v57 = vpop.f32.mrf.mxu0  ;;  %v384_v56 = vpop.f32.mrf.mxu1 }
 0x13e   :  { %6573 = vst [vmem:[#allocation59_spill] sm:$0xff] %v4731_v58  ;;  %6574 = vst [vmem:[#allocation60_spill] sm:$0xff] %v4734_v29  ;;  %v4736_v51 = vadd.f32 %v271_v57, %v154_v61  ;;  %v4739_v0 = vadd.f32 %v384_v56, %v4679_v60  ;;  %v234_v57 = vadd.f32 %v4657_v38, %v150_v20 }
 0x13f   :  { %v236_v56 = vadd.f32 %v4663_v52, %v154_v61 }
 0x140   :  { %6575 = vst [vmem:[#allocation61_spill] sm:$0xff] %v4736_v51  ;;  %6576 = vst [vmem:[#allocation62_spill] sm:$0xff] %v4739_v0 }
 0x141   :  { %v275_v54 = vpop.f32.mrf.mxu0  ;;  %v388_v53 = vpop.f32.mrf.mxu1 }
 0x142   :  { %v4741_v4 = vadd.f32 %v275_v54, %v150_v20  ;;  %v4744_v3 = vadd.f32 %v388_v53, %v4673_v2 }
 0x143   :  { %v277_v11 = vpop.f32.mrf.mxu0  ;;  %v390_v63 = vpop.f32.mrf.mxu1 }
 0x144   :  { %6577 = vst [vmem:[#allocation63_spill] sm:$0xff] %v4741_v4  ;;  %6578 = vst [vmem:[#allocation64_spill] sm:$0xff] %v4744_v3  ;;  %v4746_v58 = vadd.f32 %v277_v11, %v154_v61  ;;  %v4749_v62 = vadd.f32 %v390_v63, %v4679_v60  ;;  %v349_v11 = vadd.f32 %v4665_v1, %v4679_v60 }
 0x145   :  { %v347_v63 = vadd.f32 %v4659_v47, %v4673_v2  ;;  %v6581_v2 = vld [vmem:[#allocation18_spill] sm:$0xff] }
 0x146   :  { %6579 = vst [vmem:[#allocation65_spill] sm:$0xff] %v4746_v58  ;;  %6580 = vst [vmem:[#allocation66_spill] sm:$0xff] %v4749_v62 }
 0x147   :  { %v562_v29 = vpop.f32.mrf.mxu0  ;;  %v633_v4 = vpop.f32.mrf.mxu1 }
 0x148   :  { %v638_v0 = vadd.f32 %v562_v29, %v234_v57  ;;  %v640_v62 = vadd.f32 %v633_v4, %v347_v63  ;;  %v6586_v63 = vld [vmem:[#allocation23_spill] sm:$0xff] }
 0x149   :  { %v564_v51 = vpop.f32.mrf.mxu0  ;;  %v635_v3 = vpop.f32.mrf.mxu1 }
 0x14a   :  { %v3765_v55 = vmul.f32 -1.442695, %v638_v0  ;;  %v639_v54 = vadd.f32 %v564_v51, %v236_v56  ;;  %v641_v58 = vadd.f32 %v635_v3, %v349_v11  ;;  %v6585_v11 = vld [vmem:[#allocation22_spill] sm:$0xff] }
 0x14c   :  { %3825 = vpow2.f32 %v3765_v55  ;;  %v3766_v53 = vmul.f32 -1.442695, %v639_v54  ;;  %v3767_v38 = vmul.f32 -1.442695, %v641_v58  ;;  %v6583_v54 = vld [vmem:[#allocation20_spill] sm:$0xff] }
 0x14e   :  { %3827 = vpow2.f32 %v3766_v53  ;;  %v6584_v53 = vld [vmem:[#allocation21_spill] sm:$0xff] }
 0x14f   :  { %3829 = vpow2.f32 %v3767_v38  ;;  %v6587_v38 = vld [vmem:[#allocation24_spill] sm:$0xff] }
 0x159   :  { %v3826_v20 = vpop.eup %3825 }
 0x15a   :  { %v645_v52 = vadd.f32 1.0, %v3826_v20  ;;  %v6588_v20 = vld [vmem:[#allocation25_spill] sm:$0xff] }
 0x15b   :  { %v3828_v61 = vpop.eup %3827 }
 0x15c   :  { %3831 = vrcp.f32 %v645_v52  ;;  %v651_v51 = vadd.f32 1.0, %v3828_v61  ;;  %v3830_v55 = vpop.eup %3829  ;;  %v6589_v52 = vld [vmem:[#allocation26_spill] sm:$0xff]  ;;  %v6590_v61 = vld [vmem:[#allocation27_spill] sm:$0xff] }
 0x15d   :  { %3833 = vtanh.f32 %v640_v62  ;;  %v658_v56 = vadd.f32 1.0, %v3830_v55  ;;  %v6582_v62 = vld [vmem:[#allocation19_spill] sm:$0xff]  ;;  %v6592_v55 = vld [vmem:[#allocation29_spill] sm:$0xff] }
 0x15e   :  { %3835 = vrcp.f32 %v651_v51  ;;  %v6591_v51 = vld [vmem:[#allocation28_spill] sm:$0xff] }
 0x15f   :  { %3837 = vrcp.f32 %v658_v56  ;;  %v6596_v56 = vld [vmem:[#allocation33_spill] sm:$0xff] }
 0x169   :  { %v3832_v29 = vpop.eup %3831 }
 0x16a   :  { %v3834_v0 = vpop.eup %3833 }
 0x16b   :  { %v3836_v57 = vpop.eup %3835  ;;  %v662_v1 = vmul.f32 %v3834_v0, %v3832_v29  ;;  %v6593_v29 = vld [vmem:[#allocation30_spill] sm:$0xff]  ;;  %v6594_v0 = vld [vmem:[#allocation31_spill] sm:$0xff] }
 0x16c   :  { %v661_v60 = vmul.f32 0.0, %v3836_v57  ;;  %v3838_v4 = vpop.eup %3837  ;;  %v6595_v57 = vld [vmem:[#allocation32_spill] sm:$0xff] }
 0x16e   :  { %v4757_v3 = vadd.f32 %v662_v1, %v661_v60  ;;  %v6597_v60 = vld [vmem:[#allocation34_spill] sm:$0xff]  ;;  %v6598_v1 = vld [vmem:[#allocation35_spill] sm:$0xff] }
 0x170   :  { %3839 = vtanh.f32 %v4757_v3 }
 0x17d   :  { %v3840_v58 = vpop.eup %3839 }
 0x17e   :  { %v665_v47 = vmul.f32 %v3840_v58, %v3838_v4  ;;  %v6599_v4 = vld [vmem:[#allocation36_spill] sm:$0xff]  ;;  %v6600_v58 = vld [vmem:[#allocation37_spill] sm:$0xff] }
 0x180   :  { %666 = vst [vmem:[#allocation11] sm:$0xff] %v665_v47  ;;  %739 = vmatmul.mubr.f32.vlgmr.msra.gmra.mxu0 %v665_v47  ;;  %810 = vmatmul.mubr.f32.vlgmr.msra.gmra.mxu1 %v665_v47  ;;  %v6601_v47 = vmov 0.0  }
 0x181   :  { %854 = vmatpush1.msra.mxu0 %v4381_v5  ;;  %925 = vmatpush1.msra.mxu1 %v4383_v6 }
 0x182   :  { %855 = vmatprep.subr.mxu0 %v4385_v7  ;;  %926 = vmatprep.subr.mxu1 %v4387_v8 }
 0x183   :  { %856 = vmatpush1.msra.mxu0 %v4393_v9  ;;  %927 = vmatpush1.msra.mxu1 %v4395_v10 }
 0x184   :  { %857 = vmatprep.subr.mxu0 %v4401_v12  ;;  %928 = vmatprep.subr.mxu1 %v4403_v13 }
 0x185   :  { %858 = vmatpush1.msra.mxu0 %v4407_v14  ;;  %929 = vmatpush1.msra.mxu1 %v4409_v15 }
 0x186   :  { %859 = vmatprep.subr.mxu0 %v4411_v16  ;;  %930 = vmatprep.subr.mxu1 %v4413_v17 }
 0x187   :  { %860 = vmatpush1.msra.mxu0 %v4419_v18  ;;  %931 = vmatpush1.msra.mxu1 %v4421_v19 }
 0x188   :  { %861 = vmatprep.subr.mxu0 %v4427_v21  ;;  %932 = vmatprep.subr.mxu1 %v4429_v22 }
 0x189   :  { %862 = vmatpush1.msra.mxu0 %v4433_v23  ;;  %933 = vmatpush1.msra.mxu1 %v4435_v24 }
 0x18a   :  { %863 = vmatprep.subr.mxu0 %v4437_v25  ;;  %934 = vmatprep.subr.mxu1 %v4439_v26 }
 0x18b   :  { %864 = vmatpush1.msra.mxu0 %v4445_v27  ;;  %935 = vmatpush1.msra.mxu1 %v4447_v28 }
 0x18c   :  { %865 = vmatprep.subr.mxu0 %v4453_v30  ;;  %936 = vmatprep.subr.mxu1 %v4455_v31 }
 0x18d   :  { %866 = vmatpush1.msra.mxu0 %v4459_v32  ;;  %937 = vmatpush1.msra.mxu1 %v4461_v33 }
 0x18e   :  { %867 = vmatprep.subr.mxu0 %v4463_v34  ;;  %938 = vmatprep.subr.mxu1 %v4465_v35 }
 0x18f   :  { %868 = vmatpush1.msra.mxu0 %v4471_v36  ;;  %939 = vmatpush1.msra.mxu1 %v4473_v37 }
 0x190   :  { %869 = vmatprep.subr.mxu0 %v4479_v39  ;;  %940 = vmatprep.subr.mxu1 %v4481_v40 }
 0x191   :  { %870 = vmatpush1.msra.mxu0 %v4485_v41  ;;  %941 = vmatpush1.msra.mxu1 %v4487_v42 }
 0x192   :  { %871 = vmatprep.subr.mxu0 %v4489_v43  ;;  %942 = vmatprep.subr.mxu1 %v4491_v44 }
 0x193   :  { %872 = vmatpush1.msra.mxu0 %v4497_v45  ;;  %943 = vmatpush1.msra.mxu1 %v4499_v46 }
 0x194   :  { %873 = vmatprep.subr.mxu0 %v4505_v48  ;;  %944 = vmatprep.subr.mxu1 %v4507_v49 }
 0x195   :  { %874 = vmatpush1.msra.mxu0 %v4511_v50  ;;  %945 = vmatpush1.msra.mxu1 %v6581_v2 }
 0x196   :  { %875 = vmatprep.subr.mxu0 %v6582_v62  ;;  %946 = vmatprep.subr.mxu1 %v6583_v54 }
 0x197   :  { %876 = vmatpush1.msra.mxu0 %v6584_v53  ;;  %947 = vmatpush1.msra.mxu1 %v6585_v11 }
 0x198   :  { %877 = vmatprep.subr.mxu0 %v6586_v63  ;;  %948 = vmatprep.subr.mxu1 %v6587_v38  ;;  %v6607_v38 = vld [vmem:[#allocation40_spill] sm:$0xff] }
 0x199   :  { %878 = vmatpush1.msra.mxu0 %v6588_v20  ;;  %949 = vmatpush1.msra.mxu1 %v6589_v52  ;;  %v6606_v20 = vld [vmem:[#allocation42_spill] sm:$0xff] }
 0x19a   :  { %879 = vmatprep.subr.mxu0 %v6590_v61  ;;  %950 = vmatprep.subr.mxu1 %v6591_v51  ;;  %v6602_v51 = vld [vmem:[#allocation38_spill] sm:$0xff] }
 0x19b   :  { %880 = vmatpush1.msra.mxu0 %v6592_v55  ;;  %951 = vmatpush1.msra.mxu1 %v6593_v29  ;;  %v6603_v29 = vld [vmem:[#allocation16_spill] sm:$0xff] }
 0x19c   :  { %881 = vmatprep.subr.mxu0 %v6594_v0  ;;  %952 = vmatprep.subr.mxu1 %v6595_v57  ;;  %v6604_v0 = vld [vmem:[#allocation17_spill] sm:$0xff] }
 0x19d   :  { %882 = vmatpush1.msra.mxu0 %v6596_v56  ;;  %953 = vmatpush1.msra.mxu1 %v6597_v60 }
 0x19e   :  { %883 = vmatprep.subr.mxu0 %v6598_v1  ;;  %954 = vmatprep.subr.mxu1 %v6599_v4  ;;  %v6605_v1 = vld [vmem:[#allocation41_spill] sm:$0xff] }
 0x19f   :  { %884 = vmatpush1.msra.mxu0 %v6600_v58  ;;  %917 = vmatprep.mubr.f32.mxu0 %v6601_v47 }
 0x1a0   :  { %955 = vmatpush1.msra.mxu1 %v6602_v51  ;;  %988 = vmatprep.mubr.f32.mxu1 %v6601_v47 }
 0x1a1   :  { %1032 = vmatprep.subr.mxu0 %v6603_v29  ;;  %1103 = vmatprep.subr.mxu1 %v6604_v0 }
 0x240   :  { %v740_v57 = vpop.f32.mrf.mxu0  ;;  %v811_v4 = vpop.f32.mrf.mxu1 }
 0x241   :  { %v816_v56 = vadd.f32 %v740_v57, %v4681_v59  ;;  %v818_v47 = vadd.f32 %v811_v4, %v6607_v38 }
 0x242   :  { %v742_v60 = vpop.f32.mrf.mxu0  ;;  %v813_v52 = vpop.f32.mrf.mxu1 }
 0x243   :  { %v3768_v55 = vmul.f32 -1.442695, %v816_v56  ;;  %v817_v61 = vadd.f32 %v742_v60, %v6605_v1  ;;  %v819_v51 = vadd.f32 %v813_v52, %v6606_v20 }
 0x245   :  { %3841 = vpow2.f32 %v3768_v55  ;;  %v3769_v58 = vmul.f32 -1.442695, %v817_v61  ;;  %v3770_v63 = vmul.f32 -1.442695, %v819_v51 }
 0x247   :  { %3843 = vpow2.f32 %v3769_v58 }
 0x248   :  { %3845 = vtanh.f32 %v818_v47  ;;  %v6631_v47 = vld [vmem:[#allocation44_spill] sm:$0xff] }
 0x249   :  { %3847 = vpow2.f32 %v3770_v63  ;;  %v6630_v63 = vld [vmem:[#allocation46_spill] sm:$0xff] }
 0x252   :  { %v3842_v29 = vpop.eup %3841 }
 0x253   :  { %v823_v11 = vadd.f32 1.0, %v3842_v29 }
 0x254   :  { %v3844_v0 = vpop.eup %3843 }
 0x255   :  { %3849 = vrcp.f32 %v823_v11  ;;  %v829_v59 = vadd.f32 1.0, %v3844_v0  ;;  %v3846_v57 = vpop.eup %3845 }
 0x256   :  { %v3848_v56 = vpop.eup %3847 }
 0x257   :  { %3851 = vrcp.f32 %v829_v59  ;;  %v836_v1 = vadd.f32 1.0, %v3848_v56 }
 0x259   :  { %3853 = vrcp.f32 %v836_v1 }
 0x262   :  { %v3850_v55 = vpop.eup %3849 }
 0x263   :  { %v840_v60 = vmul.f32 %v3850_v55, %v3846_v57 }
 0x264   :  { %v3852_v61 = vpop.eup %3851 }
 0x265   :  { %v839_v58 = vmul.f32 %v3852_v61, %v4757_v3 }
 0x266   :  { %v3854_v38 = vpop.eup %3853 }
 0x267   :  { %v4831_v20 = vadd.f32 %v840_v60, %v839_v58 }
 0x269   :  { %3855 = vtanh.f32 %v4831_v20 }
 0x276   :  { %v3856_v52 = vpop.eup %3855 }
 0x277   :  { %v843_v51 = vmul.f32 %v3856_v52, %v3854_v38 }
 0x279   :  { %845 = vst [vmem:[#allocation11 + $0x8] sm:$0xff] %v843_v51  ;;  %918 = vmatmul.mubr.f32.vlgmr.msra.gmra.mxu0 %v843_v51  ;;  %989 = vmatmul.mubr.f32.vlgmr.msra.gmra.mxu1 %v843_v51 }
 0x27a   :  { %1033 = vmatpush1.msra.mxu0 %v4381_v5  ;;  %1104 = vmatpush1.msra.mxu1 %v4383_v6  ;;  %v6608_v5 = vld [vmem:[#allocation22_spill] sm:$0xff]  ;;  %v6609_v6 = vld [vmem:[#allocation23_spill] sm:$0xff] }
 0x27b   :  { %1034 = vmatprep.subr.mxu0 %v4385_v7  ;;  %1105 = vmatprep.subr.mxu1 %v4387_v8  ;;  %v6610_v7 = vld [vmem:[#allocation24_spill] sm:$0xff]  ;;  %v6611_v8 = vld [vmem:[#allocation25_spill] sm:$0xff] }
 0x27c   :  { %1035 = vmatpush1.msra.mxu0 %v4393_v9  ;;  %1106 = vmatpush1.msra.mxu1 %v4395_v10  ;;  %v6612_v9 = vld [vmem:[#allocation26_spill] sm:$0xff]  ;;  %v6613_v10 = vld [vmem:[#allocation27_spill] sm:$0xff] }
 0x27d   :  { %1036 = vmatprep.subr.mxu0 %v4401_v12  ;;  %1107 = vmatprep.subr.mxu1 %v4403_v13  ;;  %v6614_v12 = vld [vmem:[#allocation28_spill] sm:$0xff]  ;;  %v6615_v13 = vld [vmem:[#allocation29_spill] sm:$0xff] }
 0x27e   :  { %1037 = vmatpush1.msra.mxu0 %v4407_v14  ;;  %1108 = vmatpush1.msra.mxu1 %v4409_v15  ;;  %v6616_v14 = vld [vmem:[#allocation30_spill] sm:$0xff]  ;;  %v6617_v15 = vld [vmem:[#allocation31_spill] sm:$0xff] }
 0x27f   :  { %1038 = vmatprep.subr.mxu0 %v4411_v16  ;;  %1109 = vmatprep.subr.mxu1 %v4413_v17  ;;  %v6618_v16 = vld [vmem:[#allocation32_spill] sm:$0xff]  ;;  %v6619_v17 = vld [vmem:[#allocation33_spill] sm:$0xff] }
 0x280   :  { %1039 = vmatpush1.msra.mxu0 %v4419_v18  ;;  %1110 = vmatpush1.msra.mxu1 %v4421_v19  ;;  %v6620_v18 = vld [vmem:[#allocation34_spill] sm:$0xff]  ;;  %v6621_v19 = vld [vmem:[#allocation35_spill] sm:$0xff] }
 0x281   :  { %1040 = vmatprep.subr.mxu0 %v4427_v21  ;;  %1111 = vmatprep.subr.mxu1 %v4429_v22  ;;  %v6622_v21 = vld [vmem:[#allocation36_spill] sm:$0xff]  ;;  %v6623_v22 = vld [vmem:[#allocation37_spill] sm:$0xff] }
 0x282   :  { %1041 = vmatpush1.msra.mxu0 %v4433_v23  ;;  %1112 = vmatpush1.msra.mxu1 %v4435_v24  ;;  %v6624_v23 = vmov 0.0   ;;  %v6625_v24 = vld [vmem:[#allocation38_spill] sm:$0xff] }
 0x283   :  { %1042 = vmatprep.subr.mxu0 %v4437_v25  ;;  %1113 = vmatprep.subr.mxu1 %v4439_v26  ;;  %v4898_v25 = vld [vmem:[#allocation8 + $0x1e8] sm:$0xff]  ;;  %v4901_v26 = vld [vmem:[#allocation8 + $0x1f8] sm:$0xff] }
 0x284   :  { %1043 = vmatpush1.msra.mxu0 %v4445_v27  ;;  %1114 = vmatpush1.msra.mxu1 %v4447_v28  ;;  %6626 = vst [vmem:[#allocation18_spill] sm:$0xff] %v4898_v25  ;;  %6627 = vst [vmem:[#allocation19_spill] sm:$0xff] %v4901_v26  ;;  %v6628_v28 = vld [vmem:[#allocation43_spill] sm:$0xff] }
 0x285   :  { %1044 = vmatprep.subr.mxu0 %v4453_v30  ;;  %1115 = vmatprep.subr.mxu1 %v4455_v31 }
 0x286   :  { %1045 = vmatpush1.msra.mxu0 %v4459_v32  ;;  %1116 = vmatpush1.msra.mxu1 %v4461_v33  ;;  %v6629_v33 = vld [vmem:[#allocation45_spill] sm:$0xff] }
 0x287   :  { %1046 = vmatprep.subr.mxu0 %v4463_v34  ;;  %1117 = vmatprep.subr.mxu1 %v4465_v35 }
 0x288   :  { %1047 = vmatpush1.msra.mxu0 %v4471_v36  ;;  %1118 = vmatpush1.msra.mxu1 %v4473_v37 }
 0x289   :  { %1048 = vmatprep.subr.mxu0 %v4479_v39  ;;  %1119 = vmatprep.subr.mxu1 %v4481_v40 }
 0x28a   :  { %1049 = vmatpush1.msra.mxu0 %v4485_v41  ;;  %1120 = vmatpush1.msra.mxu1 %v4487_v42 }
 0x28b   :  { %1050 = vmatprep.subr.mxu0 %v4489_v43  ;;  %1121 = vmatprep.subr.mxu1 %v4491_v44 }
 0x28c   :  { %1051 = vmatpush1.msra.mxu0 %v4497_v45  ;;  %1122 = vmatpush1.msra.mxu1 %v4499_v46 }
 0x28d   :  { %1052 = vmatprep.subr.mxu0 %v4505_v48  ;;  %1123 = vmatprep.subr.mxu1 %v4507_v49 }
 0x28e   :  { %1053 = vmatpush1.msra.mxu0 %v4511_v50  ;;  %1124 = vmatpush1.msra.mxu1 %v6581_v2 }
 0x28f   :  { %1054 = vmatprep.subr.mxu0 %v6582_v62  ;;  %1125 = vmatprep.subr.mxu1 %v6583_v54 }
 0x290   :  { %1055 = vmatpush1.msra.mxu0 %v6584_v53  ;;  %1126 = vmatpush1.msra.mxu1 %v6608_v5 }
 0x291   :  { %1056 = vmatprep.subr.mxu0 %v6609_v6  ;;  %1127 = vmatprep.subr.mxu1 %v6610_v7 }
 0x292   :  { %1057 = vmatpush1.msra.mxu0 %v6611_v8  ;;  %1128 = vmatpush1.msra.mxu1 %v6612_v9 }
 0x293   :  { %1058 = vmatprep.subr.mxu0 %v6613_v10  ;;  %1129 = vmatprep.subr.mxu1 %v6614_v12 }
 0x294   :  { %1059 = vmatpush1.msra.mxu0 %v6615_v13  ;;  %1130 = vmatpush1.msra.mxu1 %v6616_v14 }
 0x295   :  { %1060 = vmatprep.subr.mxu0 %v6617_v15  ;;  %1131 = vmatprep.subr.mxu1 %v6618_v16 }
 0x296   :  { %1061 = vmatpush1.msra.mxu0 %v6619_v17  ;;  %1132 = vmatpush1.msra.mxu1 %v6620_v18 }
 0x297   :  { %1062 = vmatprep.subr.mxu0 %v6621_v19  ;;  %1133 = vmatprep.subr.mxu1 %v6622_v21 }
 0x298   :  { %1063 = vmatpush1.msra.mxu0 %v6623_v22  ;;  %1096 = vmatprep.mubr.f32.mxu0 %v6624_v23 }
 0x299   :  { %1134 = vmatpush1.msra.mxu1 %v6625_v24  ;;  %1167 = vmatprep.mubr.f32.mxu1 %v6624_v23 }
 0x29a   :  { %1211 = vmatprep.subr.mxu0 %v4898_v25  ;;  %1282 = vmatprep.subr.mxu1 %v4901_v26 }
 0x339   :  { %v919_v27 = vpop.f32.mrf.mxu0  ;;  %v990_v35 = vpop.f32.mrf.mxu1 }
 0x33a   :  { %v995_v30 = vadd.f32 %v919_v27, %v6628_v28  ;;  %v997_v29 = vadd.f32 %v990_v35, %v6631_v47  ;;  %v4924_v35 = vld [vmem:[#allocation8 + $0x1c0] sm:$0xff]  ;;  %v4939_v47 = vld [vmem:[#allocation8 + $0x1b0] sm:$0xff] }
 0x33b   :  { %v921_v31 = vpop.f32.mrf.mxu0  ;;  %v992_v11 = vpop.f32.mrf.mxu1 }
 0x33c   :  { %v3771_v32 = vmul.f32 -1.442695, %v995_v30  ;;  %v996_v34 = vadd.f32 %v921_v31, %v6629_v33  ;;  %v998_v4 = vadd.f32 %v992_v11, %v6630_v63  ;;  %v4915_v33 = vld [vmem:[#allocation8 + $0x1f0] sm:$0xff]  ;;  %v4930_v11 = vld [vmem:[#allocation8 + $0x1a8] sm:$0xff]  ;;  %v4933_v63 = vld [vmem:[#allocation8 + $0x1b8] sm:$0xff] }
 0x33e   :  { %3857 = vpow2.f32 %v3771_v32  ;;  %v3772_v3 = vmul.f32 -1.442695, %v996_v34  ;;  %v3773_v0 = vmul.f32 -1.442695, %v998_v4  ;;  %v4912_v32 = vld [vmem:[#allocation8 + $0x1e0] sm:$0xff]  ;;  %v4921_v34 = vld [vmem:[#allocation8 + $0x1d8] sm:$0xff] }
 0x33f   :  { %v4936_v4 = vld [vmem:[#allocation8 + $0x1a0] sm:$0xff] }
 0x340   :  { %3859 = vpow2.f32 %v3772_v3  ;;  %v4927_v3 = vld [vmem:[#allocation8 + $0x1d0] sm:$0xff] }
 0x341   :  { %3861 = vtanh.f32 %v997_v29  ;;  %v4942_v29 = vld [vmem:[#allocation8 + $0x188] sm:$0xff] }
 0x342   :  { %3863 = vpow2.f32 %v3773_v0  ;;  %v4945_v0 = vld [vmem:[#allocation8 + $0x198] sm:$0xff] }
 0x34b   :  { %v3858_v59 = vpop.eup %3857 }
 0x34c   :  { %v1002_v57 = vadd.f32 1.0, %v3858_v59  ;;  %v4948_v59 = vld [vmem:[#allocation8 + $0x180] sm:$0xff] }
 0x34d   :  { %v3860_v56 = vpop.eup %3859 }
 0x34e   :  { %3865 = vrcp.f32 %v1002_v57  ;;  %v1008_v55 = vadd.f32 1.0, %v3860_v56  ;;  %v3862_v60 = vpop.eup %3861  ;;  %v4951_v57 = vld [vmem:[#allocation8 + $0x190] sm:$0xff]  ;;  %v4954_v56 = vld [vmem:[#allocation8 + $0x168] sm:$0xff] }
 0x34f   :  { %v3864_v61 = vpop.eup %3863 }
 0x350   :  { %3867 = vrcp.f32 %v1008_v55  ;;  %v1015_v52 = vadd.f32 1.0, %v3864_v61  ;;  %v4957_v55 = vld [vmem:[#allocation8 + $0x178] sm:$0xff]  ;;  %v4963_v61 = vld [vmem:[#allocation8 + $0x170] sm:$0xff] }
 0x352   :  { %3869 = vrcp.f32 %v1015_v52  ;;  %v4975_v52 = vld [vmem:[#allocation8 + $0x150] sm:$0xff] }
 0x353   :  { %6633 = vst [vmem:[#allocation21_spill] sm:$0xff] %v4975_v52 }
 0x35b   :  { %v3866_v1 = vpop.eup %3865 }
 0x35c   :  { %v1019_v58 = vmul.f32 %v3866_v1, %v3862_v60  ;;  %v4960_v60 = vld [vmem:[#allocation8 + $0x160] sm:$0xff]  ;;  %v4966_v1 = vld [vmem:[#allocation8 + $0x148] sm:$0xff] }
 0x35d   :  { %v3868_v38 = vpop.eup %3867 }
 0x35e   :  { %v1018_v51 = vmul.f32 %v3868_v38, %v4831_v20  ;;  %v4918_v20 = vld [vmem:[#allocation8 + $0x1c8] sm:$0xff]  ;;  %v4972_v38 = vld [vmem:[#allocation8 + $0x140] sm:$0xff] }
 0x35f   :  { %v3870_v28 = vpop.eup %3869  ;;  %6632 = vst [vmem:[#allocation20_spill] sm:$0xff] %v4972_v38 }
 0x360   :  { %v4909_v27 = vadd.f32 %v1019_v58, %v1018_v51  ;;  %v4969_v58 = vld [vmem:[#allocation8 + $0x158] sm:$0xff]  ;;  %v4978_v51 = vld [vmem:[#allocation8 + $0x128] sm:$0xff] }
 0x362   :  { %3871 = vtanh.f32 %v4909_v27 }
 0x36f   :  { %v3872_v30 = vpop.eup %3871 }
 0x370   :  { %v1022_v31 = vmul.f32 %v3872_v30, %v3870_v28  ;;  %v4981_v28 = vld [vmem:[#allocation8 + $0x138] sm:$0xff]  ;;  %v4984_v30 = vld [vmem:[#allocation8 + $0x120] sm:$0xff] }
 0x372   :  { %1024 = vst [vmem:[#allocation11 + $0x10] sm:$0xff] %v1022_v31  ;;  %1097 = vmatmul.mubr.f32.vlgmr.msra.gmra.mxu0 %v1022_v31  ;;  %1168 = vmatmul.mubr.f32.vlgmr.msra.gmra.mxu1 %v1022_v31  ;;  %v4987_v31 = vld [vmem:[#allocation8 + $0x130] sm:$0xff] }
 0x373   :  { %1212 = vmatpush1.msra.mxu0 %v4912_v32  ;;  %1283 = vmatpush1.msra.mxu1 %v4915_v33 }
 0x374   :  { %1213 = vmatprep.subr.mxu0 %v4918_v20  ;;  %1284 = vmatprep.subr.mxu1 %v4921_v34 }
 0x375   :  { %1214 = vmatpush1.msra.mxu0 %v4924_v35  ;;  %1285 = vmatpush1.msra.mxu1 %v4927_v3 }
 0x376   :  { %1215 = vmatprep.subr.mxu0 %v4930_v11  ;;  %1286 = vmatprep.subr.mxu1 %v4933_v63 }
 0x377   :  { %1216 = vmatpush1.msra.mxu0 %v4936_v4  ;;  %1287 = vmatpush1.msra.mxu1 %v4939_v47 }
 0x378   :  { %1217 = vmatprep.subr.mxu0 %v4942_v29  ;;  %1288 = vmatprep.subr.mxu1 %v4945_v0 }
 0x379   :  { %1218 = vmatpush1.msra.mxu0 %v4948_v59  ;;  %1289 = vmatpush1.msra.mxu1 %v4951_v57 }
 0x37a   :  { %1219 = vmatprep.subr.mxu0 %v4954_v56  ;;  %1290 = vmatprep.subr.mxu1 %v4957_v55 }
 0x37b   :  { %1220 = vmatpush1.msra.mxu0 %v4960_v60  ;;  %1291 = vmatpush1.msra.mxu1 %v4963_v61 }
 0x37c   :  { %1221 = vmatprep.subr.mxu0 %v4966_v1  ;;  %1292 = vmatprep.subr.mxu1 %v4969_v58 }
 0x37d   :  { %1222 = vmatpush1.msra.mxu0 %v4972_v38  ;;  %1293 = vmatpush1.msra.mxu1 %v4975_v52  ;;  %v4990_v38 = vld [vmem:[#allocation8 + $0x108] sm:$0xff]  ;;  %v4993_v52 = vld [vmem:[#allocation8 + $0x118] sm:$0xff] }
 0x37e   :  { %1223 = vmatprep.subr.mxu0 %v4978_v51  ;;  %1294 = vmatprep.subr.mxu1 %v4981_v28 }
 0x37f   :  { %1224 = vmatpush1.msra.mxu0 %v4984_v30  ;;  %1295 = vmatpush1.msra.mxu1 %v4987_v31 }
 0x380   :  { %1225 = vmatprep.subr.mxu0 %v4990_v38  ;;  %1296 = vmatprep.subr.mxu1 %v4993_v52 }
 0x381   :  { %1226 = vmatpush1.msra.mxu0 %v4471_v36  ;;  %1297 = vmatpush1.msra.mxu1 %v4473_v37  ;;  %v6634_v37 = vld [vmem:[#allocation47_spill] sm:$0xff] }
 0x382   :  { %1227 = vmatprep.subr.mxu0 %v4479_v39  ;;  %1298 = vmatprep.subr.mxu1 %v4481_v40 }
 0x383   :  { %1228 = vmatpush1.msra.mxu0 %v4485_v41  ;;  %1299 = vmatpush1.msra.mxu1 %v4487_v42  ;;  %v6635_v42 = vld [vmem:[#allocation49_spill] sm:$0xff] }
 0x384   :  { %1229 = vmatprep.subr.mxu0 %v4489_v43  ;;  %1300 = vmatprep.subr.mxu1 %v4491_v44 }
 0x385   :  { %1230 = vmatpush1.msra.mxu0 %v4497_v45  ;;  %1301 = vmatpush1.msra.mxu1 %v4499_v46 }
 0x386   :  { %1231 = vmatprep.subr.mxu0 %v4505_v48  ;;  %1302 = vmatprep.subr.mxu1 %v4507_v49  ;;  %v6636_v48 = vld [vmem:[#allocation50_spill] sm:$0xff] }
 0x387   :  { %1232 = vmatpush1.msra.mxu0 %v4511_v50  ;;  %1303 = vmatpush1.msra.mxu1 %v6581_v2  ;;  %v6637_v50 = vld [vmem:[#allocation48_spill] sm:$0xff] }
 0x388   :  { %1233 = vmatprep.subr.mxu0 %v6582_v62  ;;  %1304 = vmatprep.subr.mxu1 %v6583_v54 }
 0x389   :  { %1234 = vmatpush1.msra.mxu0 %v6584_v53  ;;  %1305 = vmatpush1.msra.mxu1 %v6608_v5 }
 0x38a   :  { %1235 = vmatprep.subr.mxu0 %v6609_v6  ;;  %1306 = vmatprep.subr.mxu1 %v6610_v7 }
 0x38b   :  { %1236 = vmatpush1.msra.mxu0 %v6611_v8  ;;  %1307 = vmatpush1.msra.mxu1 %v6612_v9 }
 0x38c   :  { %1237 = vmatprep.subr.mxu0 %v6613_v10  ;;  %1308 = vmatprep.subr.mxu1 %v6614_v12 }
 0x38d   :  { %1238 = vmatpush1.msra.mxu0 %v6615_v13  ;;  %1309 = vmatpush1.msra.mxu1 %v6616_v14 }
 0x38e   :  { %1239 = vmatprep.subr.mxu0 %v6617_v15  ;;  %1310 = vmatprep.subr.mxu1 %v6618_v16 }
 0x38f   :  { %1240 = vmatpush1.msra.mxu0 %v6619_v17  ;;  %1311 = vmatpush1.msra.mxu1 %v6620_v18 }
 0x390   :  { %1241 = vmatprep.subr.mxu0 %v6621_v19  ;;  %1312 = vmatprep.subr.mxu1 %v6622_v21  ;;  %v6639_v19 = vld [vmem:[#allocation20_spill] sm:$0xff]  ;;  %v6640_v21 = vld [vmem:[#allocation21_spill] sm:$0xff] }
 0x391   :  { %1242 = vmatpush1.msra.mxu0 %v6623_v22  ;;  %1275 = vmatprep.mubr.f32.mxu0 %v6624_v23  ;;  %v5074_v22 = vld [vmem:[#allocation8 + $0x100] sm:$0xff] }
 0x392   :  { %1313 = vmatpush1.msra.mxu1 %v6625_v24  ;;  %1346 = vmatprep.mubr.f32.mxu1 %v6624_v23  ;;  %v5077_v24 = vld [vmem:[#allocation8 + $0x110] sm:$0xff] }
 0x393   :  { %1390 = vmatprep.subr.mxu0 %v4898_v25  ;;  %1461 = vmatprep.subr.mxu1 %v4901_v26 }
 0x432   :  { %v1098_v36 = vpop.f32.mrf.mxu0  ;;  %v1169_v44 = vpop.f32.mrf.mxu1 }
 0x433   :  { %v1174_v39 = vadd.f32 %v1098_v36, %v6634_v37  ;;  %v1176_v2 = vadd.f32 %v1169_v44, %v6637_v50  ;;  %v5083_v36 = vld [vmem:[#allocation8 + $0xf8] sm:$0xff]  ;;  %v5086_v37 = vld [vmem:[#allocation8 + $0xe0] sm:$0xff]  ;;  %v5104_v44 = vld [vmem:[#allocation8 + $0xa8] sm:$0xff] }
 0x434   :  { %v1100_v40 = vpop.f32.mrf.mxu0  ;;  %v1171_v46 = vpop.f32.mrf.mxu1  ;;  %v5119_v50 = vld [vmem:[#allocation8 + $0x98] sm:$0xff] }
 0x435   :  { %v3774_v41 = vmul.f32 -1.442695, %v1174_v39  ;;  %v1175_v43 = vadd.f32 %v1100_v40, %v6635_v42  ;;  %v1177_v49 = vadd.f32 %v1171_v46, %v6636_v48  ;;  %v5089_v39 = vld [vmem:[#allocation8 + $0xf0] sm:$0xff]  ;;  %v5092_v40 = vld [vmem:[#allocation8 + $0xc8] sm:$0xff]  ;;  %v5098_v42 = vld [vmem:[#allocation8 + $0xc0] sm:$0xff] }
 0x436   :  { %v5110_v46 = vld [vmem:[#allocation8 + $0xa0] sm:$0xff]  ;;  %v5113_v48 = vld [vmem:[#allocation8 + $0xb0] sm:$0xff] }
 0x437   :  { %3873 = vpow2.f32 %v3774_v41  ;;  %v3775_v45 = vmul.f32 -1.442695, %v1175_v43  ;;  %v3776_v62 = vmul.f32 -1.442695, %v1177_v49  ;;  %v5095_v41 = vld [vmem:[#allocation8 + $0xd8] sm:$0xff]  ;;  %v5101_v43 = vld [vmem:[#allocation8 + $0xd0] sm:$0xff] }
 0x438   :  { %v5116_v49 = vld [vmem:[#allocation8 + $0x88] sm:$0xff] }
 0x439   :  { %3875 = vpow2.f32 %v3775_v45  ;;  %v5107_v45 = vld [vmem:[#allocation8 + $0xb8] sm:$0xff] }
 0x43a   :  { %3877 = vtanh.f32 %v1176_v2  ;;  %v5122_v2 = vld [vmem:[#allocation8 + $0x80] sm:$0xff] }
 0x43b   :  { %3879 = vpow2.f32 %v3776_v62  ;;  %v5125_v62 = vld [vmem:[#allocation8 + $0x90] sm:$0xff] }
 0x43c   :  { %6641 = vst [vmem:[#allocation17_spill] sm:$0xff] %v5125_v62 }
 0x444   :  { %v3874_v54 = vpop.eup %3873 }
 0x445   :  { %v1181_v53 = vadd.f32 1.0, %v3874_v54  ;;  %v5128_v54 = vld [vmem:[#allocation8 + $0x68] sm:$0xff] }
 0x446   :  { %v3876_v5 = vpop.eup %3875  ;;  %6642 = vst [vmem:[#allocation41_spill] sm:$0xff] %v5128_v54 }
 0x447   :  { %3881 = vrcp.f32 %v1181_v53  ;;  %v1187_v6 = vadd.f32 1.0, %v3876_v5  ;;  %v3878_v7 = vpop.eup %3877  ;;  %v5131_v53 = vld [vmem:[#allocation8 + $0x78] sm:$0xff]  ;;  %v5134_v5 = vld [vmem:[#allocation8 + $0x60] sm:$0xff] }
 0x448   :  { %v3880_v8 = vpop.eup %3879  ;;  %6643 = vst [vmem:[#allocation42_spill] sm:$0xff] %v5131_v53  ;;  %6644 = vst [vmem:[#allocation40_spill] sm:$0xff] %v5134_v5 }
 0x449   :  { %3883 = vrcp.f32 %v1187_v6  ;;  %v1194_v13 = vadd.f32 1.0, %v3880_v8  ;;  %v5137_v6 = vld [vmem:[#allocation8 + $0x70] sm:$0xff]  ;;  %v5143_v8 = vld [vmem:[#allocation8 + $0x58] sm:$0xff] }
 0x44a   :  { %6645 = vst [vmem:[#allocation22_spill] sm:$0xff] %v5137_v6  ;;  %6647 = vst [vmem:[#allocation24_spill] sm:$0xff] %v5143_v8 }
 0x44b   :  { %3885 = vrcp.f32 %v1194_v13  ;;  %v5155_v13 = vld [vmem:[#allocation8 + $0x38] sm:$0xff] }
 0x44c   :  { %6651 = vst [vmem:[#allocation28_spill] sm:$0xff] %v5155_v13 }
 0x454   :  { %v3882_v9 = vpop.eup %3881 }
 0x455   :  { %v1198_v10 = vmul.f32 %v3882_v9, %v3878_v7  ;;  %v5140_v7 = vld [vmem:[#allocation8 + $0x48] sm:$0xff]  ;;  %v5146_v9 = vld [vmem:[#allocation8 + $0x40] sm:$0xff] }
 0x456   :  { %v3884_v12 = vpop.eup %3883  ;;  %6646 = vst [vmem:[#allocation23_spill] sm:$0xff] %v5140_v7  ;;  %6648 = vst [vmem:[#allocation25_spill] sm:$0xff] %v5146_v9 }
 0x457   :  { %v1197_v14 = vmul.f32 %v3884_v12, %v4909_v27  ;;  %v5080_v27 = vld [vmem:[#allocation8 + $0xe8] sm:$0xff] }
 0x458   :  { %v3886_v16 = vpop.eup %3885  ;;  %v5152_v12 = vld [vmem:[#allocation8 + $0x28] sm:$0xff] }
 0x459   :  { %v5039_v15 = vadd.f32 %v1198_v10, %v1197_v14  ;;  %v5149_v10 = vld [vmem:[#allocation8 + $0x50] sm:$0xff]  ;;  %6650 = vst [vmem:[#allocation27_spill] sm:$0xff] %v5152_v12  ;;  %v5158_v14 = vld [vmem:[#allocation8 + $0x20] sm:$0xff] }
 0x45a   :  { %6649 = vst [vmem:[#allocation26_spill] sm:$0xff] %v5149_v10  ;;  %6652 = vst [vmem:[#allocation29_spill] sm:$0xff] %v5158_v14 }
 0x45b   :  { %3887 = vtanh.f32 %v5039_v15 }
 0x468   :  { %v3888_v17 = vpop.eup %3887 }
 0x469   :  { %v5042_v18 = vmul.f32 %v3888_v17, %v3886_v16  ;;  %v5161_v16 = vld [vmem:[#allocation8 + $0x30] sm:$0xff]  ;;  %v5164_v17 = vld [vmem:[#allocation8 + $0x8] sm:$0xff] }
 0x46a   :  { %6653 = vst [vmem:[#allocation30_spill] sm:$0xff] %v5161_v16  ;;  %6654 = vst [vmem:[#allocation31_spill] sm:$0xff] %v5164_v17 }
 0x46b   :  { %6638 = vst [vmem:[#allocation16_spill] sm:$0xff] %v5042_v18  ;;  %1276 = vmatmul.mubr.f32.vlgmr.msra.gmra.mxu0 %v5042_v18  ;;  %1347 = vmatmul.mubr.f32.vlgmr.msra.gmra.mxu1 %v5042_v18  ;;  %v5167_v18 = vld [vmem:[#allocation8 + $0x18] sm:$0xff] }
 0x46c   :  { %1391 = vmatpush1.msra.mxu0 %v4912_v32  ;;  %1462 = vmatpush1.msra.mxu1 %v4915_v33  ;;  %6655 = vst [vmem:[#allocation32_spill] sm:$0xff] %v5167_v18 }
 0x46d   :  { %1392 = vmatprep.subr.mxu0 %v4918_v20  ;;  %1463 = vmatprep.subr.mxu1 %v4921_v34 }
 0x46e   :  { %1393 = vmatpush1.msra.mxu0 %v4924_v35  ;;  %1464 = vmatpush1.msra.mxu1 %v4927_v3 }
 0x46f   :  { %1394 = vmatprep.subr.mxu0 %v4930_v11  ;;  %1465 = vmatprep.subr.mxu1 %v4933_v63 }
 0x470   :  { %1395 = vmatpush1.msra.mxu0 %v4936_v4  ;;  %1466 = vmatpush1.msra.mxu1 %v4939_v47 }
 0x471   :  { %1396 = vmatprep.subr.mxu0 %v4942_v29  ;;  %1467 = vmatprep.subr.mxu1 %v4945_v0 }
 0x472   :  { %1397 = vmatpush1.msra.mxu0 %v4948_v59  ;;  %1468 = vmatpush1.msra.mxu1 %v4951_v57 }
 0x473   :  { %1398 = vmatprep.subr.mxu0 %v4954_v56  ;;  %1469 = vmatprep.subr.mxu1 %v4957_v55 }
 0x474   :  { %1399 = vmatpush1.msra.mxu0 %v4960_v60  ;;  %1470 = vmatpush1.msra.mxu1 %v4963_v61 }
 0x475   :  { %1400 = vmatprep.subr.mxu0 %v4966_v1  ;;  %1471 = vmatprep.subr.mxu1 %v4969_v58 }
 0x476   :  { %1401 = vmatpush1.msra.mxu0 %v6639_v19  ;;  %1472 = vmatpush1.msra.mxu1 %v6640_v21 }
 0x477   :  { %1402 = vmatprep.subr.mxu0 %v4978_v51  ;;  %1473 = vmatprep.subr.mxu1 %v4981_v28 }
 0x478   :  { %1403 = vmatpush1.msra.mxu0 %v4984_v30  ;;  %1474 = vmatpush1.msra.mxu1 %v4987_v31 }
 0x479   :  { %1404 = vmatprep.subr.mxu0 %v4990_v38  ;;  %1475 = vmatprep.subr.mxu1 %v4993_v52 }
 0x47a   :  { %1405 = vmatpush1.msra.mxu0 %v5074_v22  ;;  %1476 = vmatpush1.msra.mxu1 %v5077_v24 }
 0x47b   :  { %1406 = vmatprep.subr.mxu0 %v5080_v27  ;;  %1477 = vmatprep.subr.mxu1 %v5083_v36 }
 0x47c   :  { %1407 = vmatpush1.msra.mxu0 %v5086_v37  ;;  %1478 = vmatpush1.msra.mxu1 %v5089_v39 }
 0x47d   :  { %1408 = vmatprep.subr.mxu0 %v5092_v40  ;;  %1479 = vmatprep.subr.mxu1 %v5095_v41 }
 0x47e   :  { %1409 = vmatpush1.msra.mxu0 %v5098_v42  ;;  %1480 = vmatpush1.msra.mxu1 %v5101_v43 }
 0x47f   :  { %1410 = vmatprep.subr.mxu0 %v5104_v44  ;;  %1481 = vmatprep.subr.mxu1 %v5107_v45 }
 0x480   :  { %1411 = vmatpush1.msra.mxu0 %v5110_v46  ;;  %1482 = vmatpush1.msra.mxu1 %v5113_v48 }
 0x481   :  { %1412 = vmatprep.subr.mxu0 %v5116_v49  ;;  %1483 = vmatprep.subr.mxu1 %v5119_v50 }
 0x482   :  { %1413 = vmatpush1.msra.mxu0 %v5122_v2  ;;  %1484 = vmatpush1.msra.mxu1 %v5125_v62 }
 0x483   :  { %1414 = vmatprep.subr.mxu0 %v5128_v54  ;;  %1485 = vmatprep.subr.mxu1 %v5131_v53  ;;  %v6661_v53 = vld [vmem:[#allocation52_spill] sm:$0xff] }
 0x484   :  { %1415 = vmatpush1.msra.mxu0 %v5134_v5  ;;  %1486 = vmatpush1.msra.mxu1 %v5137_v6  ;;  %v6660_v5 = vld [vmem:[#allocation54_spill] sm:$0xff] }
 0x485   :  { %1416 = vmatprep.subr.mxu0 %v5140_v7  ;;  %1487 = vmatprep.subr.mxu1 %v5143_v8 }
 0x486   :  { %1417 = vmatpush1.msra.mxu0 %v5146_v9  ;;  %1488 = vmatpush1.msra.mxu1 %v5149_v10  ;;  %v6659_v9 = vld [vmem:[#allocation53_spill] sm:$0xff] }
 0x487   :  { %1418 = vmatprep.subr.mxu0 %v5152_v12  ;;  %1489 = vmatprep.subr.mxu1 %v5155_v13  ;;  %v5170_v12 = vld [vmem:[#allocation8] sm:$0xff]  ;;  %v5174_v13 = vld [vmem:[#allocation8 + $0x10] sm:$0xff] }
 0x488   :  { %1419 = vmatpush1.msra.mxu0 %v5158_v14  ;;  %1490 = vmatpush1.msra.mxu1 %v5161_v16  ;;  %6656 = vst [vmem:[#allocation33_spill] sm:$0xff] %v5170_v12  ;;  %6657 = vst [vmem:[#allocation34_spill] sm:$0xff] %v5174_v13  ;;  %v6658_v16 = vld [vmem:[#allocation51_spill] sm:$0xff] }
 0x489   :  { %1420 = vmatprep.subr.mxu0 %v5164_v17  ;;  %1491 = vmatprep.subr.mxu1 %v5167_v18 }
 0x48a   :  { %1421 = vmatpush1.msra.mxu0 %v5170_v12  ;;  %1454 = vmatprep.mubr.f32.mxu0 %v6624_v23 }
 0x48b   :  { %1492 = vmatpush1.msra.mxu1 %v5174_v13  ;;  %1525 = vmatprep.mubr.f32.mxu1 %v6624_v23 }
 0x48c   :  { %1569 = vmatprep.subr.mxu0 %v4898_v25  ;;  %1640 = vmatprep.subr.mxu1 %v4901_v26 }
 0x52b   :  { %v1277_v17 = vpop.f32.mrf.mxu0  ;;  %v1348_v12 = vpop.f32.mrf.mxu1 }
 0x52c   :  { %v1353_v14 = vadd.f32 %v1277_v17, %v6658_v16  ;;  %v1355_v23 = vadd.f32 %v1348_v12, %v6661_v53  ;;  %v6668_v12 = vld [vmem:[#allocation23_spill] sm:$0xff] }
 0x52d   :  { %v1279_v18 = vpop.f32.mrf.mxu0  ;;  %v1350_v6 = vpop.f32.mrf.mxu1 }
 0x52e   :  { %v3777_v10 = vmul.f32 -1.442695, %v1353_v14  ;;  %v1354_v8 = vadd.f32 %v1279_v18, %v6659_v9  ;;  %v1356_v13 = vadd.f32 %v1350_v6, %v6660_v5  ;;  %v6667_v6 = vld [vmem:[#allocation22_spill] sm:$0xff] }
 0x530   :  { %3889 = vpow2.f32 %v3777_v10  ;;  %v3778_v7 = vmul.f32 -1.442695, %v1354_v8  ;;  %v3779_v54 = vmul.f32 -1.442695, %v1356_v13  ;;  %v6669_v13 = vld [vmem:[#allocation24_spill] sm:$0xff] }
 0x532   :  { %3891 = vpow2.f32 %v3778_v7 }
 0x533   :  { %3893 = vtanh.f32 %v1355_v23 }
 0x534   :  { %3895 = vpow2.f32 %v3779_v54  ;;  %v6666_v54 = vld [vmem:[#allocation40_spill] sm:$0xff] }
 0x53d   :  { %v3890_v25 = vpop.eup %3889 }
 0x53e   :  { %v1360_v62 = vadd.f32 1.0, %v3890_v25 }
 0x53f   :  { %v3892_v26 = vpop.eup %3891 }
 0x540   :  { %3897 = vrcp.f32 %v1360_v62  ;;  %v1366_v16 = vadd.f32 1.0, %v3892_v26  ;;  %v3894_v14 = vpop.eup %3893  ;;  %v6663_v26 = vld [vmem:[#allocation17_spill] sm:$0xff]  ;;  %v6665_v62 = vld [vmem:[#allocation42_spill] sm:$0xff] }
 0x541   :  { %v3896_v18 = vpop.eup %3895 }
 0x542   :  { %3899 = vrcp.f32 %v1366_v16  ;;  %v1373_v7 = vadd.f32 1.0, %v3896_v18  ;;  %v6670_v16 = vld [vmem:[#allocation25_spill] sm:$0xff]  ;;  %v6672_v18 = vld [vmem:[#allocation27_spill] sm:$0xff] }
 0x544   :  { %3901 = vrcp.f32 %v1373_v7  ;;  %v6676_v7 = vld [vmem:[#allocation31_spill] sm:$0xff] }
 0x54d   :  { %v3898_v9 = vpop.eup %3897 }
 0x54e   :  { %v1377_v10 = vmul.f32 %v3898_v9, %v3894_v14  ;;  %v6671_v14 = vld [vmem:[#allocation26_spill] sm:$0xff]  ;;  %v6673_v9 = vld [vmem:[#allocation28_spill] sm:$0xff] }
 0x54f   :  { %v3900_v8 = vpop.eup %3899 }
 0x550   :  { %v1376_v17 = vmul.f32 %v3900_v8, %v5039_v15  ;;  %v6664_v15 = vld [vmem:[#allocation41_spill] sm:$0xff]  ;;  %v6675_v8 = vld [vmem:[#allocation30_spill] sm:$0xff] }
 0x551   :  { %v3902_v25 = vpop.eup %3901 }
 0x552   :  { %v5185_v5 = vadd.f32 %v1377_v10, %v1376_v17  ;;  %v6674_v10 = vld [vmem:[#allocation29_spill] sm:$0xff]  ;;  %v6677_v17 = vld [vmem:[#allocation32_spill] sm:$0xff] }
 0x554   :  { %3903 = vtanh.f32 %v5185_v5 }
 0x561   :  { %v3904_v23 = vpop.eup %3903 }
 0x562   :  { %v5188_v53 = vmul.f32 %v3904_v23, %v3902_v25  ;;  %v6678_v25 = vld [vmem:[#allocation33_spill] sm:$0xff]  ;;  %v6679_v23 = vmov 0.0  }
 0x564   :  { %6662 = vst [vmem:[#allocation35_spill] sm:$0xff] %v5188_v53  ;;  %1455 = vmatmul.mubr.f32.vlgmr.msra.gmra.mxu0 %v5188_v53  ;;  %1526 = vmatmul.mubr.f32.vlgmr.msra.gmra.mxu1 %v5188_v53  ;;  %v6680_v53 = vld [vmem:[#allocation34_spill] sm:$0xff] }
 0x565   :  { %1570 = vmatpush1.msra.mxu0 %v4912_v32  ;;  %1641 = vmatpush1.msra.mxu1 %v4915_v33 }
 0x566   :  { %1571 = vmatprep.subr.mxu0 %v4918_v20  ;;  %1642 = vmatprep.subr.mxu1 %v4921_v34 }
 0x567   :  { %1572 = vmatpush1.msra.mxu0 %v4924_v35  ;;  %1643 = vmatpush1.msra.mxu1 %v4927_v3 }
 0x568   :  { %1573 = vmatprep.subr.mxu0 %v4930_v11  ;;  %1644 = vmatprep.subr.mxu1 %v4933_v63 }
 0x569   :  { %1574 = vmatpush1.msra.mxu0 %v4936_v4  ;;  %1645 = vmatpush1.msra.mxu1 %v4939_v47 }
 0x56a   :  { %1575 = vmatprep.subr.mxu0 %v4942_v29  ;;  %1646 = vmatprep.subr.mxu1 %v4945_v0 }
 0x56b   :  { %1576 = vmatpush1.msra.mxu0 %v4948_v59  ;;  %1647 = vmatpush1.msra.mxu1 %v4951_v57 }
 0x56c   :  { %1577 = vmatprep.subr.mxu0 %v4954_v56  ;;  %1648 = vmatprep.subr.mxu1 %v4957_v55 }
 0x56d   :  { %1578 = vmatpush1.msra.mxu0 %v4960_v60  ;;  %1649 = vmatpush1.msra.mxu1 %v4963_v61 }
 0x56e   :  { %1579 = vmatprep.subr.mxu0 %v4966_v1  ;;  %1650 = vmatprep.subr.mxu1 %v4969_v58 }
 0x56f   :  { %1580 = vmatpush1.msra.mxu0 %v6639_v19  ;;  %1651 = vmatpush1.msra.mxu1 %v6640_v21 }
 0x570   :  { %1581 = vmatprep.subr.mxu0 %v4978_v51  ;;  %1652 = vmatprep.subr.mxu1 %v4981_v28 }
 0x571   :  { %1582 = vmatpush1.msra.mxu0 %v4984_v30  ;;  %1653 = vmatpush1.msra.mxu1 %v4987_v31 }
 0x572   :  { %1583 = vmatprep.subr.mxu0 %v4990_v38  ;;  %1654 = vmatprep.subr.mxu1 %v4993_v52 }
 0x573   :  { %1584 = vmatpush1.msra.mxu0 %v5074_v22  ;;  %1655 = vmatpush1.msra.mxu1 %v5077_v24 }
 0x574   :  { %1585 = vmatprep.subr.mxu0 %v5080_v27  ;;  %1656 = vmatprep.subr.mxu1 %v5083_v36 }
 0x575   :  { %1586 = vmatpush1.msra.mxu0 %v5086_v37  ;;  %1657 = vmatpush1.msra.mxu1 %v5089_v39 }
 0x576   :  { %1587 = vmatprep.subr.mxu0 %v5092_v40  ;;  %1658 = vmatprep.subr.mxu1 %v5095_v41 }
 0x577   :  { %1588 = vmatpush1.msra.mxu0 %v5098_v42  ;;  %1659 = vmatpush1.msra.mxu1 %v5101_v43 }
 0x578   :  { %1589 = vmatprep.subr.mxu0 %v5104_v44  ;;  %1660 = vmatprep.subr.mxu1 %v5107_v45 }
 0x579   :  { %1590 = vmatpush1.msra.mxu0 %v5110_v46  ;;  %1661 = vmatpush1.msra.mxu1 %v5113_v48 }
 0x57a   :  { %1591 = vmatprep.subr.mxu0 %v5116_v49  ;;  %1662 = vmatprep.subr.mxu1 %v5119_v50 }
 0x57b   :  { %1592 = vmatpush1.msra.mxu0 %v5122_v2  ;;  %1663 = vmatpush1.msra.mxu1 %v6663_v26 }
 0x57c   :  { %1593 = vmatprep.subr.mxu0 %v6664_v15  ;;  %1664 = vmatprep.subr.mxu1 %v6665_v62  ;;  %v6686_v62 = vld [vmem:[#allocation56_spill] sm:$0xff] }
 0x57d   :  { %1594 = vmatpush1.msra.mxu0 %v6666_v54  ;;  %1665 = vmatpush1.msra.mxu1 %v6667_v6  ;;  %v6685_v54 = vld [vmem:[#allocation58_spill] sm:$0xff] }
 0x57e   :  { %1595 = vmatprep.subr.mxu0 %v6668_v12  ;;  %1666 = vmatprep.subr.mxu1 %v6669_v13 }
 0x57f   :  { %1596 = vmatpush1.msra.mxu0 %v6670_v16  ;;  %1667 = vmatpush1.msra.mxu1 %v6671_v14  ;;  %v6681_v14 = vld [vmem:[#allocation18_spill] sm:$0xff] }
 0x580   :  { %1597 = vmatprep.subr.mxu0 %v6672_v18  ;;  %1668 = vmatprep.subr.mxu1 %v6673_v9  ;;  %v6682_v18 = vld [vmem:[#allocation19_spill] sm:$0xff] }
 0x581   :  { %1598 = vmatpush1.msra.mxu0 %v6674_v10  ;;  %1669 = vmatpush1.msra.mxu1 %v6675_v8  ;;  %v6683_v10 = vld [vmem:[#allocation55_spill] sm:$0xff] }
 0x582   :  { %1599 = vmatprep.subr.mxu0 %v6676_v7  ;;  %1670 = vmatprep.subr.mxu1 %v6677_v17  ;;  %v6684_v7 = vld [vmem:[#allocation57_spill] sm:$0xff] }
 0x583   :  { %1600 = vmatpush1.msra.mxu0 %v6678_v25  ;;  %1633 = vmatprep.mubr.f32.mxu0 %v6679_v23 }
 0x584   :  { %1671 = vmatpush1.msra.mxu1 %v6680_v53  ;;  %1704 = vmatprep.mubr.f32.mxu1 %v6679_v23 }
 0x585   :  { %1748 = vmatprep.subr.mxu0 %v6681_v14  ;;  %1819 = vmatprep.subr.mxu1 %v6682_v18 }
 0x624   :  { %v1456_v9 = vpop.f32.mrf.mxu0  ;;  %v1527_v17 = vpop.f32.mrf.mxu1 }
 0x625   :  { %v1532_v16 = vadd.f32 %v1456_v9, %v6683_v10  ;;  %v1534_v23 = vadd.f32 %v1527_v17, %v6686_v62 }
 0x626   :  { %v1458_v8 = vpop.f32.mrf.mxu0  ;;  %v1529_v6 = vpop.f32.mrf.mxu1 }
 0x627   :  { %v3780_v13 = vmul.f32 -1.442695, %v1532_v16  ;;  %v1533_v12 = vadd.f32 %v1458_v8, %v6684_v7  ;;  %v1535_v53 = vadd.f32 %v1529_v6, %v6685_v54 }
 0x629   :  { %3905 = vpow2.f32 %v3780_v13  ;;  %v3781_v25 = vmul.f32 -1.442695, %v1533_v12  ;;  %v3782_v15 = vmul.f32 -1.442695, %v1535_v53 }
 0x62b   :  { %3907 = vpow2.f32 %v3781_v25 }
 0x62c   :  { %3909 = vtanh.f32 %v1534_v23 }
 0x62d   :  { %3911 = vpow2.f32 %v3782_v15 }
 0x636   :  { %v3906_v14 = vpop.eup %3905 }
 0x637   :  { %v1539_v26 = vadd.f32 1.0, %v3906_v14  ;;  %v1989_v14 = vld [vmem:[#allocation6 + $0x3e0] sm:$0xff] }
 0x638   :  { %v3908_v18 = vpop.eup %3907 }
 0x639   :  { %3913 = vrcp.f32 %v1539_v26  ;;  %v1545_v9 = vadd.f32 1.0, %v3908_v18  ;;  %v3910_v16 = vpop.eup %3909  ;;  %v1991_v18 = vld [vmem:[#allocation6 + $0x3f0] sm:$0xff] }
 0x63a   :  { %v3912_v10 = vpop.eup %3911 }
 0x63b   :  { %3915 = vrcp.f32 %v1545_v9  ;;  %v1552_v7 = vadd.f32 1.0, %v3912_v10  ;;  %v1986_v9 = vld [vmem:[#allocation6 + $0x3c8] sm:$0xff]  ;;  %v1985_v10 = vld [vmem:[#allocation6 + $0x3c0] sm:$0xff] }
 0x63d   :  { %3917 = vrcp.f32 %v1552_v7  ;;  %v1981_v7 = vld [vmem:[#allocation6 + $0x3a0] sm:$0xff] }
 0x646   :  { %v3914_v13 = vpop.eup %3913 }
 0x647   :  { %v1556_v8 = vmul.f32 %v3914_v13, %v3910_v16  ;;  %v1988_v16 = vld [vmem:[#allocation6 + $0x3d8] sm:$0xff]  ;;  %v1987_v13 = vld [vmem:[#allocation6 + $0x3d0] sm:$0xff] }
 0x648   :  { %v3916_v12 = vpop.eup %3915 }
 0x649   :  { %v1555_v25 = vmul.f32 %v3916_v12, %v5185_v5  ;;  %v1984_v12 = vld [vmem:[#allocation6 + $0x3b8] sm:$0xff] }
 0x64a   :  { %v3918_v53 = vpop.eup %3917 }
 0x64b   :  { %v5263_v54 = vadd.f32 %v1556_v8, %v1555_v25  ;;  %v1982_v8 = vld [vmem:[#allocation6 + $0x3a8] sm:$0xff]  ;;  %v1983_v25 = vld [vmem:[#allocation6 + $0x3b0] sm:$0xff] }
 0x64d   :  { %3919 = vtanh.f32 %v5263_v54 }
 0x65a   :  { %v3920_v62 = vpop.eup %3919 }
 0x65b   :  { %v5266_v6 = vmul.f32 %v3920_v62, %v3918_v53  ;;  %v1980_v53 = vld [vmem:[#allocation6 + $0x398] sm:$0xff]  ;;  %v1977_v62 = vld [vmem:[#allocation6 + $0x380] sm:$0xff] }
 0x65d   :  { %1634 = vmatmul.mubr.f32.vlgmr.msra.gmra.mxu0 %v5266_v6  ;;  %1705 = vmatmul.mubr.f32.vlgmr.msra.gmra.mxu1 %v5266_v6 }
 0x65e   :  { %1749 = vmatpush1.msra.mxu0 %v4912_v32  ;;  %1820 = vmatpush1.msra.mxu1 %v4915_v33  ;;  %v6687_v32 = vld [vmem:[#allocation17_spill] sm:$0xff] }
 0x65f   :  { %1750 = vmatprep.subr.mxu0 %v4918_v20  ;;  %1821 = vmatprep.subr.mxu1 %v4921_v34  ;;  %v6688_v33 = vld [vmem:[#allocation41_spill] sm:$0xff]  ;;  %v6689_v20 = vld [vmem:[#allocation42_spill] sm:$0xff]  ;;  %v6690_v34 = vld [vmem:[#allocation40_spill] sm:$0xff] }
 0x660   :  { %1751 = vmatpush1.msra.mxu0 %v4924_v35  ;;  %1822 = vmatpush1.msra.mxu1 %v4927_v3  ;;  %v6691_v35 = vld [vmem:[#allocation22_spill] sm:$0xff]  ;;  %v6692_v3 = vld [vmem:[#allocation23_spill] sm:$0xff] }
 0x661   :  { %1752 = vmatprep.subr.mxu0 %v4930_v11  ;;  %1823 = vmatprep.subr.mxu1 %v4933_v63  ;;  %v6693_v11 = vld [vmem:[#allocation24_spill] sm:$0xff]  ;;  %v6694_v63 = vld [vmem:[#allocation25_spill] sm:$0xff] }
 0x662   :  { %1753 = vmatpush1.msra.mxu0 %v4936_v4  ;;  %1824 = vmatpush1.msra.mxu1 %v4939_v47  ;;  %v6695_v4 = vld [vmem:[#allocation26_spill] sm:$0xff]  ;;  %v6696_v47 = vld [vmem:[#allocation27_spill] sm:$0xff] }
 0x663   :  { %1754 = vmatprep.subr.mxu0 %v4942_v29  ;;  %1825 = vmatprep.subr.mxu1 %v4945_v0  ;;  %v6697_v29 = vld [vmem:[#allocation28_spill] sm:$0xff]  ;;  %v6698_v0 = vld [vmem:[#allocation29_spill] sm:$0xff] }
 0x664   :  { %1755 = vmatpush1.msra.mxu0 %v4948_v59  ;;  %1826 = vmatpush1.msra.mxu1 %v4951_v57  ;;  %v6699_v59 = vld [vmem:[#allocation30_spill] sm:$0xff]  ;;  %v6700_v57 = vld [vmem:[#allocation31_spill] sm:$0xff] }
 0x665   :  { %1756 = vmatprep.subr.mxu0 %v4954_v56  ;;  %1827 = vmatprep.subr.mxu1 %v4957_v55  ;;  %v6701_v56 = vld [vmem:[#allocation32_spill] sm:$0xff]  ;;  %v6702_v55 = vld [vmem:[#allocation33_spill] sm:$0xff] }
 0x666   :  { %1757 = vmatpush1.msra.mxu0 %v4960_v60  ;;  %1828 = vmatpush1.msra.mxu1 %v4963_v61  ;;  %v6703_v60 = vld [vmem:[#allocation34_spill] sm:$0xff]  ;;  %v6704_v61 = vmov 0.0  }
 0x667   :  { %1758 = vmatprep.subr.mxu0 %v4966_v1  ;;  %1829 = vmatprep.subr.mxu1 %v4969_v58  ;;  %v1990_v1 = vld [vmem:[#allocation6 + $0x3e8] sm:$0xff]  ;;  %v1992_v58 = vld [vmem:[#allocation6 + $0x3f8] sm:$0xff] }
 0x668   :  { %1759 = vmatpush1.msra.mxu0 %v6639_v19  ;;  %1830 = vmatpush1.msra.mxu1 %v6640_v21 }
 0x669   :  { %1760 = vmatprep.subr.mxu0 %v4978_v51  ;;  %1831 = vmatprep.subr.mxu1 %v4981_v28 }
 0x66a   :  { %1761 = vmatpush1.msra.mxu0 %v4984_v30  ;;  %1832 = vmatpush1.msra.mxu1 %v4987_v31  ;;  %v6706_v31 = vld [vmem:[#allocation61_spill] sm:$0xff] }
 0x66b   :  { %1762 = vmatprep.subr.mxu0 %v4990_v38  ;;  %1833 = vmatprep.subr.mxu1 %v4993_v52  ;;  %v6705_v52 = vld [vmem:[#allocation59_spill] sm:$0xff] }
 0x66c   :  { %1763 = vmatpush1.msra.mxu0 %v5074_v22  ;;  %1834 = vmatpush1.msra.mxu1 %v5077_v24 }
 0x66d   :  { %1764 = vmatprep.subr.mxu0 %v5080_v27  ;;  %1835 = vmatprep.subr.mxu1 %v5083_v36  ;;  %v6707_v27 = vld [vmem:[#allocation62_spill] sm:$0xff] }
 0x66e   :  { %1765 = vmatpush1.msra.mxu0 %v5086_v37  ;;  %1836 = vmatpush1.msra.mxu1 %v5089_v39  ;;  %v6708_v37 = vld [vmem:[#allocation60_spill] sm:$0xff] }
 0x66f   :  { %1766 = vmatprep.subr.mxu0 %v5092_v40  ;;  %1837 = vmatprep.subr.mxu1 %v5095_v41 }
 0x670   :  { %1767 = vmatpush1.msra.mxu0 %v5098_v42  ;;  %1838 = vmatpush1.msra.mxu1 %v5101_v43 }
 0x671   :  { %1768 = vmatprep.subr.mxu0 %v5104_v44  ;;  %1839 = vmatprep.subr.mxu1 %v5107_v45 }
 0x672   :  { %1769 = vmatpush1.msra.mxu0 %v5110_v46  ;;  %1840 = vmatpush1.msra.mxu1 %v5113_v48 }
 0x673   :  { %1770 = vmatprep.subr.mxu0 %v5116_v49  ;;  %1841 = vmatprep.subr.mxu1 %v5119_v50 }
 0x674   :  { %1771 = vmatpush1.msra.mxu0 %v5122_v2  ;;  %1842 = vmatpush1.msra.mxu1 %v6687_v32  ;;  %v1979_v32 = vld [vmem:[#allocation6 + $0x390] sm:$0xff] }
 0x675   :  { %1772 = vmatprep.subr.mxu0 %v6688_v33  ;;  %1843 = vmatprep.subr.mxu1 %v6689_v20  ;;  %v1974_v33 = vld [vmem:[#allocation6 + $0x368] sm:$0xff]  ;;  %v1976_v20 = vld [vmem:[#allocation6 + $0x378] sm:$0xff] }
 0x676   :  { %1773 = vmatpush1.msra.mxu0 %v6690_v34  ;;  %1844 = vmatpush1.msra.mxu1 %v6691_v35  ;;  %v1973_v34 = vld [vmem:[#allocation6 + $0x360] sm:$0xff]  ;;  %v1975_v35 = vld [vmem:[#allocation6 + $0x370] sm:$0xff] }
 0x677   :  { %1774 = vmatprep.subr.mxu0 %v6692_v3  ;;  %1845 = vmatprep.subr.mxu1 %v6693_v11  ;;  %v1970_v3 = vld [vmem:[#allocation6 + $0x348] sm:$0xff]  ;;  %v1972_v11 = vld [vmem:[#allocation6 + $0x358] sm:$0xff] }
 0x678   :  { %1775 = vmatpush1.msra.mxu0 %v6694_v63  ;;  %1846 = vmatpush1.msra.mxu1 %v6695_v4  ;;  %v1969_v63 = vld [vmem:[#allocation6 + $0x340] sm:$0xff]  ;;  %v1971_v4 = vld [vmem:[#allocation6 + $0x350] sm:$0xff] }
 0x679   :  { %1776 = vmatprep.subr.mxu0 %v6696_v47  ;;  %1847 = vmatprep.subr.mxu1 %v6697_v29  ;;  %v1966_v47 = vld [vmem:[#allocation6 + $0x328] sm:$0xff]  ;;  %v1968_v29 = vld [vmem:[#allocation6 + $0x338] sm:$0xff] }
 0x67a   :  { %1777 = vmatpush1.msra.mxu0 %v6698_v0  ;;  %1848 = vmatpush1.msra.mxu1 %v6699_v59  ;;  %v1965_v0 = vld [vmem:[#allocation6 + $0x320] sm:$0xff]  ;;  %v1967_v59 = vld [vmem:[#allocation6 + $0x330] sm:$0xff] }
 0x67b   :  { %1778 = vmatprep.subr.mxu0 %v6700_v57  ;;  %1849 = vmatprep.subr.mxu1 %v6701_v56  ;;  %v1962_v57 = vld [vmem:[#allocation6 + $0x308] sm:$0xff]  ;;  %v1964_v56 = vld [vmem:[#allocation6 + $0x318] sm:$0xff] }
 0x67c   :  { %1779 = vmatpush1.msra.mxu0 %v6702_v55  ;;  %1850 = vmatpush1.msra.mxu1 %v6703_v60  ;;  %v1961_v55 = vld [vmem:[#allocation6 + $0x300] sm:$0xff]  ;;  %v1963_v60 = vld [vmem:[#allocation6 + $0x310] sm:$0xff] }
 0x67d   :  { %1812 = vmatprep.mubr.f32.mxu0 %v6704_v61  ;;  %1883 = vmatprep.mubr.f32.mxu1 %v6704_v61 }
 0x67e   :  { %2016 = vmatprep.subr.mxu0 %v1990_v1  ;;  %2129 = vmatprep.subr.mxu1 %v1992_v58  ;;  %v1958_v1 = vld [vmem:[#allocation6 + $0x2e8] sm:$0xff]  ;;  %v1960_v58 = vld [vmem:[#allocation6 + $0x2f8] sm:$0xff] }
 0x71d   :  { %v1635_v38 = vpop.f32.mrf.mxu0  ;;  %v1706_v21 = vpop.f32.mrf.mxu1 }
 0x71e   :  { %v1711_v51 = vadd.f32 %v1635_v38, %v6705_v52  ;;  %v1713_v39 = vadd.f32 %v1706_v21, %v6708_v37  ;;  %v1957_v38 = vld [vmem:[#allocation6 + $0x2e0] sm:$0xff]  ;;  %v1959_v52 = vld [vmem:[#allocation6 + $0x2f0] sm:$0xff]  ;;  %v1952_v21 = vld [vmem:[#allocation6 + $0x2b8] sm:$0xff] }
 0x71f   :  { %v1637_v28 = vpop.f32.mrf.mxu0  ;;  %v1708_v24 = vpop.f32.mrf.mxu1  ;;  %v1945_v37 = vld [vmem:[#allocation6 + $0x280] sm:$0xff] }
 0x720   :  { %v3783_v30 = vmul.f32 -1.442695, %v1711_v51  ;;  %v1712_v19 = vadd.f32 %v1637_v28, %v6706_v31  ;;  %v1714_v36 = vadd.f32 %v1708_v24, %v6707_v27  ;;  %v1954_v51 = vld [vmem:[#allocation6 + $0x2c8] sm:$0xff]  ;;  %v1956_v28 = vld [vmem:[#allocation6 + $0x2d8] sm:$0xff]  ;;  %v1955_v31 = vld [vmem:[#allocation6 + $0x2d0] sm:$0xff] }
 0x721   :  { %v1951_v24 = vld [vmem:[#allocation6 + $0x2b0] sm:$0xff]  ;;  %v1946_v27 = vld [vmem:[#allocation6 + $0x288] sm:$0xff] }
 0x722   :  { %3921 = vpow2.f32 %v3783_v30  ;;  %v3784_v22 = vmul.f32 -1.442695, %v1712_v19  ;;  %v3785_v40 = vmul.f32 -1.442695, %v1714_v36  ;;  %v1953_v30 = vld [vmem:[#allocation6 + $0x2c0] sm:$0xff]  ;;  %v1950_v19 = vld [vmem:[#allocation6 + $0x2a8] sm:$0xff] }
 0x723   :  { %v1948_v36 = vld [vmem:[#allocation6 + $0x298] sm:$0xff] }
 0x724   :  { %3923 = vpow2.f32 %v3784_v22  ;;  %v1949_v22 = vld [vmem:[#allocation6 + $0x2a0] sm:$0xff] }
 0x725   :  { %3925 = vtanh.f32 %v1713_v39  ;;  %v1947_v39 = vld [vmem:[#allocation6 + $0x290] sm:$0xff] }
 0x726   :  { %3927 = vpow2.f32 %v3785_v40  ;;  %v1942_v40 = vld [vmem:[#allocation6 + $0x268] sm:$0xff] }
 0x72f   :  { %v3922_v41 = vpop.eup %3921 }
 0x730   :  { %v1718_v42 = vadd.f32 1.0, %v3922_v41  ;;  %v1944_v41 = vld [vmem:[#allocation6 + $0x278] sm:$0xff] }
 0x731   :  { %v3924_v43 = vpop.eup %3923 }
 0x732   :  { %3929 = vrcp.f32 %v1718_v42  ;;  %v1724_v44 = vadd.f32 1.0, %v3924_v43  ;;  %v3926_v45 = vpop.eup %3925  ;;  %v1941_v42 = vld [vmem:[#allocation6 + $0x260] sm:$0xff]  ;;  %v1943_v43 = vld [vmem:[#allocation6 + $0x270] sm:$0xff] }
 0x733   :  { %v3928_v46 = vpop.eup %3927 }
 0x734   :  { %3931 = vrcp.f32 %v1724_v44  ;;  %v1731_v2 = vadd.f32 1.0, %v3928_v46  ;;  %v1938_v44 = vld [vmem:[#allocation6 + $0x248] sm:$0xff]  ;;  %v1937_v46 = vld [vmem:[#allocation6 + $0x240] sm:$0xff] }
 0x736   :  { %3933 = vrcp.f32 %v1731_v2  ;;  %v1933_v2 = vld [vmem:[#allocation6 + $0x220] sm:$0xff] }
 0x73f   :  { %v3930_v48 = vpop.eup %3929 }
 0x740   :  { %v1735_v49 = vmul.f32 %v3930_v48, %v3926_v45  ;;  %v1940_v45 = vld [vmem:[#allocation6 + $0x258] sm:$0xff]  ;;  %v1939_v48 = vld [vmem:[#allocation6 + $0x250] sm:$0xff] }
 0x741   :  { %v3932_v50 = vpop.eup %3931 }
 0x742   :  { %v1734_v5 = vmul.f32 %v3932_v50, %v5263_v54  ;;  %v1978_v54 = vld [vmem:[#allocation6 + $0x388] sm:$0xff]  ;;  %v1936_v50 = vld [vmem:[#allocation6 + $0x238] sm:$0xff] }
 0x743   :  { %v3934_v15 = vpop.eup %3933 }
 0x744   :  { %v5339_v26 = vadd.f32 %v1735_v49, %v1734_v5  ;;  %v1934_v49 = vld [vmem:[#allocation6 + $0x228] sm:$0xff]  ;;  %v1935_v5 = vld [vmem:[#allocation6 + $0x230] sm:$0xff] }
 0x746   :  { %3935 = vtanh.f32 %v5339_v26 }
 0x753   :  { %v3936_v17 = vpop.eup %3935 }
 0x754   :  { %v5342_v23 = vmul.f32 %v3936_v17, %v3934_v15  ;;  %v1930_v15 = vld [vmem:[#allocation6 + $0x208] sm:$0xff]  ;;  %v1932_v17 = vld [vmem:[#allocation6 + $0x218] sm:$0xff] }
 0x756   :  { %1813 = vmatmul.mubr.f32.vlgmr.msra.gmra.mxu0 %v5342_v23  ;;  %1884 = vmatmul.mubr.f32.vlgmr.msra.gmra.mxu1 %v5342_v23 }
 0x757   :  { %2017 = vmatpush1.msra.mxu0 %v1989_v14  ;;  %2130 = vmatpush1.msra.mxu1 %v1991_v18  ;;  %v1929_v14 = vld [vmem:[#allocation6 + $0x200] sm:$0xff]  ;;  %v1931_v18 = vld [vmem:[#allocation6 + $0x210] sm:$0xff] }
 0x758   :  { %2018 = vmatprep.subr.mxu0 %v1986_v9  ;;  %2131 = vmatprep.subr.mxu1 %v1988_v16  ;;  %v1920_v9 = vld [vmem:[#allocation11] sm:$0xff]  ;;  %v1921_v16 = vld [vmem:[#allocation11 + $0x8] sm:$0xff] }
 0x759   :  { %2019 = vmatpush1.msra.mxu0 %v1985_v10  ;;  %2132 = vmatpush1.msra.mxu1 %v1987_v13  ;;  %v1922_v10 = vld [vmem:[#allocation11 + $0x10] sm:$0xff]  ;;  %v6709_v13 = vld [vmem:[#allocation16_spill] sm:$0xff] }
 0x75a   :  { %2020 = vmatprep.subr.mxu0 %v1982_v8  ;;  %2133 = vmatprep.subr.mxu1 %v1984_v12  ;;  %v6710_v8 = vld [vmem:[#allocation35_spill] sm:$0xff]  ;;  %v5370_v12 = vld [vmem:[#allocation8 + $0x3e8] sm:$0xff] }
 0x75b   :  { %2021 = vmatpush1.msra.mxu0 %v1981_v7  ;;  %2134 = vmatpush1.msra.mxu1 %v1983_v25  ;;  %6711 = vst [vmem:[#allocation36_spill] sm:$0xff] %v5370_v12  ;;  %v5372_v7 = vld [vmem:[#allocation8 + $0x3f8] sm:$0xff]  ;;  %v5378_v25 = vld [vmem:[#allocation8 + $0x3f0] sm:$0xff] }
 0x75c   :  { %2022 = vmatprep.subr.mxu0 %v1978_v54  ;;  %2135 = vmatprep.subr.mxu1 %v1980_v53  ;;  %6712 = vst [vmem:[#allocation37_spill] sm:$0xff] %v5372_v7  ;;  %v5384_v54 = vld [vmem:[#allocation8 + $0x3d8] sm:$0xff]  ;;  %v5388_v53 = vld [vmem:[#allocation8 + $0x3c0] sm:$0xff] }
 0x75d   :  { %2023 = vmatpush1.msra.mxu0 %v1977_v62  ;;  %2136 = vmatpush1.msra.mxu1 %v1979_v32  ;;  %v5390_v62 = vld [vmem:[#allocation8 + $0x3d0] sm:$0xff]  ;;  %v5394_v32 = vld [vmem:[#allocation8 + $0x3a8] sm:$0xff] }
 0x75e   :  { %2024 = vmatprep.subr.mxu0 %v1974_v33  ;;  %2137 = vmatprep.subr.mxu1 %v1976_v20  ;;  %v5396_v33 = vld [vmem:[#allocation8 + $0x3b8] sm:$0xff]  ;;  %v5400_v20 = vld [vmem:[#allocation8 + $0x3a0] sm:$0xff] }
 0x75f   :  { %2025 = vmatpush1.msra.mxu0 %v1973_v34  ;;  %2138 = vmatpush1.msra.mxu1 %v1975_v35  ;;  %v5402_v34 = vld [vmem:[#allocation8 + $0x3b0] sm:$0xff]  ;;  %v5406_v35 = vld [vmem:[#allocation8 + $0x388] sm:$0xff] }
 0x760   :  { %2026 = vmatprep.subr.mxu0 %v1970_v3  ;;  %2139 = vmatprep.subr.mxu1 %v1972_v11  ;;  %v5408_v3 = vld [vmem:[#allocation8 + $0x398] sm:$0xff]  ;;  %v5412_v11 = vld [vmem:[#allocation8 + $0x380] sm:$0xff] }
 0x761   :  { %2027 = vmatpush1.msra.mxu0 %v1969_v63  ;;  %2140 = vmatpush1.msra.mxu1 %v1971_v4  ;;  %v5414_v63 = vld [vmem:[#allocation8 + $0x390] sm:$0xff]  ;;  %v5418_v4 = vld [vmem:[#allocation8 + $0x368] sm:$0xff] }
 0x762   :  { %2028 = vmatprep.subr.mxu0 %v1966_v47  ;;  %2141 = vmatprep.subr.mxu1 %v1968_v29  ;;  %v5420_v47 = vld [vmem:[#allocation8 + $0x378] sm:$0xff]  ;;  %v5424_v29 = vld [vmem:[#allocation8 + $0x360] sm:$0xff] }
 0x763   :  { %2029 = vmatpush1.msra.mxu0 %v1965_v0  ;;  %2142 = vmatpush1.msra.mxu1 %v1967_v59  ;;  %v5426_v0 = vld [vmem:[#allocation8 + $0x370] sm:$0xff]  ;;  %v5430_v59 = vld [vmem:[#allocation8 + $0x348] sm:$0xff] }
 0x764   :  { %2030 = vmatprep.subr.mxu0 %v1962_v57  ;;  %2143 = vmatprep.subr.mxu1 %v1964_v56  ;;  %v5432_v57 = vld [vmem:[#allocation8 + $0x358] sm:$0xff]  ;;  %v5436_v56 = vld [vmem:[#allocation8 + $0x340] sm:$0xff] }
 0x765   :  { %2031 = vmatpush1.msra.mxu0 %v1961_v55  ;;  %2144 = vmatpush1.msra.mxu1 %v1963_v60  ;;  %v5438_v55 = vld [vmem:[#allocation8 + $0x350] sm:$0xff]  ;;  %v5442_v60 = vld [vmem:[#allocation8 + $0x328] sm:$0xff] }
 0x766   :  { %2032 = vmatprep.subr.mxu0 %v1958_v1  ;;  %2145 = vmatprep.subr.mxu1 %v1960_v58  ;;  %v5444_v1 = vld [vmem:[#allocation8 + $0x338] sm:$0xff]  ;;  %v5448_v58 = vld [vmem:[#allocation8 + $0x320] sm:$0xff] }
 0x767   :  { %2033 = vmatpush1.msra.mxu0 %v1957_v38  ;;  %2146 = vmatpush1.msra.mxu1 %v1959_v52  ;;  %v5450_v38 = vld [vmem:[#allocation8 + $0x330] sm:$0xff]  ;;  %v5454_v52 = vld [vmem:[#allocation8 + $0x308] sm:$0xff] }
 0x768   :  { %2034 = vmatprep.subr.mxu0 %v1954_v51  ;;  %2147 = vmatprep.subr.mxu1 %v1956_v28  ;;  %v5456_v51 = vld [vmem:[#allocation8 + $0x318] sm:$0xff]  ;;  %v5460_v28 = vld [vmem:[#allocation8 + $0x300] sm:$0xff] }
 0x769   :  { %2035 = vmatpush1.msra.mxu0 %v1953_v30  ;;  %2148 = vmatpush1.msra.mxu1 %v1955_v31  ;;  %v5462_v30 = vld [vmem:[#allocation8 + $0x310] sm:$0xff]  ;;  %v5466_v31 = vld [vmem:[#allocation8 + $0x2e8] sm:$0xff] }
 0x76a   :  { %2036 = vmatprep.subr.mxu0 %v1950_v19  ;;  %2149 = vmatprep.subr.mxu1 %v1952_v21  ;;  %v5468_v19 = vld [vmem:[#allocation8 + $0x2f8] sm:$0xff]  ;;  %v5472_v21 = vld [vmem:[#allocation8 + $0x2e0] sm:$0xff] }
 0x76b   :  { %2037 = vmatpush1.msra.mxu0 %v1949_v22  ;;  %2150 = vmatpush1.msra.mxu1 %v1951_v24  ;;  %v5474_v22 = vld [vmem:[#allocation8 + $0x2f0] sm:$0xff]  ;;  %v5478_v24 = vld [vmem:[#allocation8 + $0x2c8] sm:$0xff] }
 0x76c   :  { %2038 = vmatprep.subr.mxu0 %v1946_v27  ;;  %2151 = vmatprep.subr.mxu1 %v1948_v36  ;;  %v5480_v27 = vld [vmem:[#allocation8 + $0x2d8] sm:$0xff]  ;;  %v5484_v36 = vld [vmem:[#allocation8 + $0x2c0] sm:$0xff] }
 0x76d   :  { %2039 = vmatpush1.msra.mxu0 %v1945_v37  ;;  %2152 = vmatpush1.msra.mxu1 %v1947_v39  ;;  %v5486_v37 = vld [vmem:[#allocation8 + $0x2d0] sm:$0xff]  ;;  %v5490_v39 = vld [vmem:[#allocation8 + $0x2a8] sm:$0xff] }
 0x76e   :  { %2040 = vmatprep.subr.mxu0 %v1942_v40  ;;  %2153 = vmatprep.subr.mxu1 %v1944_v41  ;;  %v5492_v40 = vld [vmem:[#allocation8 + $0x2b8] sm:$0xff]  ;;  %v5496_v41 = vld [vmem:[#allocation8 + $0x2a0] sm:$0xff] }
 0x76f   :  { %2041 = vmatpush1.msra.mxu0 %v1941_v42  ;;  %2154 = vmatpush1.msra.mxu1 %v1943_v43  ;;  %v5498_v42 = vld [vmem:[#allocation8 + $0x2b0] sm:$0xff]  ;;  %v5502_v43 = vld [vmem:[#allocation8 + $0x288] sm:$0xff] }
 0x770   :  { %2042 = vmatprep.subr.mxu0 %v1938_v44  ;;  %2155 = vmatprep.subr.mxu1 %v1940_v45  ;;  %6713 = vst [vmem:[#allocation38_spill] sm:$0xff] %v5498_v42  ;;  %6714 = vst [vmem:[#allocation43_spill] sm:$0xff] %v5502_v43  ;;  %v5504_v44 = vld [vmem:[#allocation8 + $0x298] sm:$0xff]  ;;  %v5508_v45 = vld [vmem:[#allocation8 + $0x280] sm:$0xff] }
 0x771   :  { %2043 = vmatpush1.msra.mxu0 %v1937_v46  ;;  %2156 = vmatpush1.msra.mxu1 %v1939_v48  ;;  %6715 = vst [vmem:[#allocation45_spill] sm:$0xff] %v5504_v44  ;;  %6716 = vst [vmem:[#allocation46_spill] sm:$0xff] %v5508_v45  ;;  %v5510_v46 = vld [vmem:[#allocation8 + $0x290] sm:$0xff]  ;;  %v5514_v48 = vld [vmem:[#allocation8 + $0x268] sm:$0xff] }
 0x772   :  { %2044 = vmatprep.subr.mxu0 %v1934_v49  ;;  %2157 = vmatprep.subr.mxu1 %v1936_v50  ;;  %6717 = vst [vmem:[#allocation44_spill] sm:$0xff] %v5510_v46  ;;  %6718 = vst [vmem:[#allocation47_spill] sm:$0xff] %v5514_v48  ;;  %v5516_v49 = vld [vmem:[#allocation8 + $0x278] sm:$0xff]  ;;  %v5520_v50 = vld [vmem:[#allocation8 + $0x260] sm:$0xff] }
 0x773   :  { %2045 = vmatpush1.msra.mxu0 %v1933_v2  ;;  %2158 = vmatpush1.msra.mxu1 %v1935_v5  ;;  %6719 = vst [vmem:[#allocation49_spill] sm:$0xff] %v5516_v49  ;;  %6720 = vst [vmem:[#allocation50_spill] sm:$0xff] %v5520_v50  ;;  %v5522_v2 = vld [vmem:[#allocation8 + $0x270] sm:$0xff]  ;;  %v5526_v5 = vld [vmem:[#allocation8 + $0x248] sm:$0xff] }
 0x774   :  { %2046 = vmatprep.subr.mxu0 %v1930_v15  ;;  %2159 = vmatprep.subr.mxu1 %v1932_v17  ;;  %6721 = vst [vmem:[#allocation48_spill] sm:$0xff] %v5522_v2  ;;  %6722 = vst [vmem:[#allocation20_spill] sm:$0xff] %v5526_v5  ;;  %v5528_v15 = vld [vmem:[#allocation8 + $0x258] sm:$0xff]  ;;  %v5532_v17 = vld [vmem:[#allocation8 + $0x240] sm:$0xff] }
 0x775   :  { %2047 = vmatpush1.msra.mxu0 %v1929_v14  ;;  %2080 = vmatprep.mubr.f32.mxu0 %v6704_v61  ;;  %6723 = vst [vmem:[#allocation21_spill] sm:$0xff] %v5528_v15  ;;  %6724 = vst [vmem:[#allocation51_spill] sm:$0xff] %v5532_v17  ;;  %v5534_v14 = vld [vmem:[#allocation8 + $0x250] sm:$0xff] }
 0x776   :  { %2160 = vmatpush1.msra.mxu1 %v1931_v18  ;;  %2193 = vmatprep.mubr.f32.mxu1 %v6704_v61  ;;  %6725 = vst [vmem:[#allocation53_spill] sm:$0xff] %v5534_v14  ;;  %v5538_v18 = vld [vmem:[#allocation8 + $0x228] sm:$0xff] }
 0x777   :  { %2081 = vmatmul.mubr.f32.vlgmr.msra.gmra.mxu0 %v1920_v9  ;;  %2194 = vmatmul.mubr.f32.vlgmr.msra.gmra.mxu1 %v1920_v9  ;;  %6726 = vst [vmem:[#allocation54_spill] sm:$0xff] %v5538_v18  ;;  %v5540_v9 = vld [vmem:[#allocation8 + $0x238] sm:$0xff] }
 0x778   :  { %2086 = vmatprep.mubr.f32.mxu0 %v6704_v61  ;;  %2199 = vmatprep.mubr.f32.mxu1 %v6704_v61  ;;  %6727 = vst [vmem:[#allocation52_spill] sm:$0xff] %v5540_v9 }
 0x779   :  { %2343 = vmatprep.subr.mxu0 %v5370_v12  ;;  %2414 = vmatprep.subr.mxu1 %v5372_v7 }
 0x77a   :  { %2415 = vmatpush1.msra.mxu1 %v5378_v25 }
 0x77b   :  { %2087 = vmatmul.mubr.f32.gmra.mxu0 %v1921_v16  ;;  %2200 = vmatmul.mubr.f32.gmra.mxu1 %v1921_v16  ;;  %v5544_v16 = vld [vmem:[#allocation8 + $0x220] sm:$0xff] }
 0x77c   :  { %2092 = vmatprep.mubr.f32.mxu0 %v6704_v61  ;;  %2205 = vmatprep.mubr.f32.mxu1 %v6704_v61  ;;  %6728 = vst [vmem:[#allocation18_spill] sm:$0xff] %v5544_v16 }
 0x77d   :  { %2416 = vmatprep.subr.mxu1 %v5384_v54 }
 0x77e   :  { %2417 = vmatpush1.msra.mxu1 %v5390_v62 }
 0x77f   :  { %2093 = vmatmul.mubr.f32.gmra.mxu0 %v1922_v10  ;;  %2206 = vmatmul.mubr.f32.gmra.mxu1 %v1922_v10  ;;  %v5546_v10 = vld [vmem:[#allocation8 + $0x230] sm:$0xff] }
 0x780   :  { %2098 = vmatprep.mubr.f32.mxu0 %v6704_v61  ;;  %2211 = vmatprep.mubr.f32.mxu1 %v6704_v61  ;;  %6729 = vst [vmem:[#allocation19_spill] sm:$0xff] %v5546_v10 }
 0x781   :  { %2418 = vmatprep.subr.mxu1 %v5396_v33 }
 0x782   :  { %2419 = vmatpush1.msra.mxu1 %v5402_v34 }
 0x783   :  { %2099 = vmatmul.mubr.f32.gmra.mxu0 %v6709_v13  ;;  %2212 = vmatmul.mubr.f32.gmra.mxu1 %v6709_v13  ;;  %v5550_v13 = vld [vmem:[#allocation8 + $0x208] sm:$0xff] }
 0x784   :  { %2104 = vmatprep.mubr.f32.mxu0 %v6704_v61  ;;  %2217 = vmatprep.mubr.f32.mxu1 %v6704_v61  ;;  %6730 = vst [vmem:[#allocation55_spill] sm:$0xff] %v5550_v13 }
 0x785   :  { %2420 = vmatprep.subr.mxu1 %v5408_v3 }
 0x786   :  { %2421 = vmatpush1.msra.mxu1 %v5414_v63 }
 0x787   :  { %2105 = vmatmul.mubr.f32.gmra.mxu0 %v6710_v8  ;;  %2218 = vmatmul.mubr.f32.gmra.mxu1 %v6710_v8  ;;  %v5552_v8 = vld [vmem:[#allocation8 + $0x218] sm:$0xff] }
 0x788   :  { %2110 = vmatprep.mubr.f32.mxu0 %v6704_v61  ;;  %2223 = vmatprep.mubr.f32.mxu1 %v6704_v61  ;;  %6731 = vst [vmem:[#allocation57_spill] sm:$0xff] %v5552_v8 }
 0x789   :  { %2422 = vmatprep.subr.mxu1 %v5420_v47 }
 0x78a   :  { %2423 = vmatpush1.msra.mxu1 %v5426_v0 }
 0x78b   :  { %2111 = vmatmul.mubr.f32.gmra.mxu0 %v5266_v6  ;;  %2224 = vmatmul.mubr.f32.gmra.mxu1 %v5266_v6  ;;  %v5376_v6 = vld [vmem:[#allocation8 + $0x3e0] sm:$0xff] }
 0x78c   :  { %2116 = vmatprep.mubr.f32.mxu0 %v6704_v61  ;;  %2229 = vmatprep.mubr.f32.mxu1 %v6704_v61 }
 0x78d   :  { %2344 = vmatpush1.msra.mxu0 %v5376_v6  ;;  %2424 = vmatprep.subr.mxu1 %v5432_v57 }
 0x78e   :  { %2425 = vmatpush1.msra.mxu1 %v5438_v55 }
 0x78f   :  { %2117 = vmatmul.mubr.f32.gmra.mxu0 %v5342_v23  ;;  %2230 = vmatmul.mubr.f32.gmra.mxu1 %v5342_v23  ;;  %v5382_v23 = vld [vmem:[#allocation8 + $0x3c8] sm:$0xff] }
 0x790   :  { %2122 = vmatprep.mubr.f32.mxu0 %v6704_v61  ;;  %2235 = vmatprep.mubr.f32.mxu1 %v6704_v61 }
 0x791   :  { %2345 = vmatprep.subr.mxu0 %v5382_v23  ;;  %2426 = vmatprep.subr.mxu1 %v5444_v1 }
 0x792   :  { %2346 = vmatpush1.msra.mxu0 %v5388_v53  ;;  %2427 = vmatpush1.msra.mxu1 %v5450_v38 }
 0x793   :  { %2347 = vmatprep.subr.mxu0 %v5394_v32  ;;  %2428 = vmatprep.subr.mxu1 %v5456_v51 }
 0x794   :  { %2348 = vmatpush1.msra.mxu0 %v5400_v20  ;;  %2429 = vmatpush1.msra.mxu1 %v5462_v30 }
 0x795   :  { %2349 = vmatprep.subr.mxu0 %v5406_v35  ;;  %2430 = vmatprep.subr.mxu1 %v5468_v19 }
 0x796   :  { %2350 = vmatpush1.msra.mxu0 %v5412_v11  ;;  %2431 = vmatpush1.msra.mxu1 %v5474_v22 }
 0x797   :  { %2351 = vmatprep.subr.mxu0 %v5418_v4  ;;  %2432 = vmatprep.subr.mxu1 %v5480_v27 }
 0x798   :  { %2352 = vmatpush1.msra.mxu0 %v5424_v29  ;;  %2433 = vmatpush1.msra.mxu1 %v5486_v37 }
 0x799   :  { %2353 = vmatprep.subr.mxu0 %v5430_v59  ;;  %2434 = vmatprep.subr.mxu1 %v5492_v40 }
 0x79a   :  { %2354 = vmatpush1.msra.mxu0 %v5436_v56  ;;  %2435 = vmatpush1.msra.mxu1 %v5498_v42 }
 0x79b   :  { %2355 = vmatprep.subr.mxu0 %v5442_v60  ;;  %2436 = vmatprep.subr.mxu1 %v5504_v44 }
 0x79c   :  { %2356 = vmatpush1.msra.mxu0 %v5448_v58  ;;  %2437 = vmatpush1.msra.mxu1 %v5510_v46 }
 0x79d   :  { %2357 = vmatprep.subr.mxu0 %v5454_v52  ;;  %2438 = vmatprep.subr.mxu1 %v5516_v49  ;;  %v6736_v49 = vld [vmem:[#allocation66_spill] sm:$0xff] }
 0x79e   :  { %2358 = vmatpush1.msra.mxu0 %v5460_v28  ;;  %2439 = vmatpush1.msra.mxu1 %v5522_v2 }
 0x79f   :  { %2359 = vmatprep.subr.mxu0 %v5466_v31  ;;  %2440 = vmatprep.subr.mxu1 %v5528_v15 }
 0x7a0   :  { %2360 = vmatpush1.msra.mxu0 %v5472_v21  ;;  %2441 = vmatpush1.msra.mxu1 %v5534_v14  ;;  %v5554_v14 = vld [vmem:[#allocation8 + $0x200] sm:$0xff] }
 0x7a1   :  { %2361 = vmatprep.subr.mxu0 %v5478_v24  ;;  %2442 = vmatprep.subr.mxu1 %v5540_v9  ;;  %6732 = vst [vmem:[#allocation58_spill] sm:$0xff] %v5554_v14 }
 0x7a2   :  { %2362 = vmatpush1.msra.mxu0 %v5484_v36  ;;  %2443 = vmatpush1.msra.mxu1 %v5546_v10 }
 0x7a3   :  { %2363 = vmatprep.subr.mxu0 %v5490_v39  ;;  %2444 = vmatprep.subr.mxu1 %v5552_v8 }
 0x7a4   :  { %2364 = vmatpush1.msra.mxu0 %v5496_v41 }
 0x7a5   :  { %2365 = vmatprep.subr.mxu0 %v5502_v43 }
 0x7a6   :  { %2366 = vmatpush1.msra.mxu0 %v5508_v45 }
 0x7a7   :  { %2367 = vmatprep.subr.mxu0 %v5514_v48  ;;  %v6737_v48 = vld [vmem:[#allocation64_spill] sm:$0xff] }
 0x7a8   :  { %2368 = vmatpush1.msra.mxu0 %v5520_v50 }
 0x7a9   :  { %2369 = vmatprep.subr.mxu0 %v5526_v5  ;;  %v6735_v5 = vld [vmem:[#allocation65_spill] sm:$0xff] }
 0x7aa   :  { %2370 = vmatpush1.msra.mxu0 %v5532_v17 }
 0x7ab   :  { %2371 = vmatprep.subr.mxu0 %v5538_v18  ;;  %v5558_v18 = vld [vmem:[#allocation8 + $0x210] sm:$0xff] }
 0x7ac   :  { %2372 = vmatpush1.msra.mxu0 %v5544_v16  ;;  %6733 = vst [vmem:[#allocation56_spill] sm:$0xff] %v5558_v18  ;;  %2445 = vmatpush1.msra.mxu1 %v5558_v18  ;;  %v6734_v16 = vld [vmem:[#allocation63_spill] sm:$0xff] }
 0x7ad   :  { %2373 = vmatprep.subr.mxu0 %v5550_v13  ;;  %2589 = vmatprep.subr.mxu1 %v5372_v7 }
 0x7ae   :  { %2374 = vmatpush1.msra.mxu0 %v5554_v14 }
 0x7af   :  { %2518 = vmatprep.subr.mxu0 %v5370_v12 }
 0x816   :  { %v1814_v10 = vpop.f32.mrf.mxu0  ;;  %v1885_v13 = vpop.f32.mrf.mxu1 }
 0x817   :  { %v1890_v9 = vadd.f32 %v1814_v10, %v6734_v16  ;;  %v1892_v18 = vadd.f32 %v1885_v13, %v6737_v48  ;;  %v6744_v13 = vld [vmem:[#allocation20_spill] sm:$0xff] }
 0x818   :  { %v1816_v17 = vpop.f32.mrf.mxu0  ;;  %v1887_v50 = vpop.f32.mrf.mxu1 }
 0x819   :  { %v3786_v15 = vmul.f32 -1.442695, %v1890_v9  ;;  %v1891_v2 = vadd.f32 %v1816_v17, %v6735_v5  ;;  %v1893_v14 = vadd.f32 %v1887_v50, %v6736_v49 }
 0x81b   :  { %3937 = vpow2.f32 %v3786_v15  ;;  %v3787_v8 = vmul.f32 -1.442695, %v1891_v2  ;;  %v3788_v46 = vmul.f32 -1.442695, %v1893_v14  ;;  %v6742_v14 = vld [vmem:[#allocation50_spill] sm:$0xff] }
 0x81d   :  { %3939 = vpow2.f32 %v3787_v8 }
 0x81e   :  { %3941 = vtanh.f32 %v1892_v18  ;;  %v6743_v18 = vld [vmem:[#allocation48_spill] sm:$0xff] }
 0x81f   :  { %3943 = vpow2.f32 %v3788_v46  ;;  %v6741_v46 = vld [vmem:[#allocation49_spill] sm:$0xff] }
 0x828   :  { %v3938_v12 = vpop.eup %3937 }
 0x829   :  { %v1897_v45 = vadd.f32 1.0, %v3938_v12 }
 0x82a   :  { %v3940_v7 = vpop.eup %3939 }
 0x82b   :  { %3945 = vrcp.f32 %v1897_v45  ;;  %v1903_v16 = vadd.f32 1.0, %v3940_v7  ;;  %v3942_v9 = vpop.eup %3941  ;;  %v6739_v7 = vld [vmem:[#allocation44_spill] sm:$0xff]  ;;  %v6740_v45 = vld [vmem:[#allocation47_spill] sm:$0xff] }
 0x82c   :  { %v3944_v5 = vpop.eup %3943 }
 0x82d   :  { %3947 = vrcp.f32 %v1903_v16  ;;  %v1910_v10 = vadd.f32 1.0, %v3944_v5  ;;  %v6745_v16 = vld [vmem:[#allocation21_spill] sm:$0xff] }
 0x82e   :  { %v6747_v5 = vld [vmem:[#allocation53_spill] sm:$0xff] }
 0x82f   :  { %3949 = vrcp.f32 %v1910_v10  ;;  %v6751_v10 = vld [vmem:[#allocation19_spill] sm:$0xff] }
 0x838   :  { %v3946_v15 = vpop.eup %3945 }
 0x839   :  { %v1914_v17 = vmul.f32 %v3946_v15, %v3942_v9  ;;  %v6746_v9 = vld [vmem:[#allocation51_spill] sm:$0xff]  ;;  %v6748_v15 = vld [vmem:[#allocation54_spill] sm:$0xff] }
 0x83a   :  { %v3948_v2 = vpop.eup %3947 }
 0x83b   :  { %v1913_v8 = vmul.f32 %v3948_v2, %v5339_v26  ;;  %v6738_v26 = vld [vmem:[#allocation46_spill] sm:$0xff] }
 0x83c   :  { %v3950_v48 = vpop.eup %3949  ;;  %v6750_v2 = vld [vmem:[#allocation18_spill] sm:$0xff] }
 0x83d   :  { %v1915_v49 = vadd.f32 %v1914_v17, %v1913_v8  ;;  %v6749_v17 = vld [vmem:[#allocation52_spill] sm:$0xff]  ;;  %v6752_v8 = vld [vmem:[#allocation55_spill] sm:$0xff] }
 0x83f   :  { %3951 = vtanh.f32 %v1915_v49  ;;  %v6753_v49 = vld [vmem:[#allocation57_spill] sm:$0xff] }
 0x84c   :  { %v3952_v50 = vpop.eup %3951 }
 0x84d   :  { %v1917_v12 = vmul.f32 %v3952_v50, %v3950_v48  ;;  %v6754_v48 = vld [vmem:[#allocation58_spill] sm:$0xff]  ;;  %v6755_v50 = vld [vmem:[#allocation56_spill] sm:$0xff] }
 0x84f   :  { %2123 = vmatmul.mubr.f32.gmra.mxu0 %v1917_v12  ;;  %2236 = vmatmul.mubr.f32.gmra.mxu1 %v1917_v12  ;;  %v6756_v12 = vld [vmem:[#allocation36_spill] sm:$0xff] }
 0x850   :  { %2407 = vmatprep.mubr.f32.mxu0 %v6704_v61  ;;  %2478 = vmatprep.mubr.f32.mxu1 %v6704_v61 }
 0x853   :  { %2408 = vmatmul.mubr.f32.vlgmr.msra.gmra.mxu0 %v6704_v61  ;;  %2479 = vmatmul.mubr.f32.vlgmr.msra.gmra.mxu1 %v6704_v61 }
 0x854   :  { %2519 = vmatpush1.msra.mxu0 %v5376_v6  ;;  %2590 = vmatpush1.msra.mxu1 %v5378_v25 }
 0x855   :  { %2520 = vmatprep.subr.mxu0 %v5382_v23  ;;  %2591 = vmatprep.subr.mxu1 %v5384_v54 }
 0x856   :  { %2521 = vmatpush1.msra.mxu0 %v5388_v53  ;;  %2592 = vmatpush1.msra.mxu1 %v5390_v62 }
 0x857   :  { %2522 = vmatprep.subr.mxu0 %v5394_v32  ;;  %2593 = vmatprep.subr.mxu1 %v5396_v33 }
 0x858   :  { %2523 = vmatpush1.msra.mxu0 %v5400_v20  ;;  %2594 = vmatpush1.msra.mxu1 %v5402_v34 }
 0x859   :  { %2524 = vmatprep.subr.mxu0 %v5406_v35  ;;  %2595 = vmatprep.subr.mxu1 %v5408_v3 }
 0x85a   :  { %2525 = vmatpush1.msra.mxu0 %v5412_v11  ;;  %2596 = vmatpush1.msra.mxu1 %v5414_v63 }
 0x85b   :  { %2526 = vmatprep.subr.mxu0 %v5418_v4  ;;  %2597 = vmatprep.subr.mxu1 %v5420_v47 }
 0x85c   :  { %2527 = vmatpush1.msra.mxu0 %v5424_v29  ;;  %2598 = vmatpush1.msra.mxu1 %v5426_v0 }
 0x85d   :  { %2528 = vmatprep.subr.mxu0 %v5430_v59  ;;  %2599 = vmatprep.subr.mxu1 %v5432_v57 }
 0x85e   :  { %2529 = vmatpush1.msra.mxu0 %v5436_v56  ;;  %2600 = vmatpush1.msra.mxu1 %v5438_v55 }
 0x85f   :  { %2530 = vmatprep.subr.mxu0 %v5442_v60  ;;  %2601 = vmatprep.subr.mxu1 %v5444_v1 }
 0x860   :  { %2531 = vmatpush1.msra.mxu0 %v5448_v58  ;;  %2602 = vmatpush1.msra.mxu1 %v5450_v38 }
 0x861   :  { %2532 = vmatprep.subr.mxu0 %v5454_v52  ;;  %2603 = vmatprep.subr.mxu1 %v5456_v51 }
 0x862   :  { %2533 = vmatpush1.msra.mxu0 %v5460_v28  ;;  %2604 = vmatpush1.msra.mxu1 %v5462_v30 }
 0x863   :  { %2534 = vmatprep.subr.mxu0 %v5466_v31  ;;  %2605 = vmatprep.subr.mxu1 %v5468_v19 }
 0x864   :  { %2535 = vmatpush1.msra.mxu0 %v5472_v21  ;;  %2606 = vmatpush1.msra.mxu1 %v5474_v22 }
 0x865   :  { %2536 = vmatprep.subr.mxu0 %v5478_v24  ;;  %2607 = vmatprep.subr.mxu1 %v5480_v27 }
 0x866   :  { %2537 = vmatpush1.msra.mxu0 %v5484_v36  ;;  %2608 = vmatpush1.msra.mxu1 %v5486_v37 }
 0x867   :  { %2538 = vmatprep.subr.mxu0 %v5490_v39  ;;  %2609 = vmatprep.subr.mxu1 %v5492_v40 }
 0x868   :  { %2539 = vmatpush1.msra.mxu0 %v5496_v41  ;;  %2610 = vmatpush1.msra.mxu1 %v5498_v42 }
 0x869   :  { %2540 = vmatprep.subr.mxu0 %v5502_v43  ;;  %2611 = vmatprep.subr.mxu1 %v5504_v44 }
 0x86a   :  { %2541 = vmatpush1.msra.mxu0 %v6738_v26  ;;  %2612 = vmatpush1.msra.mxu1 %v6739_v7 }
 0x86b   :  { %2542 = vmatprep.subr.mxu0 %v6740_v45  ;;  %2613 = vmatprep.subr.mxu1 %v6741_v46 }
 0x86c   :  { %2543 = vmatpush1.msra.mxu0 %v6742_v14  ;;  %2614 = vmatpush1.msra.mxu1 %v6743_v18 }
 0x86d   :  { %2544 = vmatprep.subr.mxu0 %v6744_v13  ;;  %2615 = vmatprep.subr.mxu1 %v6745_v16 }
 0x86e   :  { %2545 = vmatpush1.msra.mxu0 %v6746_v9  ;;  %2616 = vmatpush1.msra.mxu1 %v6747_v5 }
 0x86f   :  { %2546 = vmatprep.subr.mxu0 %v6748_v15  ;;  %2617 = vmatprep.subr.mxu1 %v6749_v17  ;;  %v6757_v15 = vld [vmem:[#allocation37_spill] sm:$0xff]  ;;  %v2082_v17 = vpop.f32.mrf.mxu0 }
 0x870   :  { %2547 = vmatpush1.msra.mxu0 %v6750_v2  ;;  %2618 = vmatpush1.msra.mxu1 %v6751_v10  ;;  %v2195_v2 = vpop.f32.mrf.mxu1 }
 0x871   :  { %2548 = vmatprep.subr.mxu0 %v6752_v8  ;;  %2619 = vmatprep.subr.mxu1 %v6753_v49  ;;  %v2084_v5 = vpop.f32.mrf.mxu0 }
 0x872   :  { %2549 = vmatpush1.msra.mxu0 %v6754_v48  ;;  %2582 = vmatprep.mubr.f32.mxu0 %v6704_v61  ;;  %v2197_v10 = vpop.f32.mrf.mxu1 }
 0x873   :  { %2620 = vmatpush1.msra.mxu1 %v6755_v50  ;;  %2653 = vmatprep.mubr.f32.mxu1 %v6704_v61  ;;  %v5639_v9 = vpop.f32.mrf.mxu0 }
 0x874   :  { %2693 = vmatprep.subr.mxu0 %v6756_v12  ;;  %2764 = vmatprep.subr.mxu1 %v6757_v15  ;;  %6758 = vst [vmem:[#allocation17_spill] sm:$0xff] %v5639_v9  ;;  %v5641_v8 = vpop.f32.mrf.mxu1 }
 0x875   :  { %6759 = vst [vmem:[#allocation41_spill] sm:$0xff] %v5641_v8  ;;  %v5643_v49 = vpop.f32.mrf.mxu0 }
 0x876   :  { %6760 = vst [vmem:[#allocation42_spill] sm:$0xff] %v5643_v49  ;;  %v5645_v48 = vpop.f32.mrf.mxu1 }
 0x877   :  { %6761 = vst [vmem:[#allocation40_spill] sm:$0xff] %v5645_v48  ;;  %v5647_v16 = vpop.f32.mrf.mxu0 }
 0x878   :  { %6762 = vst [vmem:[#allocation22_spill] sm:$0xff] %v5647_v16  ;;  %v5649_v50 = vpop.f32.mrf.mxu1 }
 0x879   :  { %6763 = vst [vmem:[#allocation23_spill] sm:$0xff] %v5649_v50  ;;  %v5651_v61 = vpop.f32.mrf.mxu0 }
 0x87a   :  { %6764 = vst [vmem:[#allocation24_spill] sm:$0xff] %v5651_v61  ;;  %v5653_v12 = vpop.f32.mrf.mxu1 }
 0x87b   :  { %6765 = vst [vmem:[#allocation25_spill] sm:$0xff] %v5653_v12  ;;  %v5655_v15 = vpop.f32.mrf.mxu0 }
 0x87c   :  { %6766 = vst [vmem:[#allocation26_spill] sm:$0xff] %v5655_v15  ;;  %v5657_v13 = vpop.f32.mrf.mxu1 }
 0x87d   :  { %6767 = vst [vmem:[#allocation27_spill] sm:$0xff] %v5657_v13  ;;  %v5659_v18 = vpop.f32.mrf.mxu0 }
 0x87e   :  { %6768 = vst [vmem:[#allocation28_spill] sm:$0xff] %v5659_v18  ;;  %v5661_v9 = vpop.f32.mrf.mxu1 }
 0x87f   :  { %6769 = vst [vmem:[#allocation29_spill] sm:$0xff] %v5661_v9  ;;  %v5663_v8 = vpop.f32.mrf.mxu0  ;;  %v1994_v9 = vld [vmem:[#allocation9 + $0x4] sm:$0xf] }
 0x880   :  { %6770 = vst [vmem:[#allocation30_spill] sm:$0xff] %v5663_v8  ;;  %v5665_v49 = vpop.f32.mrf.mxu1 }
 0x881   :  { %6771 = vst [vmem:[#allocation31_spill] sm:$0xff] %v5665_v49  ;;  %v5667_v48 = vpop.f32.mrf.mxu0  ;;  %v6781_v49 = vld [vmem:[#allocation39_spill] sm:$0xff] }
 0x882   :  { %6772 = vst [vmem:[#allocation32_spill] sm:$0xff] %v5667_v48  ;;  %v5669_v16 = vpop.f32.mrf.mxu1  ;;  %v6782_v14 = vsub.s32 0, %v6781_v49 }
 0x883   :  { %6773 = vst [vmem:[#allocation33_spill] sm:$0xff] %v5669_v16  ;;  %v5671_v50 = vpop.f32.mrf.mxu0 }
 0x884   :  { %6774 = vst [vmem:[#allocation34_spill] sm:$0xff] %v5671_v50  ;;  %v5673_v61 = vpop.f32.mrf.mxu1  ;;  %v5687_v48 = vrot.slane %v1994_v9, %v6782_v14 }
 0x885   :  { %6775 = vst [vmem:[#allocation59_spill] sm:$0xff] %v5673_v61  ;;  %v5675_v12 = vpop.f32.mrf.mxu0  ;;  %v6786_v61 = vsub.s32 1, %v6781_v49 }
 0x886   :  { %6776 = vst [vmem:[#allocation61_spill] sm:$0xff] %v5675_v12  ;;  %v5677_v15 = vpop.f32.mrf.mxu1  ;;  %6783 = vst [vmem:[#allocation63_spill] sm:$0xff] %v5687_v48 }
 0x887   :  { %6777 = vst [vmem:[#allocation62_spill] sm:$0xff] %v5677_v15  ;;  %v5679_v13 = vpop.f32.mrf.mxu0  ;;  %v5695_v12 = vrot.slane %v1994_v9, %v6786_v61  ;;  %v6790_v61 = vsub.s32 3, %v6781_v49 }
 0x888   :  { %6778 = vst [vmem:[#allocation60_spill] sm:$0xff] %v5679_v13  ;;  %v5681_v18 = vpop.f32.mrf.mxu1 }
 0x889   :  { %6779 = vst [vmem:[#allocation16_spill] sm:$0xff] %v5681_v18  ;;  %v5683_v8 = vpop.f32.mrf.mxu0  ;;  %v2083_v18 = vadd.f32 %v2082_v17, %v5687_v48  ;;  %v5707_v43 = vrot.slane %v1994_v9, %v6790_v61 }
 0x88a   :  { %6780 = vst [vmem:[#allocation35_spill] sm:$0xff] %v5683_v8  ;;  %v5689_v16 = vpop.f32.mrf.mxu1  ;;  %v2085_v8 = vadd.f32 %v2084_v5, %v5695_v12 }
 0x88b   :  { %6784 = vst [vmem:[#allocation65_spill] sm:$0xff] %v5689_v16  ;;  %6791 = vst [vmem:[#allocation68_spill] sm:$0xff] %v5707_v43  ;;  %v2198_v17 = vadd.f32 %v2197_v10, %v5707_v43 }
 0x90f   :  { %v5691_v50 = vpop.f32.mrf.mxu0  ;;  %v5697_v15 = vpop.f32.mrf.mxu1 }
 0x910   :  { %6785 = vst [vmem:[#allocation66_spill] sm:$0xff] %v5691_v50  ;;  %6787 = vst [vmem:[#allocation64_spill] sm:$0xff] %v5697_v15 }
 0x911   :  { %v5699_v13 = vpop.f32.mrf.mxu0  ;;  %v5703_v45 = vpop.f32.mrf.mxu1 }
 0x912   :  { %6788 = vst [vmem:[#allocation39_spill] sm:$0xff] %v5699_v13  ;;  %6789 = vst [vmem:[#allocation67_spill] sm:$0xff] %v5703_v45  ;;  %v6792_v13 = vsub.s32 2, %v6781_v49 }
 0x913   :  { %v2409_v46 = vpop.f32.mrf.mxu0  ;;  %v2480_v50 = vpop.f32.mrf.mxu1 }
 0x914   :  { %v2485_v14 = vadd.f32 %v2409_v46, %v2083_v18  ;;  %v5712_v5 = vrot.slane %v1994_v9, %v6792_v13 }
 0x915   :  { %v2411_v7 = vpop.f32.mrf.mxu0  ;;  %v2482_v15 = vpop.f32.mrf.mxu1 }
 0x916   :  { %v3789_v16 = vmul.f32 -1.442695, %v2485_v14  ;;  %v2486_v26 = vadd.f32 %v2411_v7, %v2085_v8  ;;  %v2488_v45 = vadd.f32 %v2482_v15, %v2198_v17  ;;  %v2196_v46 = vadd.f32 %v2195_v2, %v5712_v5  ;;  %v6794_v17 = vld [vmem:[#allocation45_spill] sm:$0xff] }
 0x918   :  { %3953 = vpow2.f32 %v3789_v16  ;;  %v3790_v44 = vmul.f32 -1.442695, %v2486_v26  ;;  %v3791_v18 = vmul.f32 -1.442695, %v2488_v45  ;;  %v2487_v16 = vadd.f32 %v2480_v50, %v2196_v46  ;;  %v6795_v46 = vld [vmem:[#allocation46_spill] sm:$0xff] }
 0x91a   :  { %3955 = vpow2.f32 %v3790_v44 }
 0x91b   :  { %3957 = vpow2.f32 %v3791_v18  ;;  %v6796_v18 = vld [vmem:[#allocation44_spill] sm:$0xff] }
 0x925   :  { %v3954_v7 = vpop.eup %3953 }
 0x926   :  { %v2492_v8 = vadd.f32 1.0, %v3954_v7  ;;  %v6797_v7 = vld [vmem:[#allocation47_spill] sm:$0xff] }
 0x927   :  { %v3956_v26 = vpop.eup %3955 }
 0x928   :  { %3959 = vrcp.f32 %v2492_v8  ;;  %v2498_v14 = vadd.f32 1.0, %v3956_v26  ;;  %v3958_v44 = vpop.eup %3957  ;;  %v6799_v8 = vld [vmem:[#allocation50_spill] sm:$0xff]  ;;  %v6800_v26 = vld [vmem:[#allocation48_spill] sm:$0xff] }
 0x929   :  { %3961 = vtanh.f32 %v2487_v16  ;;  %v2505_v49 = vadd.f32 1.0, %v3958_v44  ;;  %v6798_v16 = vld [vmem:[#allocation49_spill] sm:$0xff] }
 0x92a   :  { %3963 = vrcp.f32 %v2498_v14  ;;  %v6801_v14 = vld [vmem:[#allocation20_spill] sm:$0xff]  ;;  %v6802_v44 = vld [vmem:[#allocation21_spill] sm:$0xff] }
 0x92b   :  { %3965 = vrcp.f32 %v2505_v49  ;;  %v6805_v49 = vld [vmem:[#allocation54_spill] sm:$0xff] }
 0x935   :  { %v3960_v61 = vpop.eup %3959 }
 0x936   :  { %v3962_v10 = vpop.eup %3961 }
 0x937   :  { %v3964_v43 = vpop.eup %3963  ;;  %v2509_v9 = vmul.f32 %v3962_v10, %v3960_v61  ;;  %v6803_v61 = vld [vmem:[#allocation51_spill] sm:$0xff]  ;;  %v6804_v10 = vld [vmem:[#allocation53_spill] sm:$0xff] }
 0x938   :  { %v2508_v13 = vmul.f32 0.0, %v3964_v43  ;;  %v3966_v45 = vpop.eup %3965  ;;  %v6793_v43 = vld [vmem:[#allocation43_spill] sm:$0xff] }
 0x93a   :  { %v5715_v15 = vadd.f32 %v2509_v9, %v2508_v13  ;;  %v6806_v13 = vld [vmem:[#allocation52_spill] sm:$0xff]  ;;  %v6807_v9 = vld [vmem:[#allocation18_spill] sm:$0xff] }
 0x93c   :  { %3967 = vtanh.f32 %v5715_v15 }
 0x949   :  { %v3968_v2 = vpop.eup %3967 }
 0x94a   :  { %v2512_v50 = vmul.f32 %v3968_v2, %v3966_v45  ;;  %v6808_v45 = vld [vmem:[#allocation19_spill] sm:$0xff] }
 0x94b   :  { %v6809_v2 = vld [vmem:[#allocation55_spill] sm:$0xff] }
 0x94c   :  { %2513 = vst [vmem:[#allocation11] sm:$0xff] %v2512_v50  ;;  %2583 = vmatmul.mubr.f32.vlgmr.msra.gmra.mxu0 %v2512_v50  ;;  %2654 = vmatmul.mubr.f32.vlgmr.msra.gmra.mxu1 %v2512_v50  ;;  %v6810_v50 = vld [vmem:[#allocation57_spill] sm:$0xff] }
 0x94d   :  { %2694 = vmatpush1.msra.mxu0 %v5376_v6  ;;  %2765 = vmatpush1.msra.mxu1 %v5378_v25 }
 0x94e   :  { %2695 = vmatprep.subr.mxu0 %v5382_v23  ;;  %2766 = vmatprep.subr.mxu1 %v5384_v54 }
 0x94f   :  { %2696 = vmatpush1.msra.mxu0 %v5388_v53  ;;  %2767 = vmatpush1.msra.mxu1 %v5390_v62 }
 0x950   :  { %2697 = vmatprep.subr.mxu0 %v5394_v32  ;;  %2768 = vmatprep.subr.mxu1 %v5396_v33 }
 0x951   :  { %2698 = vmatpush1.msra.mxu0 %v5400_v20  ;;  %2769 = vmatpush1.msra.mxu1 %v5402_v34 }
 0x952   :  { %2699 = vmatprep.subr.mxu0 %v5406_v35  ;;  %2770 = vmatprep.subr.mxu1 %v5408_v3 }
 0x953   :  { %2700 = vmatpush1.msra.mxu0 %v5412_v11  ;;  %2771 = vmatpush1.msra.mxu1 %v5414_v63 }
 0x954   :  { %2701 = vmatprep.subr.mxu0 %v5418_v4  ;;  %2772 = vmatprep.subr.mxu1 %v5420_v47 }
 0x955   :  { %2702 = vmatpush1.msra.mxu0 %v5424_v29  ;;  %2773 = vmatpush1.msra.mxu1 %v5426_v0 }
 0x956   :  { %2703 = vmatprep.subr.mxu0 %v5430_v59  ;;  %2774 = vmatprep.subr.mxu1 %v5432_v57 }
 0x957   :  { %2704 = vmatpush1.msra.mxu0 %v5436_v56  ;;  %2775 = vmatpush1.msra.mxu1 %v5438_v55 }
 0x958   :  { %2705 = vmatprep.subr.mxu0 %v5442_v60  ;;  %2776 = vmatprep.subr.mxu1 %v5444_v1 }
 0x959   :  { %2706 = vmatpush1.msra.mxu0 %v5448_v58  ;;  %2777 = vmatpush1.msra.mxu1 %v5450_v38 }
 0x95a   :  { %2707 = vmatprep.subr.mxu0 %v5454_v52  ;;  %2778 = vmatprep.subr.mxu1 %v5456_v51 }
 0x95b   :  { %2708 = vmatpush1.msra.mxu0 %v5460_v28  ;;  %2779 = vmatpush1.msra.mxu1 %v5462_v30 }
 0x95c   :  { %2709 = vmatprep.subr.mxu0 %v5466_v31  ;;  %2780 = vmatprep.subr.mxu1 %v5468_v19 }
 0x95d   :  { %2710 = vmatpush1.msra.mxu0 %v5472_v21  ;;  %2781 = vmatpush1.msra.mxu1 %v5474_v22 }
 0x95e   :  { %2711 = vmatprep.subr.mxu0 %v5478_v24  ;;  %2782 = vmatprep.subr.mxu1 %v5480_v27 }
 0x95f   :  { %2712 = vmatpush1.msra.mxu0 %v5484_v36  ;;  %2783 = vmatpush1.msra.mxu1 %v5486_v37 }
 0x960   :  { %2713 = vmatprep.subr.mxu0 %v5490_v39  ;;  %2784 = vmatprep.subr.mxu1 %v5492_v40 }
 0x961   :  { %2714 = vmatpush1.msra.mxu0 %v5496_v41  ;;  %2785 = vmatpush1.msra.mxu1 %v5498_v42 }
 0x962   :  { %2715 = vmatprep.subr.mxu0 %v6793_v43  ;;  %2786 = vmatprep.subr.mxu1 %v6794_v17  ;;  %v6820_v17 = vld [vmem:[#allocation41_spill] sm:$0xff] }
 0x963   :  { %2716 = vmatpush1.msra.mxu0 %v6795_v46  ;;  %2787 = vmatpush1.msra.mxu1 %v6796_v18  ;;  %v6818_v18 = vld [vmem:[#allocation68_spill] sm:$0xff] }
 0x964   :  { %2717 = vmatprep.subr.mxu0 %v6797_v7  ;;  %2788 = vmatprep.subr.mxu1 %v6798_v16 }
 0x965   :  { %2718 = vmatpush1.msra.mxu0 %v6799_v8  ;;  %2789 = vmatpush1.msra.mxu1 %v6800_v26  ;;  %v6811_v26 = vld [vmem:[#allocation58_spill] sm:$0xff] }
 0x966   :  { %2719 = vmatprep.subr.mxu0 %v6801_v14  ;;  %2790 = vmatprep.subr.mxu1 %v6802_v44  ;;  %v6812_v14 = vmov 0.0   ;;  %v6813_v44 = vld [vmem:[#allocation56_spill] sm:$0xff] }
 0x967   :  { %2720 = vmatpush1.msra.mxu0 %v6803_v61  ;;  %2791 = vmatpush1.msra.mxu1 %v6804_v10  ;;  %v6814_v10 = vld [vmem:[#allocation36_spill] sm:$0xff] }
 0x968   :  { %2721 = vmatprep.subr.mxu0 %v6805_v49  ;;  %2792 = vmatprep.subr.mxu1 %v6806_v13  ;;  %v6815_v49 = vld [vmem:[#allocation37_spill] sm:$0xff] }
 0x969   :  { %2722 = vmatpush1.msra.mxu0 %v6807_v9  ;;  %2793 = vmatpush1.msra.mxu1 %v6808_v45  ;;  %v6816_v9 = vld [vmem:[#allocation17_spill] sm:$0xff] }
 0x96a   :  { %2723 = vmatprep.subr.mxu0 %v6809_v2  ;;  %2794 = vmatprep.subr.mxu1 %v6810_v50  ;;  %v2089_v13 = vadd.f32 %v6816_v9, %v5687_v48  ;;  %v6817_v2 = vld [vmem:[#allocation42_spill] sm:$0xff]  ;;  %v2202_v9 = vadd.f32 %v6820_v17, %v5712_v5 }
 0x96b   :  { %2724 = vmatpush1.msra.mxu0 %v6811_v26  ;;  %2757 = vmatprep.mubr.f32.mxu0 %v6812_v14  ;;  %v2091_v61 = vadd.f32 %v6817_v2, %v5695_v12 }
 0x96c   :  { %2795 = vmatpush1.msra.mxu1 %v6813_v44  ;;  %2828 = vmatprep.mubr.f32.mxu1 %v6812_v14 }
 0x96d   :  { %2868 = vmatprep.subr.mxu0 %v6814_v10  ;;  %2939 = vmatprep.subr.mxu1 %v6815_v49  ;;  %v6819_v10 = vld [vmem:[#allocation40_spill] sm:$0xff] }
 0x96e   :  { %v2204_v46 = vadd.f32 %v6819_v10, %v6818_v18 }
 0xa0c   :  { %v2584_v45 = vpop.f32.mrf.mxu0  ;;  %v2655_v7 = vpop.f32.mrf.mxu1 }
 0xa0d   :  { %v2660_v50 = vadd.f32 %v2584_v45, %v2089_v13  ;;  %v2662_v48 = vadd.f32 %v2655_v7, %v2202_v9  ;;  %v6837_v7 = vld [vmem:[#allocation19_spill] sm:$0xff]  ;;  %v6840_v9 = vld [vmem:[#allocation58_spill] sm:$0xff] }
 0xa0e   :  { %v2586_v8 = vpop.f32.mrf.mxu0  ;;  %v2657_v14 = vpop.f32.mrf.mxu1 }
 0xa0f   :  { %v3792_v26 = vmul.f32 -1.442695, %v2660_v50  ;;  %v2661_v16 = vadd.f32 %v2586_v8, %v2091_v61  ;;  %v2663_v49 = vadd.f32 %v2657_v14, %v2204_v46  ;;  %v6839_v50 = vld [vmem:[#allocation57_spill] sm:$0xff] }
 0xa11   :  { %3969 = vpow2.f32 %v3792_v26  ;;  %v3793_v44 = vmul.f32 -1.442695, %v2661_v16  ;;  %v3794_v43 = vmul.f32 -1.442695, %v2663_v49  ;;  %v6838_v49 = vld [vmem:[#allocation55_spill] sm:$0xff] }
 0xa13   :  { %3971 = vpow2.f32 %v3793_v44 }
 0xa14   :  { %3973 = vtanh.f32 %v2662_v48 }
 0xa15   :  { %3975 = vpow2.f32 %v3794_v43  ;;  %v6836_v43 = vld [vmem:[#allocation18_spill] sm:$0xff] }
 0xa1e   :  { %v3970_v42 = vpop.eup %3969 }
 0xa1f   :  { %v2667_v2 = vadd.f32 1.0, %v3970_v42 }
 0xa20   :  { %v3972_v13 = vpop.eup %3971 }
 0xa21   :  { %3977 = vrcp.f32 %v2667_v2  ;;  %v2673_v8 = vadd.f32 1.0, %v3972_v13  ;;  %v3974_v16 = vpop.eup %3973  ;;  %v6841_v2 = vmov 0.0   ;;  %v6842_v13 = vld [vmem:[#allocation56_spill] sm:$0xff] }
 0xa22   :  { %v3976_v26 = vpop.eup %3975 }
 0xa23   :  { %3979 = vrcp.f32 %v2673_v8  ;;  %v2680_v10 = vadd.f32 1.0, %v3976_v26  ;;  %v6843_v8 = vld [vmem:[#allocation36_spill] sm:$0xff]  ;;  %v6845_v26 = vld [vmem:[#allocation63_spill] sm:$0xff] }
 0xa25   :  { %3981 = vrcp.f32 %v2680_v10  ;;  %v6847_v10 = vld [vmem:[#allocation24_spill] sm:$0xff] }
 0xa2e   :  { %v3978_v44 = vpop.eup %3977 }
 0xa2f   :  { %v2684_v61 = vmul.f32 %v3978_v44, %v3974_v16  ;;  %v6844_v16 = vld [vmem:[#allocation37_spill] sm:$0xff]  ;;  %v6846_v44 = vld [vmem:[#allocation22_spill] sm:$0xff] }
 0xa30   :  { %v3980_v45 = vpop.eup %3979 }
 0xa31   :  { %v2683_v46 = vmul.f32 %v3980_v45, %v5715_v15  ;;  %v6835_v15 = vld [vmem:[#allocation52_spill] sm:$0xff] }
 0xa32   :  { %v3982_v42 = vpop.eup %3981 }
 0xa33   :  { %v5793_v14 = vadd.f32 %v2684_v61, %v2683_v46  ;;  %v2095_v61 = vadd.f32 %v6846_v44, %v6845_v26  ;;  %v2097_v46 = vadd.f32 %v6847_v10, %v5695_v12 }
 0xa35   :  { %3983 = vtanh.f32 %v5793_v14 }
 0xa42   :  { %v3984_v48 = vpop.eup %3983 }
 0xa43   :  { %v2687_v17 = vmul.f32 %v3984_v48, %v3982_v42 }
 0xa45   :  { %2688 = vst [vmem:[#allocation11 + $0x8] sm:$0xff] %v2687_v17  ;;  %2758 = vmatmul.mubr.f32.vlgmr.msra.gmra.mxu0 %v2687_v17  ;;  %2829 = vmatmul.mubr.f32.vlgmr.msra.gmra.mxu1 %v2687_v17 }
 0xa46   :  { %2869 = vmatpush1.msra.mxu0 %v5376_v6  ;;  %2940 = vmatpush1.msra.mxu1 %v5378_v25  ;;  %v6821_v6 = vld [vmem:[#allocation38_spill] sm:$0xff]  ;;  %v6822_v25 = vld [vmem:[#allocation43_spill] sm:$0xff] }
 0xa47   :  { %2870 = vmatprep.subr.mxu0 %v5382_v23  ;;  %2941 = vmatprep.subr.mxu1 %v5384_v54  ;;  %v6823_v23 = vld [vmem:[#allocation45_spill] sm:$0xff]  ;;  %v6824_v54 = vld [vmem:[#allocation46_spill] sm:$0xff] }
 0xa48   :  { %2871 = vmatpush1.msra.mxu0 %v5388_v53  ;;  %2942 = vmatpush1.msra.mxu1 %v5390_v62  ;;  %v6825_v53 = vld [vmem:[#allocation44_spill] sm:$0xff]  ;;  %v6826_v62 = vld [vmem:[#allocation47_spill] sm:$0xff] }
 0xa49   :  { %2872 = vmatprep.subr.mxu0 %v5394_v32  ;;  %2943 = vmatprep.subr.mxu1 %v5396_v33  ;;  %v6827_v32 = vld [vmem:[#allocation49_spill] sm:$0xff]  ;;  %v6828_v33 = vld [vmem:[#allocation50_spill] sm:$0xff] }
 0xa4a   :  { %2873 = vmatpush1.msra.mxu0 %v5400_v20  ;;  %2944 = vmatpush1.msra.mxu1 %v5402_v34  ;;  %v6829_v20 = vld [vmem:[#allocation48_spill] sm:$0xff] }
 0xa4b   :  { %2874 = vmatprep.subr.mxu0 %v5406_v35  ;;  %2945 = vmatprep.subr.mxu1 %v5408_v3  ;;  %v6830_v34 = vld [vmem:[#allocation20_spill] sm:$0xff]  ;;  %v6831_v35 = vld [vmem:[#allocation21_spill] sm:$0xff]  ;;  %v6832_v3 = vld [vmem:[#allocation51_spill] sm:$0xff] }
 0xa4c   :  { %2875 = vmatpush1.msra.mxu0 %v5412_v11  ;;  %2946 = vmatpush1.msra.mxu1 %v5414_v63  ;;  %v6833_v11 = vld [vmem:[#allocation53_spill] sm:$0xff]  ;;  %v6834_v63 = vld [vmem:[#allocation54_spill] sm:$0xff] }
 0xa4d   :  { %2876 = vmatprep.subr.mxu0 %v5418_v4  ;;  %2947 = vmatprep.subr.mxu1 %v5420_v47 }
 0xa4e   :  { %2877 = vmatpush1.msra.mxu0 %v5424_v29  ;;  %2948 = vmatpush1.msra.mxu1 %v5426_v0 }
 0xa4f   :  { %2878 = vmatprep.subr.mxu0 %v5430_v59  ;;  %2949 = vmatprep.subr.mxu1 %v5432_v57 }
 0xa50   :  { %2879 = vmatpush1.msra.mxu0 %v5436_v56  ;;  %2950 = vmatpush1.msra.mxu1 %v5438_v55 }
 0xa51   :  { %2880 = vmatprep.subr.mxu0 %v5442_v60  ;;  %2951 = vmatprep.subr.mxu1 %v5444_v1 }
 0xa52   :  { %2881 = vmatpush1.msra.mxu0 %v5448_v58  ;;  %2952 = vmatpush1.msra.mxu1 %v5450_v38 }
 0xa53   :  { %2882 = vmatprep.subr.mxu0 %v5454_v52  ;;  %2953 = vmatprep.subr.mxu1 %v5456_v51 }
 0xa54   :  { %2883 = vmatpush1.msra.mxu0 %v5460_v28  ;;  %2954 = vmatpush1.msra.mxu1 %v5462_v30 }
 0xa55   :  { %2884 = vmatprep.subr.mxu0 %v5466_v31  ;;  %2955 = vmatprep.subr.mxu1 %v5468_v19 }
 0xa56   :  { %2885 = vmatpush1.msra.mxu0 %v5472_v21  ;;  %2956 = vmatpush1.msra.mxu1 %v5474_v22 }
 0xa57   :  { %2886 = vmatprep.subr.mxu0 %v5478_v24  ;;  %2957 = vmatprep.subr.mxu1 %v5480_v27 }
 0xa58   :  { %2887 = vmatpush1.msra.mxu0 %v5484_v36  ;;  %2958 = vmatpush1.msra.mxu1 %v5486_v37 }
 0xa59   :  { %2888 = vmatprep.subr.mxu0 %v5490_v39  ;;  %2959 = vmatprep.subr.mxu1 %v5492_v40 }
 0xa5a   :  { %2889 = vmatpush1.msra.mxu0 %v5496_v41  ;;  %2960 = vmatpush1.msra.mxu1 %v6821_v6 }
 0xa5b   :  { %2890 = vmatprep.subr.mxu0 %v6822_v25  ;;  %2961 = vmatprep.subr.mxu1 %v6823_v23 }
 0xa5c   :  { %2891 = vmatpush1.msra.mxu0 %v6824_v54  ;;  %2962 = vmatpush1.msra.mxu1 %v6825_v53 }
 0xa5d   :  { %2892 = vmatprep.subr.mxu0 %v6826_v62  ;;  %2963 = vmatprep.subr.mxu1 %v6827_v32 }
 0xa5e   :  { %2893 = vmatpush1.msra.mxu0 %v6828_v33  ;;  %2964 = vmatpush1.msra.mxu1 %v6829_v20 }
 0xa5f   :  { %2894 = vmatprep.subr.mxu0 %v6830_v34  ;;  %2965 = vmatprep.subr.mxu1 %v6831_v35 }
 0xa60   :  { %2895 = vmatpush1.msra.mxu0 %v6832_v3  ;;  %2966 = vmatpush1.msra.mxu1 %v6833_v11 }
 0xa61   :  { %2896 = vmatprep.subr.mxu0 %v6834_v63  ;;  %2967 = vmatprep.subr.mxu1 %v6835_v15 }
 0xa62   :  { %2897 = vmatpush1.msra.mxu0 %v6836_v43  ;;  %2968 = vmatpush1.msra.mxu1 %v6837_v7  ;;  %v6849_v7 = vld [vmem:[#allocation23_spill] sm:$0xff] }
 0xa63   :  { %2898 = vmatprep.subr.mxu0 %v6838_v49  ;;  %2969 = vmatprep.subr.mxu1 %v6839_v50  ;;  %v2208_v44 = vadd.f32 %v6849_v7, %v5712_v5 }
 0xa64   :  { %2899 = vmatpush1.msra.mxu0 %v6840_v9  ;;  %2932 = vmatprep.mubr.f32.mxu0 %v6841_v2 }
 0xa65   :  { %2970 = vmatpush1.msra.mxu1 %v6842_v13  ;;  %3003 = vmatprep.mubr.f32.mxu1 %v6841_v2 }
 0xa66   :  { %3043 = vmatprep.subr.mxu0 %v6843_v8  ;;  %3114 = vmatprep.subr.mxu1 %v6844_v16  ;;  %v6848_v8 = vld [vmem:[#allocation25_spill] sm:$0xff] }
 0xa67   :  { %v2210_v49 = vadd.f32 %v6848_v8, %v6818_v18  ;;  %v5883_v8 = vld [vmem:[#allocation8 + $0x3d8] sm:$0xff] }
 0xb05   :  { %v2759_v45 = vpop.f32.mrf.mxu0  ;;  %v2830_v50 = vpop.f32.mrf.mxu1 }
 0xb06   :  { %v2835_v42 = vadd.f32 %v2759_v45, %v2095_v61  ;;  %v2837_v26 = vadd.f32 %v2830_v50, %v2208_v44  ;;  %v5889_v44 = vld [vmem:[#allocation8 + $0x3d0] sm:$0xff] }
 0xb07   :  { %v2761_v48 = vpop.f32.mrf.mxu0  ;;  %v2832_v2 = vpop.f32.mrf.mxu1 }
 0xb08   :  { %v3795_v17 = vmul.f32 -1.442695, %v2835_v42  ;;  %v2836_v9 = vadd.f32 %v2761_v48, %v2097_v46  ;;  %v2838_v16 = vadd.f32 %v2832_v2, %v2210_v49 }
 0xb0a   :  { %3985 = vpow2.f32 %v3795_v17  ;;  %v3796_v13 = vmul.f32 -1.442695, %v2836_v9  ;;  %v3797_v43 = vmul.f32 -1.442695, %v2838_v16  ;;  %v5886_v16 = vld [vmem:[#allocation8 + $0x3c0] sm:$0xff] }
 0xb0c   :  { %3987 = vpow2.f32 %v3796_v13 }
 0xb0d   :  { %3989 = vtanh.f32 %v2837_v26  ;;  %v5877_v26 = vld [vmem:[#allocation8 + $0x3f0] sm:$0xff] }
 0xb0e   :  { %3991 = vpow2.f32 %v3797_v43  ;;  %v5874_v43 = vld [vmem:[#allocation8 + $0x3e0] sm:$0xff] }
 0xb17   :  { %v3986_v15 = vpop.eup %3985 }
 0xb18   :  { %v2842_v10 = vadd.f32 1.0, %v3986_v15 }
 0xb19   :  { %v3988_v61 = vpop.eup %3987 }
 0xb1a   :  { %3993 = vrcp.f32 %v2842_v10  ;;  %v2848_v45 = vadd.f32 1.0, %v3988_v61  ;;  %v3990_v9 = vpop.eup %3989  ;;  %v5892_v10 = vld [vmem:[#allocation8 + $0x3a8] sm:$0xff]  ;;  %v5895_v61 = vld [vmem:[#allocation8 + $0x3b8] sm:$0xff] }
 0xb1b   :  { %v3992_v13 = vpop.eup %3991 }
 0xb1c   :  { %3995 = vrcp.f32 %v2848_v45  ;;  %v2855_v17 = vadd.f32 1.0, %v3992_v13  ;;  %v5898_v45 = vld [vmem:[#allocation8 + $0x3a0] sm:$0xff]  ;;  %v5904_v13 = vld [vmem:[#allocation8 + $0x388] sm:$0xff] }
 0xb1e   :  { %3997 = vrcp.f32 %v2855_v17 }
 0xb27   :  { %v3994_v46 = vpop.eup %3993 }
 0xb28   :  { %v2859_v42 = vmul.f32 %v3994_v46, %v3990_v9  ;;  %v5901_v9 = vld [vmem:[#allocation8 + $0x3b0] sm:$0xff]  ;;  %v5907_v46 = vld [vmem:[#allocation8 + $0x398] sm:$0xff] }
 0xb29   :  { %v3996_v48 = vpop.eup %3995 }
 0xb2a   :  { %v2858_v49 = vmul.f32 %v3996_v48, %v5793_v14  ;;  %v5880_v14 = vld [vmem:[#allocation8 + $0x3c8] sm:$0xff]  ;;  %v5913_v48 = vld [vmem:[#allocation8 + $0x390] sm:$0xff] }
 0xb2b   :  { %v3998_v15 = vpop.eup %3997 }
 0xb2c   :  { %v5871_v2 = vadd.f32 %v2859_v42, %v2858_v49  ;;  %v5910_v42 = vld [vmem:[#allocation8 + $0x380] sm:$0xff] }
 0xb2e   :  { %3999 = vtanh.f32 %v5871_v2 }
 0xb3b   :  { %v4000_v7 = vpop.eup %3999 }
 0xb3c   :  { %v2862_v50 = vmul.f32 %v4000_v7, %v3998_v15 }
 0xb3e   :  { %2863 = vst [vmem:[#allocation11 + $0x10] sm:$0xff] %v2862_v50  ;;  %2933 = vmatmul.mubr.f32.vlgmr.msra.gmra.mxu0 %v2862_v50  ;;  %3004 = vmatmul.mubr.f32.vlgmr.msra.gmra.mxu1 %v2862_v50  ;;  %v6001_v50 = vld [vmem:[#allocation8 + $0x378] sm:$0xff] }
 0xb3f   :  { %3044 = vmatpush1.msra.mxu0 %v5874_v43  ;;  %3115 = vmatpush1.msra.mxu1 %v5877_v26 }
 0xb40   :  { %3045 = vmatprep.subr.mxu0 %v5880_v14  ;;  %3116 = vmatprep.subr.mxu1 %v5883_v8 }
 0xb41   :  { %3046 = vmatpush1.msra.mxu0 %v5886_v16  ;;  %3117 = vmatpush1.msra.mxu1 %v5889_v44 }
 0xb42   :  { %3047 = vmatprep.subr.mxu0 %v5892_v10  ;;  %3118 = vmatprep.subr.mxu1 %v5895_v61 }
 0xb43   :  { %3048 = vmatpush1.msra.mxu0 %v5898_v45  ;;  %3119 = vmatpush1.msra.mxu1 %v5901_v9 }
 0xb44   :  { %3049 = vmatprep.subr.mxu0 %v5904_v13  ;;  %3120 = vmatprep.subr.mxu1 %v5907_v46 }
 0xb45   :  { %3050 = vmatpush1.msra.mxu0 %v5910_v42  ;;  %3121 = vmatpush1.msra.mxu1 %v5913_v48 }
 0xb46   :  { %3051 = vmatprep.subr.mxu0 %v5418_v4  ;;  %3122 = vmatprep.subr.mxu1 %v5420_v47  ;;  %v6850_v4 = vld [vmem:[#allocation52_spill] sm:$0xff]  ;;  %v6851_v47 = vld [vmem:[#allocation18_spill] sm:$0xff] }
 0xb47   :  { %3052 = vmatpush1.msra.mxu0 %v5424_v29  ;;  %3123 = vmatpush1.msra.mxu1 %v5426_v0  ;;  %v6852_v29 = vld [vmem:[#allocation19_spill] sm:$0xff] }
 0xb48   :  { %3053 = vmatprep.subr.mxu0 %v5430_v59  ;;  %3124 = vmatprep.subr.mxu1 %v5432_v57  ;;  %v6853_v0 = vld [vmem:[#allocation55_spill] sm:$0xff]  ;;  %v6854_v59 = vld [vmem:[#allocation57_spill] sm:$0xff]  ;;  %v6855_v57 = vld [vmem:[#allocation58_spill] sm:$0xff] }
 0xb49   :  { %3054 = vmatpush1.msra.mxu0 %v5436_v56  ;;  %3125 = vmatpush1.msra.mxu1 %v5438_v55  ;;  %v6856_v56 = vmov 0.0   ;;  %v6857_v55 = vld [vmem:[#allocation56_spill] sm:$0xff] }
 0xb4a   :  { %3055 = vmatprep.subr.mxu0 %v5442_v60  ;;  %3126 = vmatprep.subr.mxu1 %v5444_v1  ;;  %v5966_v60 = vld [vmem:[#allocation8 + $0x3e8] sm:$0xff]  ;;  %v5969_v1 = vld [vmem:[#allocation8 + $0x3f8] sm:$0xff] }
 0xb4b   :  { %3056 = vmatpush1.msra.mxu0 %v5448_v58  ;;  %3127 = vmatpush1.msra.mxu1 %v5450_v38  ;;  %6858 = vst [vmem:[#allocation17_spill] sm:$0xff] %v5966_v60  ;;  %6859 = vst [vmem:[#allocation42_spill] sm:$0xff] %v5969_v1  ;;  %v6860_v58 = vld [vmem:[#allocation63_spill] sm:$0xff]  ;;  %v6861_v38 = vld [vmem:[#allocation26_spill] sm:$0xff] }
 0xb4c   :  { %3057 = vmatprep.subr.mxu0 %v5454_v52  ;;  %3128 = vmatprep.subr.mxu1 %v5456_v51  ;;  %v2101_v52 = vadd.f32 %v6861_v38, %v6860_v58  ;;  %v6025_v38 = vld [vmem:[#allocation8 + $0x338] sm:$0xff] }
 0xb4d   :  { %3058 = vmatpush1.msra.mxu0 %v5460_v28  ;;  %3129 = vmatpush1.msra.mxu1 %v5462_v30  ;;  %v6862_v28 = vld [vmem:[#allocation28_spill] sm:$0xff] }
 0xb4e   :  { %3059 = vmatprep.subr.mxu0 %v5466_v31  ;;  %3130 = vmatprep.subr.mxu1 %v5468_v19  ;;  %v2103_v30 = vadd.f32 %v6862_v28, %v5695_v12  ;;  %v6034_v28 = vld [vmem:[#allocation8 + $0x308] sm:$0xff] }
 0xb4f   :  { %3060 = vmatpush1.msra.mxu0 %v5472_v21  ;;  %3131 = vmatpush1.msra.mxu1 %v5474_v22 }
 0xb50   :  { %3061 = vmatprep.subr.mxu0 %v5478_v24  ;;  %3132 = vmatprep.subr.mxu1 %v5480_v27 }
 0xb51   :  { %3062 = vmatpush1.msra.mxu0 %v5484_v36  ;;  %3133 = vmatpush1.msra.mxu1 %v5486_v37  ;;  %v6863_v37 = vld [vmem:[#allocation29_spill] sm:$0xff] }
 0xb52   :  { %3063 = vmatprep.subr.mxu0 %v5490_v39  ;;  %3134 = vmatprep.subr.mxu1 %v5492_v40  ;;  %v2216_v39 = vadd.f32 %v6863_v37, %v6818_v18  ;;  %v6061_v37 = vld [vmem:[#allocation8 + $0x2d8] sm:$0xff] }
 0xb53   :  { %3064 = vmatpush1.msra.mxu0 %v5496_v41  ;;  %3135 = vmatpush1.msra.mxu1 %v6821_v6  ;;  %v6864_v41 = vld [vmem:[#allocation27_spill] sm:$0xff] }
 0xb54   :  { %3065 = vmatprep.subr.mxu0 %v6822_v25  ;;  %3136 = vmatprep.subr.mxu1 %v6823_v23  ;;  %v2214_v6 = vadd.f32 %v6864_v41, %v5712_v5  ;;  %v6070_v41 = vld [vmem:[#allocation8 + $0x2a8] sm:$0xff] }
 0xb55   :  { %3066 = vmatpush1.msra.mxu0 %v6824_v54  ;;  %3137 = vmatpush1.msra.mxu1 %v6825_v53 }
 0xb56   :  { %3067 = vmatprep.subr.mxu0 %v6826_v62  ;;  %3138 = vmatprep.subr.mxu1 %v6827_v32 }
 0xb57   :  { %3068 = vmatpush1.msra.mxu0 %v6828_v33  ;;  %3139 = vmatpush1.msra.mxu1 %v6829_v20 }
 0xb58   :  { %3069 = vmatprep.subr.mxu0 %v6830_v34  ;;  %3140 = vmatprep.subr.mxu1 %v6831_v35 }
 0xb59   :  { %3070 = vmatpush1.msra.mxu0 %v6832_v3  ;;  %3141 = vmatpush1.msra.mxu1 %v6833_v11 }
 0xb5a   :  { %3071 = vmatprep.subr.mxu0 %v6834_v63  ;;  %3142 = vmatprep.subr.mxu1 %v6850_v4  ;;  %v6004_v4 = vld [vmem:[#allocation8 + $0x360] sm:$0xff] }
 0xb5b   :  { %3072 = vmatpush1.msra.mxu0 %v6851_v47  ;;  %3143 = vmatpush1.msra.mxu1 %v6852_v29  ;;  %v6007_v47 = vld [vmem:[#allocation8 + $0x370] sm:$0xff]  ;;  %v6010_v29 = vld [vmem:[#allocation8 + $0x348] sm:$0xff] }
 0xb5c   :  { %3073 = vmatprep.subr.mxu0 %v6853_v0  ;;  %3144 = vmatprep.subr.mxu1 %v6854_v59  ;;  %v6013_v0 = vld [vmem:[#allocation8 + $0x358] sm:$0xff]  ;;  %v6016_v59 = vld [vmem:[#allocation8 + $0x340] sm:$0xff] }
 0xb5d   :  { %3074 = vmatpush1.msra.mxu0 %v6855_v57  ;;  %3107 = vmatprep.mubr.f32.mxu0 %v6856_v56  ;;  %v6019_v57 = vld [vmem:[#allocation8 + $0x350] sm:$0xff] }
 0xb5e   :  { %3145 = vmatpush1.msra.mxu1 %v6857_v55  ;;  %3178 = vmatprep.mubr.f32.mxu1 %v6856_v56  ;;  %v6022_v55 = vld [vmem:[#allocation8 + $0x328] sm:$0xff] }
 0xb5f   :  { %3218 = vmatprep.subr.mxu0 %v5966_v60  ;;  %3289 = vmatprep.subr.mxu1 %v5969_v1 }
 0xbfe   :  { %v2934_v51 = vpop.f32.mrf.mxu0  ;;  %v3005_v24 = vpop.f32.mrf.mxu1 }
 0xbff   :  { %v3010_v31 = vadd.f32 %v2934_v51, %v2101_v52  ;;  %v3012_v25 = vadd.f32 %v3005_v24, %v2214_v6  ;;  %v6028_v52 = vld [vmem:[#allocation8 + $0x320] sm:$0xff]  ;;  %v6031_v51 = vld [vmem:[#allocation8 + $0x330] sm:$0xff]  ;;  %v6073_v6 = vld [vmem:[#allocation8 + $0x2b8] sm:$0xff] }
 0xc00   :  { %v2936_v19 = vpop.f32.mrf.mxu0  ;;  %v3007_v36 = vpop.f32.mrf.mxu1  ;;  %v6052_v24 = vld [vmem:[#allocation8 + $0x2e0] sm:$0xff] }
 0xc01   :  { %v3798_v21 = vmul.f32 -1.442695, %v3010_v31  ;;  %v3011_v22 = vadd.f32 %v2936_v19, %v2103_v30  ;;  %v3013_v40 = vadd.f32 %v3007_v36, %v2216_v39  ;;  %v6037_v30 = vld [vmem:[#allocation8 + $0x318] sm:$0xff]  ;;  %v6040_v31 = vld [vmem:[#allocation8 + $0x300] sm:$0xff]  ;;  %v6043_v19 = vld [vmem:[#allocation8 + $0x310] sm:$0xff] }
 0xc02   :  { %v6058_v36 = vld [vmem:[#allocation8 + $0x2c8] sm:$0xff]  ;;  %v6064_v39 = vld [vmem:[#allocation8 + $0x2c0] sm:$0xff] }
 0xc03   :  { %4001 = vpow2.f32 %v3798_v21  ;;  %v3799_v27 = vmul.f32 -1.442695, %v3011_v22  ;;  %v3800_v23 = vmul.f32 -1.442695, %v3013_v40  ;;  %v6046_v21 = vld [vmem:[#allocation8 + $0x2e8] sm:$0xff]  ;;  %v6049_v22 = vld [vmem:[#allocation8 + $0x2f8] sm:$0xff] }
 0xc04   :  { %v6067_v40 = vld [vmem:[#allocation8 + $0x2d0] sm:$0xff] }
 0xc05   :  { %4003 = vpow2.f32 %v3799_v27  ;;  %v6055_v27 = vld [vmem:[#allocation8 + $0x2f0] sm:$0xff] }
 0xc06   :  { %4005 = vtanh.f32 %v3012_v25  ;;  %v6076_v25 = vld [vmem:[#allocation8 + $0x2a0] sm:$0xff] }
 0xc07   :  { %4007 = vpow2.f32 %v3800_v23  ;;  %v6079_v23 = vld [vmem:[#allocation8 + $0x2b0] sm:$0xff] }
 0xc08   :  { %6865 = vst [vmem:[#allocation68_spill] sm:$0xff] %v6079_v23 }
 0xc10   :  { %v4002_v54 = vpop.eup %4001 }
 0xc11   :  { %v3017_v53 = vadd.f32 1.0, %v4002_v54  ;;  %v6082_v54 = vld [vmem:[#allocation8 + $0x288] sm:$0xff] }
 0xc12   :  { %v4004_v62 = vpop.eup %4003  ;;  %6866 = vst [vmem:[#allocation40_spill] sm:$0xff] %v6082_v54 }
 0xc13   :  { %4009 = vrcp.f32 %v3017_v53  ;;  %v3023_v32 = vadd.f32 1.0, %v4004_v62  ;;  %v4006_v33 = vpop.eup %4005  ;;  %v6085_v53 = vld [vmem:[#allocation8 + $0x298] sm:$0xff]  ;;  %v6088_v62 = vld [vmem:[#allocation8 + $0x280] sm:$0xff] }
 0xc14   :  { %v4008_v20 = vpop.eup %4007  ;;  %6867 = vst [vmem:[#allocation41_spill] sm:$0xff] %v6085_v53  ;;  %6868 = vst [vmem:[#allocation38_spill] sm:$0xff] %v6088_v62 }
 0xc15   :  { %4011 = vrcp.f32 %v3023_v32  ;;  %v3030_v11 = vadd.f32 1.0, %v4008_v20  ;;  %v6091_v32 = vld [vmem:[#allocation8 + $0x290] sm:$0xff]  ;;  %v6097_v20 = vld [vmem:[#allocation8 + $0x278] sm:$0xff] }
 0xc16   :  { %6869 = vst [vmem:[#allocation43_spill] sm:$0xff] %v6091_v32  ;;  %6871 = vst [vmem:[#allocation46_spill] sm:$0xff] %v6097_v20 }
 0xc17   :  { %4013 = vrcp.f32 %v3030_v11  ;;  %v6109_v11 = vld [vmem:[#allocation8 + $0x258] sm:$0xff] }
 0xc18   :  { %6875 = vst [vmem:[#allocation50_spill] sm:$0xff] %v6109_v11 }
 0xc20   :  { %v4010_v34 = vpop.eup %4009 }
 0xc21   :  { %v3034_v35 = vmul.f32 %v4010_v34, %v4006_v33  ;;  %v6094_v33 = vld [vmem:[#allocation8 + $0x268] sm:$0xff]  ;;  %v6100_v34 = vld [vmem:[#allocation8 + $0x260] sm:$0xff] }
 0xc22   :  { %v4012_v3 = vpop.eup %4011  ;;  %6870 = vst [vmem:[#allocation45_spill] sm:$0xff] %v6094_v33  ;;  %6872 = vst [vmem:[#allocation44_spill] sm:$0xff] %v6100_v34 }
 0xc23   :  { %v3033_v63 = vmul.f32 %v4012_v3, %v5871_v2  ;;  %v5998_v2 = vld [vmem:[#allocation8 + $0x368] sm:$0xff] }
 0xc24   :  { %v4014_v49 = vpop.eup %4013  ;;  %v6106_v3 = vld [vmem:[#allocation8 + $0x248] sm:$0xff] }
 0xc25   :  { %v5981_v17 = vadd.f32 %v3034_v35, %v3033_v63  ;;  %v6103_v35 = vld [vmem:[#allocation8 + $0x270] sm:$0xff]  ;;  %6874 = vst [vmem:[#allocation49_spill] sm:$0xff] %v6106_v3  ;;  %v6112_v63 = vld [vmem:[#allocation8 + $0x240] sm:$0xff] }
 0xc26   :  { %6873 = vst [vmem:[#allocation47_spill] sm:$0xff] %v6103_v35  ;;  %6876 = vst [vmem:[#allocation48_spill] sm:$0xff] %v6112_v63 }
 0xc27   :  { %4015 = vtanh.f32 %v5981_v17 }
 0xc34   :  { %v4016_v15 = vpop.eup %4015 }
 0xc35   :  { %v3037_v7 = vmul.f32 %v4016_v15, %v4014_v49  ;;  %v6115_v49 = vld [vmem:[#allocation8 + $0x250] sm:$0xff]  ;;  %v6118_v15 = vld [vmem:[#allocation8 + $0x228] sm:$0xff] }
 0xc36   :  { %6877 = vst [vmem:[#allocation20_spill] sm:$0xff] %v6115_v49  ;;  %6878 = vst [vmem:[#allocation21_spill] sm:$0xff] %v6118_v15 }
 0xc37   :  { %3038 = vst [vmem:[#allocation11 + $0x18] sm:$0xff] %v3037_v7  ;;  %3108 = vmatmul.mubr.f32.vlgmr.msra.gmra.mxu0 %v3037_v7  ;;  %3179 = vmatmul.mubr.f32.vlgmr.msra.gmra.mxu1 %v3037_v7  ;;  %v6121_v7 = vld [vmem:[#allocation8 + $0x238] sm:$0xff] }
 0xc38   :  { %3219 = vmatpush1.msra.mxu0 %v5874_v43  ;;  %3290 = vmatpush1.msra.mxu1 %v5877_v26  ;;  %6879 = vst [vmem:[#allocation51_spill] sm:$0xff] %v6121_v7 }
 0xc39   :  { %3220 = vmatprep.subr.mxu0 %v5880_v14  ;;  %3291 = vmatprep.subr.mxu1 %v5883_v8 }
 0xc3a   :  { %3221 = vmatpush1.msra.mxu0 %v5886_v16  ;;  %3292 = vmatpush1.msra.mxu1 %v5889_v44 }
 0xc3b   :  { %3222 = vmatprep.subr.mxu0 %v5892_v10  ;;  %3293 = vmatprep.subr.mxu1 %v5895_v61 }
 0xc3c   :  { %3223 = vmatpush1.msra.mxu0 %v5898_v45  ;;  %3294 = vmatpush1.msra.mxu1 %v5901_v9 }
 0xc3d   :  { %3224 = vmatprep.subr.mxu0 %v5904_v13  ;;  %3295 = vmatprep.subr.mxu1 %v5907_v46 }
 0xc3e   :  { %3225 = vmatpush1.msra.mxu0 %v5910_v42  ;;  %3296 = vmatpush1.msra.mxu1 %v5913_v48 }
 0xc3f   :  { %3226 = vmatprep.subr.mxu0 %v5998_v2  ;;  %3297 = vmatprep.subr.mxu1 %v6001_v50 }
 0xc40   :  { %3227 = vmatpush1.msra.mxu0 %v6004_v4  ;;  %3298 = vmatpush1.msra.mxu1 %v6007_v47 }
 0xc41   :  { %3228 = vmatprep.subr.mxu0 %v6010_v29  ;;  %3299 = vmatprep.subr.mxu1 %v6013_v0 }
 0xc42   :  { %3229 = vmatpush1.msra.mxu0 %v6016_v59  ;;  %3300 = vmatpush1.msra.mxu1 %v6019_v57 }
 0xc43   :  { %3230 = vmatprep.subr.mxu0 %v6022_v55  ;;  %3301 = vmatprep.subr.mxu1 %v6025_v38 }
 0xc44   :  { %3231 = vmatpush1.msra.mxu0 %v6028_v52  ;;  %3302 = vmatpush1.msra.mxu1 %v6031_v51 }
 0xc45   :  { %3232 = vmatprep.subr.mxu0 %v6034_v28  ;;  %3303 = vmatprep.subr.mxu1 %v6037_v30 }
 0xc46   :  { %3233 = vmatpush1.msra.mxu0 %v6040_v31  ;;  %3304 = vmatpush1.msra.mxu1 %v6043_v19 }
 0xc47   :  { %3234 = vmatprep.subr.mxu0 %v6046_v21  ;;  %3305 = vmatprep.subr.mxu1 %v6049_v22 }
 0xc48   :  { %3235 = vmatpush1.msra.mxu0 %v6052_v24  ;;  %3306 = vmatpush1.msra.mxu1 %v6055_v27 }
 0xc49   :  { %3236 = vmatprep.subr.mxu0 %v6058_v36  ;;  %3307 = vmatprep.subr.mxu1 %v6061_v37 }
 0xc4a   :  { %3237 = vmatpush1.msra.mxu0 %v6064_v39  ;;  %3308 = vmatpush1.msra.mxu1 %v6067_v40 }
 0xc4b   :  { %3238 = vmatprep.subr.mxu0 %v6070_v41  ;;  %3309 = vmatprep.subr.mxu1 %v6073_v6 }
 0xc4c   :  { %3239 = vmatpush1.msra.mxu0 %v6076_v25  ;;  %3310 = vmatpush1.msra.mxu1 %v6079_v23 }
 0xc4d   :  { %3240 = vmatprep.subr.mxu0 %v6082_v54  ;;  %3311 = vmatprep.subr.mxu1 %v6085_v53  ;;  %v6889_v53 = vld [vmem:[#allocation31_spill] sm:$0xff] }
 0xc4e   :  { %3241 = vmatpush1.msra.mxu0 %v6088_v62  ;;  %3312 = vmatpush1.msra.mxu1 %v6091_v32 }
 0xc4f   :  { %3242 = vmatprep.subr.mxu0 %v6094_v33  ;;  %3313 = vmatprep.subr.mxu1 %v6097_v20 }
 0xc50   :  { %3243 = vmatpush1.msra.mxu0 %v6100_v34  ;;  %3314 = vmatpush1.msra.mxu1 %v6103_v35 }
 0xc51   :  { %3244 = vmatprep.subr.mxu0 %v6106_v3  ;;  %3315 = vmatprep.subr.mxu1 %v6109_v11  ;;  %v6124_v3 = vld [vmem:[#allocation8 + $0x220] sm:$0xff]  ;;  %v6127_v11 = vld [vmem:[#allocation8 + $0x230] sm:$0xff] }
 0xc52   :  { %3245 = vmatpush1.msra.mxu0 %v6112_v63  ;;  %3316 = vmatpush1.msra.mxu1 %v6115_v49  ;;  %6880 = vst [vmem:[#allocation53_spill] sm:$0xff] %v6124_v3  ;;  %6881 = vst [vmem:[#allocation54_spill] sm:$0xff] %v6127_v11  ;;  %v6130_v63 = vld [vmem:[#allocation8 + $0x208] sm:$0xff]  ;;  %v6133_v49 = vld [vmem:[#allocation8 + $0x218] sm:$0xff] }
 0xc53   :  { %3246 = vmatprep.subr.mxu0 %v6118_v15  ;;  %3317 = vmatprep.subr.mxu1 %v6121_v7  ;;  %6882 = vst [vmem:[#allocation36_spill] sm:$0xff] %v6130_v63  ;;  %6883 = vst [vmem:[#allocation37_spill] sm:$0xff] %v6133_v49  ;;  %v6136_v15 = vld [vmem:[#allocation8 + $0x200] sm:$0xff]  ;;  %v6140_v7 = vld [vmem:[#allocation8 + $0x210] sm:$0xff] }
 0xc54   :  { %3247 = vmatpush1.msra.mxu0 %v6124_v3  ;;  %3318 = vmatpush1.msra.mxu1 %v6127_v11  ;;  %6884 = vst [vmem:[#allocation22_spill] sm:$0xff] %v6136_v15  ;;  %6885 = vst [vmem:[#allocation24_spill] sm:$0xff] %v6140_v7  ;;  %v6887_v3 = vld [vmem:[#allocation32_spill] sm:$0xff] }
 0xc55   :  { %3248 = vmatprep.subr.mxu0 %v6130_v63  ;;  %3319 = vmatprep.subr.mxu1 %v6133_v49  ;;  %v6886_v63 = vld [vmem:[#allocation30_spill] sm:$0xff]  ;;  %v2109_v35 = vadd.f32 %v6887_v3, %v5695_v12 }
 0xc56   :  { %3249 = vmatpush1.msra.mxu0 %v6136_v15  ;;  %3282 = vmatprep.mubr.f32.mxu0 %v6856_v56  ;;  %v2107_v11 = vadd.f32 %v6886_v63, %v6860_v58  ;;  %v2220_v63 = vadd.f32 %v6889_v53, %v5712_v5  ;;  %v6892_v53 = vld [vmem:[#allocation41_spill] sm:$0xff] }
 0xc57   :  { %3320 = vmatpush1.msra.mxu1 %v6140_v7  ;;  %3353 = vmatprep.mubr.f32.mxu1 %v6856_v56 }
 0xc58   :  { %3393 = vmatprep.subr.mxu0 %v5966_v60  ;;  %3464 = vmatprep.subr.mxu1 %v5969_v1  ;;  %v6888_v60 = vld [vmem:[#allocation33_spill] sm:$0xff] }
 0xc59   :  { %v2222_v62 = vadd.f32 %v6888_v60, %v6818_v18 }
 0xcf7   :  { %v3109_v49 = vpop.f32.mrf.mxu0  ;;  %v3180_v32 = vpop.f32.mrf.mxu1 }
 0xcf8   :  { %v3185_v15 = vadd.f32 %v3109_v49, %v2107_v11  ;;  %v3187_v58 = vadd.f32 %v3180_v32, %v2220_v63  ;;  %v6893_v32 = vld [vmem:[#allocation38_spill] sm:$0xff]  ;;  %v6895_v63 = vld [vmem:[#allocation45_spill] sm:$0xff] }
 0xcf9   :  { %v3111_v34 = vpop.f32.mrf.mxu0  ;;  %v3182_v56 = vpop.f32.mrf.mxu1 }
 0xcfa   :  { %v3801_v20 = vmul.f32 -1.442695, %v3185_v15  ;;  %v3186_v33 = vadd.f32 %v3111_v34, %v2109_v35  ;;  %v3188_v1 = vadd.f32 %v3182_v56, %v2222_v62 }
 0xcfc   :  { %4017 = vpow2.f32 %v3801_v20  ;;  %v3802_v7 = vmul.f32 -1.442695, %v3186_v33  ;;  %v3803_v54 = vmul.f32 -1.442695, %v3188_v1 }
 0xcfe   :  { %4019 = vpow2.f32 %v3802_v7  ;;  %v6894_v7 = vld [vmem:[#allocation43_spill] sm:$0xff] }
 0xcff   :  { %4021 = vtanh.f32 %v3187_v58 }
 0xd00   :  { %4023 = vpow2.f32 %v3803_v54  ;;  %v6891_v54 = vld [vmem:[#allocation40_spill] sm:$0xff] }
 0xd09   :  { %v4018_v23 = vpop.eup %4017 }
 0xd0a   :  { %v3192_v3 = vadd.f32 1.0, %v4018_v23 }
 0xd0b   :  { %v4020_v11 = vpop.eup %4019 }
 0xd0c   :  { %4025 = vrcp.f32 %v3192_v3  ;;  %v3198_v20 = vadd.f32 1.0, %v4020_v11  ;;  %v4022_v33 = vpop.eup %4021  ;;  %v6896_v3 = vld [vmem:[#allocation46_spill] sm:$0xff]  ;;  %v6897_v11 = vld [vmem:[#allocation44_spill] sm:$0xff] }
 0xd0d   :  { %v4024_v34 = vpop.eup %4023 }
 0xd0e   :  { %4027 = vrcp.f32 %v3198_v20  ;;  %v3205_v60 = vadd.f32 1.0, %v4024_v34  ;;  %v6898_v20 = vld [vmem:[#allocation47_spill] sm:$0xff]  ;;  %v6900_v34 = vld [vmem:[#allocation50_spill] sm:$0xff] }
 0xd10   :  { %4029 = vrcp.f32 %v3205_v60  ;;  %v6904_v60 = vld [vmem:[#allocation51_spill] sm:$0xff] }
 0xd19   :  { %v4026_v35 = vpop.eup %4025 }
 0xd1a   :  { %v3209_v49 = vmul.f32 %v4026_v35, %v4022_v33  ;;  %v6899_v33 = vld [vmem:[#allocation49_spill] sm:$0xff]  ;;  %v6901_v35 = vld [vmem:[#allocation48_spill] sm:$0xff] }
 0xd1b   :  { %v4028_v15 = vpop.eup %4027 }
 0xd1c   :  { %v3208_v56 = vmul.f32 %v4028_v15, %v5981_v17  ;;  %v6890_v17 = vld [vmem:[#allocation68_spill] sm:$0xff]  ;;  %v6903_v15 = vld [vmem:[#allocation21_spill] sm:$0xff] }
 0xd1d   :  { %v4030_v1 = vpop.eup %4029 }
 0xd1e   :  { %v6155_v62 = vadd.f32 %v3209_v49, %v3208_v56  ;;  %v6902_v49 = vld [vmem:[#allocation20_spill] sm:$0xff]  ;;  %v6905_v56 = vld [vmem:[#allocation53_spill] sm:$0xff] }
 0xd20   :  { %4031 = vtanh.f32 %v6155_v62 }
 0xd2d   :  { %v4032_v58 = vpop.eup %4031 }
 0xd2e   :  { %v3212_v23 = vmul.f32 %v4032_v58, %v4030_v1  ;;  %v6906_v1 = vld [vmem:[#allocation54_spill] sm:$0xff]  ;;  %v6907_v58 = vld [vmem:[#allocation36_spill] sm:$0xff] }
 0xd30   :  { %3213 = vst [vmem:[#allocation11 + $0x20] sm:$0xff] %v3212_v23  ;;  %3283 = vmatmul.mubr.f32.vlgmr.msra.gmra.mxu0 %v3212_v23  ;;  %3354 = vmatmul.mubr.f32.vlgmr.msra.gmra.mxu1 %v3212_v23  ;;  %v6908_v23 = vld [vmem:[#allocation37_spill] sm:$0xff] }
 0xd31   :  { %3394 = vmatpush1.msra.mxu0 %v5874_v43  ;;  %3465 = vmatpush1.msra.mxu1 %v5877_v26 }
 0xd32   :  { %3395 = vmatprep.subr.mxu0 %v5880_v14  ;;  %3466 = vmatprep.subr.mxu1 %v5883_v8 }
 0xd33   :  { %3396 = vmatpush1.msra.mxu0 %v5886_v16  ;;  %3467 = vmatpush1.msra.mxu1 %v5889_v44 }
 0xd34   :  { %3397 = vmatprep.subr.mxu0 %v5892_v10  ;;  %3468 = vmatprep.subr.mxu1 %v5895_v61 }
 0xd35   :  { %3398 = vmatpush1.msra.mxu0 %v5898_v45  ;;  %3469 = vmatpush1.msra.mxu1 %v5901_v9 }
 0xd36   :  { %3399 = vmatprep.subr.mxu0 %v5904_v13  ;;  %3470 = vmatprep.subr.mxu1 %v5907_v46 }
 0xd37   :  { %3400 = vmatpush1.msra.mxu0 %v5910_v42  ;;  %3471 = vmatpush1.msra.mxu1 %v5913_v48 }
 0xd38   :  { %3401 = vmatprep.subr.mxu0 %v5998_v2  ;;  %3472 = vmatprep.subr.mxu1 %v6001_v50 }
 0xd39   :  { %3402 = vmatpush1.msra.mxu0 %v6004_v4  ;;  %3473 = vmatpush1.msra.mxu1 %v6007_v47 }
 0xd3a   :  { %3403 = vmatprep.subr.mxu0 %v6010_v29  ;;  %3474 = vmatprep.subr.mxu1 %v6013_v0 }
 0xd3b   :  { %3404 = vmatpush1.msra.mxu0 %v6016_v59  ;;  %3475 = vmatpush1.msra.mxu1 %v6019_v57 }
 0xd3c   :  { %3405 = vmatprep.subr.mxu0 %v6022_v55  ;;  %3476 = vmatprep.subr.mxu1 %v6025_v38 }
 0xd3d   :  { %3406 = vmatpush1.msra.mxu0 %v6028_v52  ;;  %3477 = vmatpush1.msra.mxu1 %v6031_v51 }
 0xd3e   :  { %3407 = vmatprep.subr.mxu0 %v6034_v28  ;;  %3478 = vmatprep.subr.mxu1 %v6037_v30 }
 0xd3f   :  { %3408 = vmatpush1.msra.mxu0 %v6040_v31  ;;  %3479 = vmatpush1.msra.mxu1 %v6043_v19 }
 0xd40   :  { %3409 = vmatprep.subr.mxu0 %v6046_v21  ;;  %3480 = vmatprep.subr.mxu1 %v6049_v22 }
 0xd41   :  { %3410 = vmatpush1.msra.mxu0 %v6052_v24  ;;  %3481 = vmatpush1.msra.mxu1 %v6055_v27 }
 0xd42   :  { %3411 = vmatprep.subr.mxu0 %v6058_v36  ;;  %3482 = vmatprep.subr.mxu1 %v6061_v37 }
 0xd43   :  { %3412 = vmatpush1.msra.mxu0 %v6064_v39  ;;  %3483 = vmatpush1.msra.mxu1 %v6067_v40 }
 0xd44   :  { %3413 = vmatprep.subr.mxu0 %v6070_v41  ;;  %3484 = vmatprep.subr.mxu1 %v6073_v6 }
 0xd45   :  { %3414 = vmatpush1.msra.mxu0 %v6076_v25  ;;  %3485 = vmatpush1.msra.mxu1 %v6890_v17 }
 0xd46   :  { %3415 = vmatprep.subr.mxu0 %v6891_v54  ;;  %3486 = vmatprep.subr.mxu1 %v6892_v53  ;;  %v6918_v53 = vld [vmem:[#allocation59_spill] sm:$0xff] }
 0xd47   :  { %3416 = vmatpush1.msra.mxu0 %v6893_v32  ;;  %3487 = vmatpush1.msra.mxu1 %v6894_v7 }
 0xd48   :  { %3417 = vmatprep.subr.mxu0 %v6895_v63  ;;  %3488 = vmatprep.subr.mxu1 %v6896_v3 }
 0xd49   :  { %3418 = vmatpush1.msra.mxu0 %v6897_v11  ;;  %3489 = vmatpush1.msra.mxu1 %v6898_v20  ;;  %v6909_v20 = vld [vmem:[#allocation22_spill] sm:$0xff] }
 0xd4a   :  { %3419 = vmatprep.subr.mxu0 %v6899_v33  ;;  %3490 = vmatprep.subr.mxu1 %v6900_v34  ;;  %v6910_v33 = vmov 0.0   ;;  %v6911_v34 = vld [vmem:[#allocation24_spill] sm:$0xff] }
 0xd4b   :  { %3420 = vmatpush1.msra.mxu0 %v6901_v35  ;;  %3491 = vmatpush1.msra.mxu1 %v6902_v49  ;;  %v6912_v49 = vld [vmem:[#allocation17_spill] sm:$0xff] }
 0xd4c   :  { %3421 = vmatprep.subr.mxu0 %v6903_v15  ;;  %3492 = vmatprep.subr.mxu1 %v6904_v60  ;;  %v6913_v15 = vld [vmem:[#allocation42_spill] sm:$0xff]  ;;  %v6914_v60 = vld [vmem:[#allocation63_spill] sm:$0xff] }
 0xd4d   :  { %3422 = vmatpush1.msra.mxu0 %v6905_v56  ;;  %3493 = vmatpush1.msra.mxu1 %v6906_v1  ;;  %v6915_v56 = vld [vmem:[#allocation34_spill] sm:$0xff] }
 0xd4e   :  { %3423 = vmatprep.subr.mxu0 %v6907_v58  ;;  %3494 = vmatprep.subr.mxu1 %v6908_v23  ;;  %v2113_v35 = vadd.f32 %v6915_v56, %v6914_v60  ;;  %v6916_v58 = vld [vmem:[#allocation61_spill] sm:$0xff]  ;;  %v2226_v56 = vadd.f32 %v6918_v53, %v5712_v5 }
 0xd4f   :  { %3424 = vmatpush1.msra.mxu0 %v6909_v20  ;;  %3457 = vmatprep.mubr.f32.mxu0 %v6910_v33  ;;  %v2115_v11 = vadd.f32 %v6916_v58, %v5695_v12 }
 0xd50   :  { %3495 = vmatpush1.msra.mxu1 %v6911_v34  ;;  %3528 = vmatprep.mubr.f32.mxu1 %v6910_v33 }
 0xd51   :  { %3568 = vmatprep.subr.mxu0 %v6912_v49  ;;  %3639 = vmatprep.subr.mxu1 %v6913_v15  ;;  %v6917_v49 = vld [vmem:[#allocation62_spill] sm:$0xff] }
 0xd52   :  { %v2228_v32 = vadd.f32 %v6917_v49, %v6818_v18 }
 0xdf0   :  { %v3284_v1 = vpop.f32.mrf.mxu0  ;;  %v3355_v7 = vpop.f32.mrf.mxu1 }
 0xdf1   :  { %v3360_v23 = vadd.f32 %v3284_v1, %v2113_v35  ;;  %v3362_v60 = vadd.f32 %v3355_v7, %v2226_v56 }
 0xdf2   :  { %v3286_v3 = vpop.f32.mrf.mxu0  ;;  %v3357_v33 = vpop.f32.mrf.mxu1 }
 0xdf3   :  { %v3804_v20 = vmul.f32 -1.442695, %v3360_v23  ;;  %v3361_v63 = vadd.f32 %v3286_v3, %v2115_v11  ;;  %v3363_v15 = vadd.f32 %v3357_v33, %v2228_v32 }
 0xdf5   :  { %4033 = vpow2.f32 %v3804_v20  ;;  %v3805_v34 = vmul.f32 -1.442695, %v3361_v63  ;;  %v3806_v54 = vmul.f32 -1.442695, %v3363_v15 }
 0xdf7   :  { %4035 = vpow2.f32 %v3805_v34 }
 0xdf8   :  { %4037 = vtanh.f32 %v3362_v60 }
 0xdf9   :  { %4039 = vpow2.f32 %v3806_v54 }
 0xe02   :  { %v4034_v17 = vpop.eup %4033 }
 0xe03   :  { %v3367_v58 = vadd.f32 1.0, %v4034_v17 }
 0xe04   :  { %v4036_v35 = vpop.eup %4035 }
 0xe05   :  { %4041 = vrcp.f32 %v3367_v58  ;;  %v3373_v3 = vadd.f32 1.0, %v4036_v35  ;;  %v4038_v63 = vpop.eup %4037 }
 0xe06   :  { %v4040_v11 = vpop.eup %4039 }
 0xe07   :  { %4043 = vrcp.f32 %v3373_v3  ;;  %v3380_v23 = vadd.f32 1.0, %v4040_v11 }
 0xe09   :  { %4045 = vrcp.f32 %v3380_v23 }
 0xe12   :  { %v4042_v20 = vpop.eup %4041 }
 0xe13   :  { %v3384_v34 = vmul.f32 %v4042_v20, %v4038_v63 }
 0xe14   :  { %v4044_v1 = vpop.eup %4043 }
 0xe15   :  { %v3383_v32 = vmul.f32 %v4044_v1, %v6155_v62 }
 0xe16   :  { %v4046_v17 = vpop.eup %4045 }
 0xe17   :  { %v6233_v33 = vadd.f32 %v3384_v34, %v3383_v32 }
 0xe19   :  { %4047 = vtanh.f32 %v6233_v33 }
 0xe26   :  { %v4048_v53 = vpop.eup %4047 }
 0xe27   :  { %v3387_v7 = vmul.f32 %v4048_v53, %v4046_v17  ;;  %v6946_v17 = vld [vmem:[#allocation66_spill] sm:$0xff] }
 0xe29   :  { %3388 = vst [vmem:[#allocation11 + $0x28] sm:$0xff] %v3387_v7  ;;  %3458 = vmatmul.mubr.f32.vlgmr.msra.gmra.mxu0 %v3387_v7  ;;  %3529 = vmatmul.mubr.f32.vlgmr.msra.gmra.mxu1 %v3387_v7 }
 0xe2a   :  { %3569 = vmatpush1.msra.mxu0 %v5874_v43  ;;  %3640 = vmatpush1.msra.mxu1 %v5877_v26  ;;  %v6919_v43 = vld [vmem:[#allocation68_spill] sm:$0xff] }
 0xe2b   :  { %3570 = vmatprep.subr.mxu0 %v5880_v14  ;;  %3641 = vmatprep.subr.mxu1 %v5883_v8  ;;  %v6920_v26 = vld [vmem:[#allocation40_spill] sm:$0xff]  ;;  %v6921_v14 = vld [vmem:[#allocation41_spill] sm:$0xff]  ;;  %v6922_v8 = vld [vmem:[#allocation38_spill] sm:$0xff] }
 0xe2c   :  { %3571 = vmatpush1.msra.mxu0 %v5886_v16  ;;  %3642 = vmatpush1.msra.mxu1 %v5889_v44  ;;  %v6923_v16 = vld [vmem:[#allocation43_spill] sm:$0xff]  ;;  %v6924_v44 = vld [vmem:[#allocation45_spill] sm:$0xff] }
 0xe2d   :  { %3572 = vmatprep.subr.mxu0 %v5892_v10  ;;  %3643 = vmatprep.subr.mxu1 %v5895_v61  ;;  %v6925_v10 = vld [vmem:[#allocation46_spill] sm:$0xff]  ;;  %v6926_v61 = vld [vmem:[#allocation44_spill] sm:$0xff] }
 0xe2e   :  { %3573 = vmatpush1.msra.mxu0 %v5898_v45  ;;  %3644 = vmatpush1.msra.mxu1 %v5901_v9  ;;  %v6927_v45 = vld [vmem:[#allocation47_spill] sm:$0xff]  ;;  %v6928_v9 = vld [vmem:[#allocation49_spill] sm:$0xff] }
 0xe2f   :  { %3574 = vmatprep.subr.mxu0 %v5904_v13  ;;  %3645 = vmatprep.subr.mxu1 %v5907_v46  ;;  %v6929_v13 = vld [vmem:[#allocation50_spill] sm:$0xff]  ;;  %v6930_v46 = vld [vmem:[#allocation48_spill] sm:$0xff] }
 0xe30   :  { %3575 = vmatpush1.msra.mxu0 %v5910_v42  ;;  %3646 = vmatpush1.msra.mxu1 %v5913_v48  ;;  %v6931_v42 = vld [vmem:[#allocation20_spill] sm:$0xff]  ;;  %v6932_v48 = vld [vmem:[#allocation21_spill] sm:$0xff] }
 0xe31   :  { %3576 = vmatprep.subr.mxu0 %v5998_v2  ;;  %3647 = vmatprep.subr.mxu1 %v6001_v50  ;;  %v6933_v2 = vld [vmem:[#allocation51_spill] sm:$0xff]  ;;  %v6934_v50 = vld [vmem:[#allocation53_spill] sm:$0xff] }
 0xe32   :  { %3577 = vmatpush1.msra.mxu0 %v6004_v4  ;;  %3648 = vmatpush1.msra.mxu1 %v6007_v47  ;;  %v6935_v4 = vld [vmem:[#allocation54_spill] sm:$0xff]  ;;  %v6936_v47 = vld [vmem:[#allocation36_spill] sm:$0xff] }
 0xe33   :  { %3578 = vmatprep.subr.mxu0 %v6010_v29  ;;  %3649 = vmatprep.subr.mxu1 %v6013_v0  ;;  %v6937_v29 = vld [vmem:[#allocation37_spill] sm:$0xff]  ;;  %v6938_v0 = vld [vmem:[#allocation22_spill] sm:$0xff] }
 0xe34   :  { %3579 = vmatpush1.msra.mxu0 %v6016_v59  ;;  %3650 = vmatpush1.msra.mxu1 %v6019_v57  ;;  %v6939_v59 = vmov 0.0   ;;  %v6940_v57 = vld [vmem:[#allocation24_spill] sm:$0xff] }
 0xe35   :  { %3580 = vmatprep.subr.mxu0 %v6022_v55  ;;  %3651 = vmatprep.subr.mxu1 %v6025_v38  ;;  %v6941_v55 = vld [vmem:[#allocation63_spill] sm:$0xff]  ;;  %v6942_v38 = vld [vmem:[#allocation60_spill] sm:$0xff] }
 0xe36   :  { %3581 = vmatpush1.msra.mxu0 %v6028_v52  ;;  %3652 = vmatpush1.msra.mxu1 %v6031_v51  ;;  %v2119_v52 = vadd.f32 %v6942_v38, %v6941_v55  ;;  %v2125_v53 = vadd.f32 %v6946_v17, %v6941_v55 }
 0xe37   :  { %3582 = vmatprep.subr.mxu0 %v6034_v28  ;;  %3653 = vmatprep.subr.mxu1 %v6037_v30  ;;  %v6943_v28 = vld [vmem:[#allocation35_spill] sm:$0xff] }
 0xe38   :  { %3583 = vmatpush1.msra.mxu0 %v6040_v31  ;;  %3654 = vmatpush1.msra.mxu1 %v6043_v19  ;;  %v2121_v30 = vadd.f32 %v6943_v28, %v5695_v12 }
 0xe39   :  { %3584 = vmatprep.subr.mxu0 %v6046_v21  ;;  %3655 = vmatprep.subr.mxu1 %v6049_v22 }
 0xe3a   :  { %3585 = vmatpush1.msra.mxu0 %v6052_v24  ;;  %3656 = vmatpush1.msra.mxu1 %v6055_v27 }
 0xe3b   :  { %3586 = vmatprep.subr.mxu0 %v6058_v36  ;;  %3657 = vmatprep.subr.mxu1 %v6061_v37  ;;  %v6944_v37 = vld [vmem:[#allocation65_spill] sm:$0xff] }
 0xe3c   :  { %3587 = vmatpush1.msra.mxu0 %v6064_v39  ;;  %3658 = vmatpush1.msra.mxu1 %v6067_v40  ;;  %v2234_v39 = vadd.f32 %v6944_v37, %v6818_v18 }
 0xe3d   :  { %3588 = vmatprep.subr.mxu0 %v6070_v41  ;;  %3659 = vmatprep.subr.mxu1 %v6073_v6  ;;  %v6945_v41 = vld [vmem:[#allocation16_spill] sm:$0xff] }
 0xe3e   :  { %3589 = vmatpush1.msra.mxu0 %v6076_v25  ;;  %3660 = vmatpush1.msra.mxu1 %v6919_v43  ;;  %v2232_v6 = vadd.f32 %v6945_v41, %v5712_v5  ;;  %v6947_v43 = vld [vmem:[#allocation39_spill] sm:$0xff] }
 0xe3f   :  { %3590 = vmatprep.subr.mxu0 %v6920_v26  ;;  %3661 = vmatprep.subr.mxu1 %v6921_v14  ;;  %v2127_v26 = vadd.f32 %v6947_v43, %v5695_v12 }
 0xe40   :  { %3591 = vmatpush1.msra.mxu0 %v6922_v8  ;;  %3662 = vmatpush1.msra.mxu1 %v6923_v16 }
 0xe41   :  { %3592 = vmatprep.subr.mxu0 %v6924_v44  ;;  %3663 = vmatprep.subr.mxu1 %v6925_v10 }
 0xe42   :  { %3593 = vmatpush1.msra.mxu0 %v6926_v61  ;;  %3664 = vmatpush1.msra.mxu1 %v6927_v45  ;;  %v6948_v45 = vld [vmem:[#allocation67_spill] sm:$0xff] }
 0xe43   :  { %3594 = vmatprep.subr.mxu0 %v6928_v9  ;;  %3665 = vmatprep.subr.mxu1 %v6929_v13  ;;  %v2240_v9 = vadd.f32 %v6948_v45, %v6818_v18 }
 0xe44   :  { %3595 = vmatpush1.msra.mxu0 %v6930_v46  ;;  %3666 = vmatpush1.msra.mxu1 %v6931_v42  ;;  %v6949_v46 = vld [vmem:[#allocation64_spill] sm:$0xff] }
 0xe45   :  { %3596 = vmatprep.subr.mxu0 %v6932_v48  ;;  %3667 = vmatprep.subr.mxu1 %v6933_v2  ;;  %v2238_v42 = vadd.f32 %v6949_v46, %v5712_v5 }
 0xe46   :  { %3597 = vmatpush1.msra.mxu0 %v6934_v50  ;;  %3668 = vmatpush1.msra.mxu1 %v6935_v4 }
 0xe47   :  { %3598 = vmatprep.subr.mxu0 %v6936_v47  ;;  %3669 = vmatprep.subr.mxu1 %v6937_v29 }
 0xe48   :  { %3599 = vmatpush1.msra.mxu0 %v6938_v0  ;;  %3632 = vmatprep.mubr.f32.mxu0 %v6939_v59 }
 0xe49   :  { %3670 = vmatpush1.msra.mxu1 %v6940_v57  ;;  %3703 = vmatprep.mubr.f32.mxu1 %v6939_v59 }
 0xee9   :  { %v3459_v51 = vpop.f32.mrf.mxu0  ;;  %v3530_v24 = vpop.f32.mrf.mxu1 }
 0xeea   :  { %v3535_v31 = vadd.f32 %v3459_v51, %v2119_v52  ;;  %v3537_v25 = vadd.f32 %v3530_v24, %v2232_v6 }
 0xeeb   :  { %v3461_v19 = vpop.f32.mrf.mxu0  ;;  %v3532_v36 = vpop.f32.mrf.mxu1 }
 0xeec   :  { %v3807_v21 = vmul.f32 -1.442695, %v3535_v31  ;;  %v3536_v22 = vadd.f32 %v3461_v19, %v2121_v30  ;;  %v3538_v40 = vadd.f32 %v3532_v36, %v2234_v39 }
 0xeee   :  { %4049 = vpow2.f32 %v3807_v21  ;;  %v3808_v27 = vmul.f32 -1.442695, %v3536_v22  ;;  %v3809_v62 = vmul.f32 -1.442695, %v3538_v40 }
 0xef0   :  { %4051 = vpow2.f32 %v3808_v27 }
 0xef1   :  { %4053 = vtanh.f32 %v3537_v25 }
 0xef2   :  { %4055 = vpow2.f32 %v3809_v62 }
 0xefb   :  { %v4050_v54 = vpop.eup %4049 }
 0xefc   :  { %v3542_v60 = vadd.f32 1.0, %v4050_v54 }
 0xefd   :  { %v4052_v49 = vpop.eup %4051 }
 0xefe   :  { %4057 = vrcp.f32 %v3542_v60  ;;  %v3548_v15 = vadd.f32 1.0, %v4052_v49  ;;  %v4054_v56 = vpop.eup %4053 }
 0xeff   :  { %v4056_v58 = vpop.eup %4055 }
 0xf00   :  { %4059 = vrcp.f32 %v3548_v15  ;;  %v3555_v11 = vadd.f32 1.0, %v4056_v58 }
 0xf02   :  { %4061 = vrcp.f32 %v3555_v11 }
 0xf0b   :  { %v4058_v35 = vpop.eup %4057 }
 0xf0c   :  { %v3559_v3 = vmul.f32 %v4058_v35, %v4054_v56 }
 0xf0d   :  { %v4060_v63 = vpop.eup %4059 }
 0xf0e   :  { %v3558_v20 = vmul.f32 %v4060_v63, %v6233_v33 }
 0xf0f   :  { %v4062_v1 = vpop.eup %4061 }
 0xf10   :  { %v3560_v34 = vadd.f32 %v3559_v3, %v3558_v20 }
 0xf12   :  { %4063 = vtanh.f32 %v3560_v34 }
 0xf1f   :  { %v4064_v23 = vpop.eup %4063 }
 0xf20   :  { %v3562_v32 = vmul.f32 %v4064_v23, %v4062_v1 }
 0xf22   :  { %3563 = vst [vmem:[#allocation11 + $0x30] sm:$0xff] %v3562_v32  ;;  %3633 = vmatmul.mubr.f32.vlgmr.msra.gmra.mxu0 %v3562_v32  ;;  %3704 = vmatmul.mubr.f32.vlgmr.msra.gmra.mxu1 %v3562_v32 }
 0xfe2   :  { %v3634_v7 = vpop.f32.mrf.mxu0  ;;  %v3705_v44 = vpop.f32.mrf.mxu1 }
 0xfe3   :  { %v3710_v14 = vadd.f32 %v3634_v7, %v2125_v53  ;;  %v3712_v48 = vadd.f32 %v3705_v44, %v2238_v42 }
 0xfe4   :  { %v3636_v8 = vpop.f32.mrf.mxu0  ;;  %v3707_v61 = vpop.f32.mrf.mxu1 }
 0xfe5   :  { %v3810_v16 = vmul.f32 -1.442695, %v3710_v14  ;;  %v3711_v33 = vadd.f32 %v3636_v8, %v2127_v26  ;;  %v3713_v13 = vadd.f32 %v3707_v61, %v2240_v9 }
 0xfe7   :  { %4065 = vpow2.f32 %v3810_v16  ;;  %v3811_v10 = vmul.f32 -1.442695, %v3711_v33  ;;  %v3812_v2 = vmul.f32 -1.442695, %v3713_v13 }
 0xfe9   :  { %4067 = vpow2.f32 %v3811_v10 }
 0xfea   :  { %4069 = vtanh.f32 %v3712_v48 }
 0xfeb   :  { %4071 = vpow2.f32 %v3812_v2 }
 0xff4   :  { %v4066_v50 = vpop.eup %4065 }
 0xff5   :  { %v3717_v12 = vadd.f32 1.0, %v4066_v50 }
 0xff6   :  { %v4068_v4 = vpop.eup %4067 }
 0xff7   :  { %4073 = vrcp.f32 %v3717_v12  ;;  %v3723_v47 = vadd.f32 1.0, %v4068_v4  ;;  %v4070_v29 = vpop.eup %4069 }
 0xff8   :  { %v4072_v0 = vpop.eup %4071 }
 0xff9   :  { %4075 = vrcp.f32 %v3723_v47  ;;  %v3730_v18 = vadd.f32 1.0, %v4072_v0 }
 0xffb   :  { %4077 = vrcp.f32 %v3730_v18 }
0x1004   :  { %v4074_v59 = vpop.eup %4073 }
0x1005   :  { %v3734_v57 = vmul.f32 %v4074_v59, %v4070_v29 }
0x1006   :  { %v4076_v55 = vpop.eup %4075 }
0x1007   :  { %v3733_v38 = vmul.f32 %v4076_v55, %v3560_v34 }
0x1008   :  { %v4078_v5 = vpop.eup %4077 }
0x1009   :  { %v3735_v52 = vadd.f32 %v3734_v57, %v3733_v38 }
0x100b   :  { %4079 = vtanh.f32 %v3735_v52 }
0x1018   :  { %v4080_v51 = vpop.eup %4079 }
0x1019   :  { %v3737_v28 = vmul.f32 %v4080_v51, %v4078_v5 }
0x101b   :  { %3738 = vst [vmem:[#allocation11 + $0x38] sm:$0xff] %v3737_v28 }
0x101c   :  { %4300 = shalt.err (!%p4297_p10)
}
0x101d   :  { %3750 = dma.vmem_to_hbm [thread:$0]  %s3745_s3, 1024, %s6327_s4, [#allocation5], %s4321_s25, %s4321_s25, %s4322_s26  }
0x101e   :  { %4315 = dma.done.wait [#allocation5], 1024  }
0x101f   :  { %4316 = vsyncadd [#allocation5], 4294966272 }
0x1020   :  { %3754 = vsyncpa [#allocation4], 1 }
0x1021   :  { %3755 = vsyncpa [#allocation7], 1 }
0x1022   :  { %3756 = vsyncpa [#allocation10], 1 }
0x1023   :  { %3757 = vsyncpa [#allocation5], 1 }

</bundles_post_ra>
